<compile_context>
chip_gen: v6e
topology: v6e:2x2x1
jax: 0.10.0
libtpu: 0.0.40
codegen_flags: <defaults>
</compile_context>

<pallas_src>
import functools

import jax
import jax.numpy as jnp
from jax import lax
from jax.experimental import pallas as pl
from jax.experimental.pallas import tpu as pltpu

# Small, self-consistent hyperparameters.
OBS_LEN = 8
PRED_LEN = 8
EMBEDDING_DIM = 32
ENCODER_H_DIM = 32
DECODER_H_DIM = 64
MLP_DIM = 64
BATCH = 4
BN_EPS = 1e-5

# TPU-friendly padded sizes.
BATCH_PAD = 8        # sublane minimum
IN_PAD = 8           # rel-position input lanes: [x, y, 1(bias), 0...]
ENC_H_PAD = 128      # each encoder gate padded to a full 128-lane block
DEC_H_PAD = 128      # each decoder gate padded to a full 128-lane block
MLP_PAD = 128        # MLP intermediate padded to a full 128-lane block
OUT_PAD = 128        # output head padded to 128 lanes (lane-dense stores)


# ----------------------------- reference helpers -----------------------------
def _lstm_step(x_emb, h, c, w_ih, w_hh, b):
    gates = (jnp.dot(x_emb, w_ih, preferred_element_type=jnp.float32)
             + jnp.dot(h, w_hh, preferred_element_type=jnp.float32) + b)
    hd = h.shape[-1]
    i = jax.nn.sigmoid(gates[:, 0 * hd:1 * hd])
    f = jax.nn.sigmoid(gates[:, 1 * hd:2 * hd])
    g = jnp.tanh(gates[:, 2 * hd:3 * hd])
    o = jax.nn.sigmoid(gates[:, 3 * hd:4 * hd])
    c_new = f * c + i * g
    h_new = o * jnp.tanh(c_new)
    return h_new, c_new


def _bn_relu(x, gamma, beta):
    mean = jnp.mean(x, axis=0, keepdims=True)
    var = jnp.mean((x - mean) ** 2, axis=0, keepdims=True)
    xn = (x - mean) * lax.rsqrt(var + BN_EPS)
    return jnp.maximum(xn * gamma + beta, 0.0)


# ------------------------------ kernel helpers --------------------------------
def _lstm_from_gates(gates, c, hp):
    # Gate blocks are padded to hp=128 lanes; slices land on vreg boundaries.
    i = jax.nn.sigmoid(gates[:, 0 * hp:1 * hp])
    f = jax.nn.sigmoid(gates[:, 1 * hp:2 * hp])
    g = jnp.tanh(gates[:, 2 * hp:3 * hp])
    o = jax.nn.sigmoid(gates[:, 3 * hp:4 * hp])
    c_new = f * c + i * g
    return o * jnp.tanh(c_new), c_new


def _bn_relu_masked(x, gamma, beta, mask, inv_n):
    # Train-mode BatchNorm1d (biased variance) computed only over the real
    # (non-padded) batch rows, selected by `mask`.
    mean = jnp.sum(x * mask, axis=0, keepdims=True) * inv_n
    d = (x - mean) * mask
    var = jnp.sum(d * d, axis=0, keepdims=True) * inv_n
    xn = (x - mean) * lax.rsqrt(var + BN_EPS)
    return jnp.maximum(xn * gamma + beta, 0.0)


# --------------------------------- the kernel ---------------------------------
def trajectory_generator_kernel(
        obs_ref,                                         # (obs_len*BP, IN_PAD) w/ ones col
        enc_wx_ref, enc_whh_ref,                         # folded/padded encoder
        mlp1_w_ref, mlp1_b_ref, bn1_g_ref, bn1_b_ref,
        mlp2_w_ref, mlp2_b_ref, bn2_g_ref, bn2_b_ref,
        dec_wx_ref, dec_whh0_ref,                        # decoder step 0 (bias folded)
        dec_whhf_ref, dec_bf_ref,                        # decoder steps >= 1 (fused)
        h2p_w_ref, h2p_b_ref,
        out_ref,                                         # (pred_len*BP, OUT_PAD)
        xg_ref, hs_ref,                                  # VMEM scratch
        *, n_real):
    bp = BATCH_PAD
    obs_len = obs_ref.shape[0] // bp
    pred_len = out_ref.shape[0] // bp
    enc_hp = enc_whh_ref.shape[0]
    dec_hp = dec_whhf_ref.shape[0]

    # ---- Encoder: input-side gate pre-activations (incl. bias via ones column)
    # for all timesteps in ONE matmul. ----
    xg_ref[...] = jnp.dot(obs_ref[...], enc_wx_ref[...],
                          preferred_element_type=jnp.float32)

    enc_whh = enc_whh_ref[...]

    def enc_body(t, carry):
        h, c = carry
        row = pl.multiple_of(t * bp, bp)
        gates = xg_ref[pl.ds(row, bp), :] + jnp.dot(
            h, enc_whh, preferred_element_type=jnp.float32)
        return _lstm_from_gates(gates, c, enc_hp)

    h0 = jnp.zeros((bp, enc_hp), jnp.float32)
    c0 = jnp.zeros((bp, enc_hp), jnp.float32)
    h_enc, _ = lax.fori_loop(0, obs_len, enc_body, (h0, c0), unroll=True)

    # ---- mlp_decoder_context: (Linear -> BN -> ReLU) x 2, masked BN stats. ----
    mask = (lax.broadcasted_iota(jnp.int32, (bp, 1), 0) < n_real).astype(jnp.float32)
    inv_n = 1.0 / float(n_real)
    y = jnp.dot(h_enc, mlp1_w_ref[...], preferred_element_type=jnp.float32) + mlp1_b_ref[...]
    y = _bn_relu_masked(y, bn1_g_ref[...], bn1_b_ref[...], mask, inv_n)
    y = jnp.dot(y, mlp2_w_ref[...], preferred_element_type=jnp.float32) + mlp2_b_ref[...]
    dec_h = _bn_relu_masked(y, bn2_g_ref[...], bn2_b_ref[...], mask, inv_n)
    # add_noise is the identity (noise_dim=(0,)); pooling disabled (pooling_type=None).

    # ---- Decoder step 0: input side comes from the last observed rel position
    # (embedding + bias folded into dec_wx via the ones column). ----
    last_rel = obs_ref[(obs_len - 1) * bp:obs_len * bp, :]
    gates0 = (jnp.dot(last_rel, dec_wx_ref[...], preferred_element_type=jnp.float32)
              + jnp.dot(dec_h, dec_whh0_ref[...], preferred_element_type=jnp.float32))
    c = jnp.zeros((bp, dec_hp), jnp.float32)
    h, c = _lstm_from_gates(gates0, c, dec_hp)
    hs_ref[0:bp, :] = h

    # ---- Decoder steps 1..T-1: output head + re-embedding folded into an
    # effective recurrent weight -> a single matmul per step. ----
    dec_whhf = dec_whhf_ref[...]
    dec_bf = jnp.broadcast_to(dec_bf_ref[...], (bp, 4 * dec_hp))  # hoisted broadcast

    def dec_body(t, carry):
        h, c = carry
        gates = jnp.dot(h, dec_whhf, preferred_element_type=jnp.float32) + dec_bf
        h, c = _lstm_from_gates(gates, c, dec_hp)
        row = pl.multiple_of(t * bp, bp)
        hs_ref[pl.ds(row, bp), :] = h
        return (h, c)

    lax.fori_loop(1, pred_len, dec_body, (h, c), unroll=True)

    # ---- hidden_to_pos for all steps in one matmul + one lane-dense store. ----
    out_ref[...] = (jnp.dot(hs_ref[...], h2p_w_ref[...],
                            preferred_element_type=jnp.float32)
                    + h2p_b_ref[...])


# ----------------------------- weight preparation ------------------------------
def _pad_gate_cols(w, h_dim, h_pad):
    """Pad each of the 4 PyTorch gate blocks along the last dim from h_dim to h_pad."""
    lead = w.shape[0]
    w4 = w.reshape(lead, 4, h_dim)
    out = jnp.zeros((lead, 4, h_pad), w.dtype).at[:, :, :h_dim].set(w4)
    return out.reshape(lead, 4 * h_pad)


def _pad_rows(w, rows_pad):
    return jnp.zeros((rows_pad,) + w.shape[1:], w.dtype).at[:w.shape[0]].set(w)


def _pad_cols(w, cols_pad):
    return jnp.zeros(w.shape[:-1] + (cols_pad,), w.dtype).at[..., :w.shape[-1]].set(w)


def _fold_and_pad_params(p):
    f = {}
    # Encoder: fold embedding Linear into the LSTM input weights; fold the gate
    # bias into row 2 of the input weight (consumed by the ones column of obs).
    enc_wx = p["enc_emb_w"] @ p["enc_wih"]                      # (2, 4*EH)
    enc_b = p["enc_emb_b"] @ p["enc_wih"] + p["enc_b"]          # (1, 4*EH)
    enc_in = (jnp.zeros((IN_PAD, 4 * ENCODER_H_DIM), jnp.float32)
              .at[:2].set(enc_wx).at[2:3].set(enc_b))
    f["enc_wx"] = _pad_gate_cols(enc_in, ENCODER_H_DIM, ENC_H_PAD)
    f["enc_whh"] = _pad_rows(
        _pad_gate_cols(p["enc_whh"], ENCODER_H_DIM, ENC_H_PAD), ENC_H_PAD)

    # Context MLP (pad to whole-vreg widths; padded rows/cols are exact zeros).
    f["mlp1_w"] = _pad_cols(_pad_rows(p["mlp1_w"], ENC_H_PAD), MLP_PAD)
    f["mlp1_b"] = _pad_cols(p["mlp1_b"], MLP_PAD)
    f["bn1_g"] = _pad_cols(p["bn1_g"], MLP_PAD)
    f["bn1_b"] = _pad_cols(p["bn1_b"], MLP_PAD)
    f["mlp2_w"] = _pad_cols(_pad_rows(p["mlp2_w"], MLP_PAD), DEC_H_PAD)
    f["mlp2_b"] = _pad_cols(p["mlp2_b"], DEC_H_PAD)
    f["bn2_g"] = _pad_cols(p["bn2_g"], DEC_H_PAD)
    f["bn2_b"] = _pad_cols(p["bn2_b"], DEC_H_PAD)

    # Decoder: fold embedding into the input weights (step 0, bias via ones col)
    # and fold the rel_pos -> embedding chain into an effective recurrent weight
    # (steps >= 1).
    dec_wx = p["dec_emb_w"] @ p["dec_wih"]                      # (2, 4*DH)
    dec_b0 = p["dec_emb_b"] @ p["dec_wih"] + p["dec_b"]
    dec_in = (jnp.zeros((IN_PAD, 4 * DECODER_H_DIM), jnp.float32)
              .at[:2].set(dec_wx).at[2:3].set(dec_b0))
    chain = p["h2p_w"] @ p["dec_emb_w"] @ p["dec_wih"]          # (DH, 4*DH)
    whh_fused = p["dec_whh"] + chain
    b_fused = p["dec_b"] + (p["h2p_b"] @ p["dec_emb_w"] + p["dec_emb_b"]) @ p["dec_wih"]
    f["dec_wx"] = _pad_gate_cols(dec_in, DECODER_H_DIM, DEC_H_PAD)
    f["dec_whh0"] = _pad_rows(
        _pad_gate_cols(p["dec_whh"], DECODER_H_DIM, DEC_H_PAD), DEC_H_PAD)
    f["dec_whhf"] = _pad_rows(
        _pad_gate_cols(whh_fused, DECODER_H_DIM, DEC_H_PAD), DEC_H_PAD)
    f["dec_bf"] = _pad_gate_cols(b_fused, DECODER_H_DIM, DEC_H_PAD)

    # Output head padded to a lane-dense 128-wide store (wrapper slices 2 cols).
    f["h2p_w"] = _pad_cols(_pad_rows(p["h2p_w"], DEC_H_PAD), OUT_PAD)
    f["h2p_b"] = _pad_cols(p["h2p_b"], OUT_PAD)
    return f


# --------------------------------- wrapper -------------------------------------
def trajectory_generator(obs_traj, obs_traj_rel, seq_start_end, params):
    # obs_traj and seq_start_end only influence pooling / global-noise mixing,
    # both of which are disabled by the default config.
    del obs_traj, seq_start_end
    obs_len, batch, _ = obs_traj_rel.shape
    bp = BATCH_PAD

    # Padded input: cols [x, y, 1 (bias), 0...]; ones only on real batch rows.
    obs_pad = jnp.zeros((obs_len, bp, IN_PAD), jnp.float32)
    obs_pad = obs_pad.at[:, :batch, :2].set(obs_traj_rel.astype(jnp.float32))
    obs_pad = obs_pad.at[:, :batch, 2].set(1.0)
    obs2d = obs_pad.reshape(obs_len * bp, IN_PAD)

    f = _fold_and_pad_params(params)
    weights = [
        f["enc_wx"], f["enc_whh"],
        f["mlp1_w"], f["mlp1_b"], f["bn1_g"], f["bn1_b"],
        f["mlp2_w"], f["mlp2_b"], f["bn2_g"], f["bn2_b"],
        f["dec_wx"], f["dec_whh0"], f["dec_whhf"], f["dec_bf"],
        f["h2p_w"], f["h2p_b"],
    ]

    vmem_spec = pl.BlockSpec(memory_space=pltpu.MemorySpace.VMEM)
    kernel = functools.partial(trajectory_generator_kernel, n_real=batch)
    out2d = pl.pallas_call(
        kernel,
        out_shape=jax.ShapeDtypeStruct((PRED_LEN * bp, OUT_PAD), jnp.float32),
        in_specs=[vmem_spec] * (1 + len(weights)),
        out_specs=vmem_spec,
        scratch_shapes=[
            pltpu.VMEM((obs_len * bp, 4 * ENC_H_PAD), jnp.float32),   # xg
            pltpu.VMEM((PRED_LEN * bp, DEC_H_PAD), jnp.float32),      # decoder h's
        ],
    )(obs2d, *weights)

    return out2d.reshape(PRED_LEN, bp, OUT_PAD)[:, :batch, :2]


# --------------------------- pure-JAX reference --------------------------------
def reference_forward(obs_traj_rel, p):
    """Unfolded pure-JAX reference with identical semantics, for correctness."""
    obs_len, batch, _ = obs_traj_rel.shape
    h = jnp.zeros((batch, ENCODER_H_DIM), jnp.float32)
    c = jnp.zeros((batch, ENCODER_H_DIM), jnp.float32)
    for t in range(obs_len):
        x_emb = obs_traj_rel[t] @ p["enc_emb_w"] + p["enc_emb_b"]
        h, c = _lstm_step(x_emb, h, c, p["enc_wih"], p["enc_whh"], p["enc_b"])
    y = h @ p["mlp1_w"] + p["mlp1_b"]
    y = _bn_relu(y, p["bn1_g"], p["bn1_b"])
    y = y @ p["mlp2_w"] + p["mlp2_b"]
    dh = _bn_relu(y, p["bn2_g"], p["bn2_b"])
    dc = jnp.zeros((batch, DECODER_H_DIM), jnp.float32)
    dec_in = obs_traj_rel[obs_len - 1] @ p["dec_emb_w"] + p["dec_emb_b"]
    outs = []
    for _ in range(PRED_LEN):
        dh, dc = _lstm_step(dec_in, dh, dc, p["dec_wih"], p["dec_whh"], p["dec_b"])
        rel_pos = dh @ p["h2p_w"] + p["h2p_b"]
        outs.append(rel_pos)
        dec_in = rel_pos @ p["dec_emb_w"] + p["dec_emb_b"]
    return jnp.stack(outs, axis=0)


def init_params(key):
    def normal(k, shape, scale=0.1):
        return scale * jax.random.normal(k, shape, dtype=jnp.float32)

    keys = jax.random.split(key, 21)
    p = {}
    p["enc_emb_w"] = normal(keys[0], (2, EMBEDDING_DIM))
    p["enc_emb_b"] = normal(keys[1], (1, EMBEDDING_DIM))
    p["enc_wih"] = normal(keys[2], (EMBEDDING_DIM, 4 * ENCODER_H_DIM))
    p["enc_whh"] = normal(keys[3], (ENCODER_H_DIM, 4 * ENCODER_H_DIM))
    p["enc_b"] = normal(keys[4], (1, 4 * ENCODER_H_DIM))
    p["mlp1_w"] = normal(keys[5], (ENCODER_H_DIM, MLP_DIM))
    p["mlp1_b"] = normal(keys[6], (1, MLP_DIM))
    p["bn1_g"] = 1.0 + normal(keys[7], (1, MLP_DIM))
    p["bn1_b"] = normal(keys[8], (1, MLP_DIM))
    p["mlp2_w"] = normal(keys[9], (MLP_DIM, DECODER_H_DIM))
    p["mlp2_b"] = normal(keys[10], (1, DECODER_H_DIM))
    p["bn2_g"] = 1.0 + normal(keys[11], (1, DECODER_H_DIM))
    p["bn2_b"] = normal(keys[12], (1, DECODER_H_DIM))
    p["dec_emb_w"] = normal(keys[13], (2, EMBEDDING_DIM))
    p["dec_emb_b"] = normal(keys[14], (1, EMBEDDING_DIM))
    p["dec_wih"] = normal(keys[15], (EMBEDDING_DIM, 4 * DECODER_H_DIM))
    p["dec_whh"] = normal(keys[16], (DECODER_H_DIM, 4 * DECODER_H_DIM))
    p["dec_b"] = normal(keys[17], (1, 4 * DECODER_H_DIM))
    p["h2p_w"] = normal(keys[18], (DECODER_H_DIM, 2))
    p["h2p_b"] = normal(keys[19], (1, 2))
    return p


if __name__ == "__main__":
    key = jax.random.PRNGKey(0)
    k_param, k_obs, k_rel = jax.random.split(key, 3)
    params = init_params(k_param)

    obs_traj = jax.random.normal(k_obs, (OBS_LEN, BATCH, 2), dtype=jnp.float32)
    obs_traj_rel = jax.random.normal(k_rel, (OBS_LEN, BATCH, 2), dtype=jnp.float32)
    seq_start_end = jnp.array([[0, BATCH]], dtype=jnp.int32)

    pred_traj_rel = trajectory_generator(obs_traj, obs_traj_rel, seq_start_end, params)
    pred_traj_rel = jax.block_until_ready(pred_traj_rel)
    assert pred_traj_rel.shape == (PRED_LEN, BATCH, 2)

    ref = reference_forward(obs_traj_rel, params)
    max_err = float(jnp.max(jnp.abs(pred_traj_rel - ref)))
    assert max_err < 1e-3, f"mismatch vs reference, max abs err = {max_err}"

    print("KERNEL_OK")
</pallas_src>

<mosaic_0001>
module attributes {stable_mosaic.version = 11 : i64} {
  func.func @trajectory_generator_kernel(%arg0: memref<64x8xf32, #tpu.memory_space<vmem>>, %arg1: memref<8x512xf32, #tpu.memory_space<vmem>>, %arg2: memref<128x512xf32, #tpu.memory_space<vmem>>, %arg3: memref<128x128xf32, #tpu.memory_space<vmem>>, %arg4: memref<1x128xf32, #tpu.memory_space<vmem>>, %arg5: memref<1x128xf32, #tpu.memory_space<vmem>>, %arg6: memref<1x128xf32, #tpu.memory_space<vmem>>, %arg7: memref<128x128xf32, #tpu.memory_space<vmem>>, %arg8: memref<1x128xf32, #tpu.memory_space<vmem>>, %arg9: memref<1x128xf32, #tpu.memory_space<vmem>>, %arg10: memref<1x128xf32, #tpu.memory_space<vmem>>, %arg11: memref<8x512xf32, #tpu.memory_space<vmem>>, %arg12: memref<128x512xf32, #tpu.memory_space<vmem>>, %arg13: memref<128x512xf32, #tpu.memory_space<vmem>>, %arg14: memref<1x512xf32, #tpu.memory_space<vmem>>, %arg15: memref<128x128xf32, #tpu.memory_space<vmem>>, %arg16: memref<1x128xf32, #tpu.memory_space<vmem>>, %arg17: memref<64x128xf32, #tpu.memory_space<vmem>>, %arg18: memref<64x512xf32, #tpu.memory_space<vmem>>, %arg19: memref<64x128xf32, #tpu.memory_space<vmem>>) attributes {dimension_semantics = [], scalar_prefetch = 0 : i64, scratch_operands = 2 : i64, tpu.core_type = #tpu.core_type<tc>} {
    %c0 = arith.constant 0 : index
    %c0_0 = arith.constant 0 : index
    %0 = vector.load %arg0[%c0, %c0_0] : memref<64x8xf32, #tpu.memory_space<vmem>>, vector<64x8xf32>
    %c0_1 = arith.constant 0 : index
    %c0_2 = arith.constant 0 : index
    %1 = vector.load %arg1[%c0_1, %c0_2] : memref<8x512xf32, #tpu.memory_space<vmem>>, vector<8x512xf32>
    %cst = arith.constant dense<0.000000e+00> : vector<64x512xf32>
    %2 = tpu.matmul %0, %1, %cst {dimension_numbers = #tpu.dot_dimension_numbers<[1], [0], [0], [1], [0, 0, 1, 1], [], []>} : vector<64x8xf32>, vector<8x512xf32>, vector<64x512xf32> -> vector<64x512xf32>
    %c0_3 = arith.constant 0 : index
    %c0_4 = arith.constant 0 : index
    %3 = vector.load %arg18[%c0_3, %c0_4] : memref<64x512xf32, #tpu.memory_space<vmem>>, vector<64x512xf32>
    tpu.vector_store %arg18[%c0_3, %c0_4], %2 {strides = array<i32>} : memref<64x512xf32, #tpu.memory_space<vmem>>, vector<64x512xf32>,
    %c0_5 = arith.constant 0 : index
    %c0_6 = arith.constant 0 : index
    %4 = vector.load %arg2[%c0_5, %c0_6] : memref<128x512xf32, #tpu.memory_space<vmem>>, vector<128x512xf32>
    %cst_7 = arith.constant 0.000000e+00 : f32
    %5 = vector.broadcast %cst_7 : f32 to vector<8x128xf32>
    %cst_8 = arith.constant 0.000000e+00 : f32
    %6 = vector.broadcast %cst_8 : f32 to vector<8x128xf32>
    %c0_i32 = arith.constant 0 : i32
    %c8_i32 = arith.constant 8 : i32
    %7 = arith.muli %c0_i32, %c8_i32 : i32
    %8 = tpu.assume_multiple %7, 8 : i32
    %9 = arith.index_cast %8 : i32 to index
    %c0_9 = arith.constant 0 : index
    %10 = vector.load %arg18[%9, %c0_9] : memref<64x512xf32, #tpu.memory_space<vmem>>, vector<8x512xf32>
    %cst_10 = arith.constant dense<0.000000e+00> : vector<8x512xf32>
    %11 = tpu.matmul %5, %4, %cst_10 {dimension_numbers = #tpu.dot_dimension_numbers<[1], [0], [0], [1], [0, 0, 1, 1], [], []>} : vector<8x128xf32>, vector<128x512xf32>, vector<8x512xf32> -> vector<8x512xf32>
    %12 = arith.addf %10, %11 : vector<8x512xf32>
    %13 = vector.extract_strided_slice %12 {offsets = [0, 0], sizes = [8, 128], strides = [1, 1]} : vector<8x512xf32> to vector<8x128xf32>
    %14 = arith.negf %13 : vector<8x128xf32>
    %15 = math.exp %14 : vector<8x128xf32>
    %cst_11 = arith.constant 1.000000e+00 : f32
    %16 = vector.broadcast %cst_11 : f32 to vector<8x128xf32>
    %17 = arith.addf %16, %15 : vector<8x128xf32>
    %18 = arith.divf %16, %17 : vector<8x128xf32>
    %19 = vector.extract_strided_slice %12 {offsets = [0, 128], sizes = [8, 128], strides = [1, 1]} : vector<8x512xf32> to vector<8x128xf32>
    %20 = arith.negf %19 : vector<8x128xf32>
    %21 = math.exp %20 : vector<8x128xf32>
    %cst_12 = arith.constant 1.000000e+00 : f32
    %22 = vector.broadcast %cst_12 : f32 to vector<8x128xf32>
    %23 = arith.addf %22, %21 : vector<8x128xf32>
    %24 = arith.divf %22, %23 : vector<8x128xf32>
    %25 = vector.extract_strided_slice %12 {offsets = [0, 256], sizes = [8, 128], strides = [1, 1]} : vector<8x512xf32> to vector<8x128xf32>
    %26 = math.tanh %25 : vector<8x128xf32>
    %27 = vector.extract_strided_slice %12 {offsets = [0, 384], sizes = [8, 128], strides = [1, 1]} : vector<8x512xf32> to vector<8x128xf32>
    %28 = arith.negf %27 : vector<8x128xf32>
    %29 = math.exp %28 : vector<8x128xf32>
    %cst_13 = arith.constant 1.000000e+00 : f32
    %30 = vector.broadcast %cst_13 : f32 to vector<8x128xf32>
    %31 = arith.addf %30, %29 : vector<8x128xf32>
    %32 = arith.divf %30, %31 : vector<8x128xf32>
    %33 = arith.mulf %24, %6 : vector<8x128xf32>
    %34 = arith.mulf %18, %26 : vector<8x128xf32>
    %35 = arith.addf %33, %34 : vector<8x128xf32>
    %36 = math.tanh %35 : vector<8x128xf32>
    %37 = arith.mulf %32, %36 : vector<8x128xf32>
    %c1_i32 = arith.constant 1 : i32
    %c8_i32_14 = arith.constant 8 : i32
    %38 = arith.muli %c1_i32, %c8_i32_14 : i32
    %39 = tpu.assume_multiple %38, 8 : i32
    %40 = arith.index_cast %39 : i32 to index
    %c0_15 = arith.constant 0 : index
    %41 = vector.load %arg18[%40, %c0_15] : memref<64x512xf32, #tpu.memory_space<vmem>>, vector<8x512xf32>
    %cst_16 = arith.constant dense<0.000000e+00> : vector<8x512xf32>
    %42 = tpu.matmul %37, %4, %cst_16 {dimension_numbers = #tpu.dot_dimension_numbers<[1], [0], [0], [1], [0, 0, 1, 1], [], []>} : vector<8x128xf32>, vector<128x512xf32>, vector<8x512xf32> -> vector<8x512xf32>
    %43 = arith.addf %41, %42 : vector<8x512xf32>
    %44 = vector.extract_strided_slice %43 {offsets = [0, 0], sizes = [8, 128], strides = [1, 1]} : vector<8x512xf32> to vector<8x128xf32>
    %45 = arith.negf %44 : vector<8x128xf32>
    %46 = math.exp %45 : vector<8x128xf32>
    %cst_17 = arith.constant 1.000000e+00 : f32
    %47 = vector.broadcast %cst_17 : f32 to vector<8x128xf32>
    %48 = arith.addf %47, %46 : vector<8x128xf32>
    %49 = arith.divf %47, %48 : vector<8x128xf32>
    %50 = vector.extract_strided_slice %43 {offsets = [0, 128], sizes = [8, 128], strides = [1, 1]} : vector<8x512xf32> to vector<8x128xf32>
    %51 = arith.negf %50 : vector<8x128xf32>
    %52 = math.exp %51 : vector<8x128xf32>
    %cst_18 = arith.constant 1.000000e+00 : f32
    %53 = vector.broadcast %cst_18 : f32 to vector<8x128xf32>
    %54 = arith.addf %53, %52 : vector<8x128xf32>
    %55 = arith.divf %53, %54 : vector<8x128xf32>
    %56 = vector.extract_strided_slice %43 {offsets = [0, 256], sizes = [8, 128], strides = [1, 1]} : vector<8x512xf32> to vector<8x128xf32>
    %57 = math.tanh %56 : vector<8x128xf32>
    %58 = vector.extract_strided_slice %43 {offsets = [0, 384], sizes = [8, 128], strides = [1, 1]} : vector<8x512xf32> to vector<8x128xf32>
    %59 = arith.negf %58 : vector<8x128xf32>
    %60 = math.exp %59 : vector<8x128xf32>
    %cst_19 = arith.constant 1.000000e+00 : f32
    %61 = vector.broadcast %cst_19 : f32 to vector<8x128xf32>
    %62 = arith.addf %61, %60 : vector<8x128xf32>
    %63 = arith.divf %61, %62 : vector<8x128xf32>
    %64 = arith.mulf %55, %35 : vector<8x128xf32>
    %65 = arith.mulf %49, %57 : vector<8x128xf32>
    %66 = arith.addf %64, %65 : vector<8x128xf32>
    %67 = math.tanh %66 : vector<8x128xf32>
    %68 = arith.mulf %63, %67 : vector<8x128xf32>
    %c2_i32 = arith.constant 2 : i32
    %c8_i32_20 = arith.constant 8 : i32
    %69 = arith.muli %c2_i32, %c8_i32_20 : i32
    %70 = tpu.assume_multiple %69, 8 : i32
    %71 = arith.index_cast %70 : i32 to index
    %c0_21 = arith.constant 0 : index
    %72 = vector.load %arg18[%71, %c0_21] : memref<64x512xf32, #tpu.memory_space<vmem>>, vector<8x512xf32>
    %cst_22 = arith.constant dense<0.000000e+00> : vector<8x512xf32>
    %73 = tpu.matmul %68, %4, %cst_22 {dimension_numbers = #tpu.dot_dimension_numbers<[1], [0], [0], [1], [0, 0, 1, 1], [], []>} : vector<8x128xf32>, vector<128x512xf32>, vector<8x512xf32> -> vector<8x512xf32>
    %74 = arith.addf %72, %73 : vector<8x512xf32>
    %75 = vector.extract_strided_slice %74 {offsets = [0, 0], sizes = [8, 128], strides = [1, 1]} : vector<8x512xf32> to vector<8x128xf32>
    %76 = arith.negf %75 : vector<8x128xf32>
    %77 = math.exp %76 : vector<8x128xf32>
    %cst_23 = arith.constant 1.000000e+00 : f32
    %78 = vector.broadcast %cst_23 : f32 to vector<8x128xf32>
    %79 = arith.addf %78, %77 : vector<8x128xf32>
    %80 = arith.divf %78, %79 : vector<8x128xf32>
    %81 = vector.extract_strided_slice %74 {offsets = [0, 128], sizes = [8, 128], strides = [1, 1]} : vector<8x512xf32> to vector<8x128xf32>
    %82 = arith.negf %81 : vector<8x128xf32>
    %83 = math.exp %82 : vector<8x128xf32>
    %cst_24 = arith.constant 1.000000e+00 : f32
    %84 = vector.broadcast %cst_24 : f32 to vector<8x128xf32>
    %85 = arith.addf %84, %83 : vector<8x128xf32>
    %86 = arith.divf %84, %85 : vector<8x128xf32>
    %87 = vector.extract_strided_slice %74 {offsets = [0, 256], sizes = [8, 128], strides = [1, 1]} : vector<8x512xf32> to vector<8x128xf32>
    %88 = math.tanh %87 : vector<8x128xf32>
    %89 = vector.extract_strided_slice %74 {offsets = [0, 384], sizes = [8, 128], strides = [1, 1]} : vector<8x512xf32> to vector<8x128xf32>
    %90 = arith.negf %89 : vector<8x128xf32>
    %91 = math.exp %90 : vector<8x128xf32>
    %cst_25 = arith.constant 1.000000e+00 : f32
    %92 = vector.broadcast %cst_25 : f32 to vector<8x128xf32>
    %93 = arith.addf %92, %91 : vector<8x128xf32>
    %94 = arith.divf %92, %93 : vector<8x128xf32>
    %95 = arith.mulf %86, %66 : vector<8x128xf32>
    %96 = arith.mulf %80, %88 : vector<8x128xf32>
    %97 = arith.addf %95, %96 : vector<8x128xf32>
    %98 = math.tanh %97 : vector<8x128xf32>
    %99 = arith.mulf %94, %98 : vector<8x128xf32>
    %c3_i32 = arith.constant 3 : i32
    %c8_i32_26 = arith.constant 8 : i32
    %100 = arith.muli %c3_i32, %c8_i32_26 : i32
    %101 = tpu.assume_multiple %100, 8 : i32
    %102 = arith.index_cast %101 : i32 to index
    %c0_27 = arith.constant 0 : index
    %103 = vector.load %arg18[%102, %c0_27] : memref<64x512xf32, #tpu.memory_space<vmem>>, vector<8x512xf32>
    %cst_28 = arith.constant dense<0.000000e+00> : vector<8x512xf32>
    %104 = tpu.matmul %99, %4, %cst_28 {dimension_numbers = #tpu.dot_dimension_numbers<[1], [0], [0], [1], [0, 0, 1, 1], [], []>} : vector<8x128xf32>, vector<128x512xf32>, vector<8x512xf32> -> vector<8x512xf32>
    %105 = arith.addf %103, %104 : vector<8x512xf32>
    %106 = vector.extract_strided_slice %105 {offsets = [0, 0], sizes = [8, 128], strides = [1, 1]} : vector<8x512xf32> to vector<8x128xf32>
    %107 = arith.negf %106 : vector<8x128xf32>
    %108 = math.exp %107 : vector<8x128xf32>
    %cst_29 = arith.constant 1.000000e+00 : f32
    %109 = vector.broadcast %cst_29 : f32 to vector<8x128xf32>
    %110 = arith.addf %109, %108 : vector<8x128xf32>
    %111 = arith.divf %109, %110 : vector<8x128xf32>
    %112 = vector.extract_strided_slice %105 {offsets = [0, 128], sizes = [8, 128], strides = [1, 1]} : vector<8x512xf32> to vector<8x128xf32>
    %113 = arith.negf %112 : vector<8x128xf32>
    %114 = math.exp %113 : vector<8x128xf32>
    %cst_30 = arith.constant 1.000000e+00 : f32
    %115 = vector.broadcast %cst_30 : f32 to vector<8x128xf32>
    %116 = arith.addf %115, %114 : vector<8x128xf32>
    %117 = arith.divf %115, %116 : vector<8x128xf32>
    %118 = vector.extract_strided_slice %105 {offsets = [0, 256], sizes = [8, 128], strides = [1, 1]} : vector<8x512xf32> to vector<8x128xf32>
    %119 = math.tanh %118 : vector<8x128xf32>
    %120 = vector.extract_strided_slice %105 {offsets = [0, 384], sizes = [8, 128], strides = [1, 1]} : vector<8x512xf32> to vector<8x128xf32>
    %121 = arith.negf %120 : vector<8x128xf32>
    %122 = math.exp %121 : vector<8x128xf32>
    %cst_31 = arith.constant 1.000000e+00 : f32
    %123 = vector.broadcast %cst_31 : f32 to vector<8x128xf32>
    %124 = arith.addf %123, %122 : vector<8x128xf32>
    %125 = arith.divf %123, %124 : vector<8x128xf32>
    %126 = arith.mulf %117, %97 : vector<8x128xf32>
    %127 = arith.mulf %111, %119 : vector<8x128xf32>
    %128 = arith.addf %126, %127 : vector<8x128xf32>
    %129 = math.tanh %128 : vector<8x128xf32>
    %130 = arith.mulf %125, %129 : vector<8x128xf32>
    %c4_i32 = arith.constant 4 : i32
    %c8_i32_32 = arith.constant 8 : i32
    %131 = arith.muli %c4_i32, %c8_i32_32 : i32
    %132 = tpu.assume_multiple %131, 8 : i32
    %133 = arith.index_cast %132 : i32 to index
    %c0_33 = arith.constant 0 : index
    %134 = vector.load %arg18[%133, %c0_33] : memref<64x512xf32, #tpu.memory_space<vmem>>, vector<8x512xf32>
    %cst_34 = arith.constant dense<0.000000e+00> : vector<8x512xf32>
    %135 = tpu.matmul %130, %4, %cst_34 {dimension_numbers = #tpu.dot_dimension_numbers<[1], [0], [0], [1], [0, 0, 1, 1], [], []>} : vector<8x128xf32>, vector<128x512xf32>, vector<8x512xf32> -> vector<8x512xf32>
    %136 = arith.addf %134, %135 : vector<8x512xf32>
    %137 = vector.extract_strided_slice %136 {offsets = [0, 0], sizes = [8, 128], strides = [1, 1]} : vector<8x512xf32> to vector<8x128xf32>
    %138 = arith.negf %137 : vector<8x128xf32>
    %139 = math.exp %138 : vector<8x128xf32>
    %cst_35 = arith.constant 1.000000e+00 : f32
    %140 = vector.broadcast %cst_35 : f32 to vector<8x128xf32>
    %141 = arith.addf %140, %139 : vector<8x128xf32>
    %142 = arith.divf %140, %141 : vector<8x128xf32>
    %143 = vector.extract_strided_slice %136 {offsets = [0, 128], sizes = [8, 128], strides = [1, 1]} : vector<8x512xf32> to vector<8x128xf32>
    %144 = arith.negf %143 : vector<8x128xf32>
    %145 = math.exp %144 : vector<8x128xf32>
    %cst_36 = arith.constant 1.000000e+00 : f32
    %146 = vector.broadcast %cst_36 : f32 to vector<8x128xf32>
    %147 = arith.addf %146, %145 : vector<8x128xf32>
    %148 = arith.divf %146, %147 : vector<8x128xf32>
    %149 = vector.extract_strided_slice %136 {offsets = [0, 256], sizes = [8, 128], strides = [1, 1]} : vector<8x512xf32> to vector<8x128xf32>
    %150 = math.tanh %149 : vector<8x128xf32>
    %151 = vector.extract_strided_slice %136 {offsets = [0, 384], sizes = [8, 128], strides = [1, 1]} : vector<8x512xf32> to vector<8x128xf32>
    %152 = arith.negf %151 : vector<8x128xf32>
    %153 = math.exp %152 : vector<8x128xf32>
    %cst_37 = arith.constant 1.000000e+00 : f32
    %154 = vector.broadcast %cst_37 : f32 to vector<8x128xf32>
    %155 = arith.addf %154, %153 : vector<8x128xf32>
    %156 = arith.divf %154, %155 : vector<8x128xf32>
    %157 = arith.mulf %148, %128 : vector<8x128xf32>
    %158 = arith.mulf %142, %150 : vector<8x128xf32>
    %159 = arith.addf %157, %158 : vector<8x128xf32>
    %160 = math.tanh %159 : vector<8x128xf32>
    %161 = arith.mulf %156, %160 : vector<8x128xf32>
    %c5_i32 = arith.constant 5 : i32
    %c8_i32_38 = arith.constant 8 : i32
    %162 = arith.muli %c5_i32, %c8_i32_38 : i32
    %163 = tpu.assume_multiple %162, 8 : i32
    %164 = arith.index_cast %163 : i32 to index
    %c0_39 = arith.constant 0 : index
    %165 = vector.load %arg18[%164, %c0_39] : memref<64x512xf32, #tpu.memory_space<vmem>>, vector<8x512xf32>
    %cst_40 = arith.constant dense<0.000000e+00> : vector<8x512xf32>
    %166 = tpu.matmul %161, %4, %cst_40 {dimension_numbers = #tpu.dot_dimension_numbers<[1], [0], [0], [1], [0, 0, 1, 1], [], []>} : vector<8x128xf32>, vector<128x512xf32>, vector<8x512xf32> -> vector<8x512xf32>
    %167 = arith.addf %165, %166 : vector<8x512xf32>
    %168 = vector.extract_strided_slice %167 {offsets = [0, 0], sizes = [8, 128], strides = [1, 1]} : vector<8x512xf32> to vector<8x128xf32>
    %169 = arith.negf %168 : vector<8x128xf32>
    %170 = math.exp %169 : vector<8x128xf32>
    %cst_41 = arith.constant 1.000000e+00 : f32
    %171 = vector.broadcast %cst_41 : f32 to vector<8x128xf32>
    %172 = arith.addf %171, %170 : vector<8x128xf32>
    %173 = arith.divf %171, %172 : vector<8x128xf32>
    %174 = vector.extract_strided_slice %167 {offsets = [0, 128], sizes = [8, 128], strides = [1, 1]} : vector<8x512xf32> to vector<8x128xf32>
    %175 = arith.negf %174 : vector<8x128xf32>
    %176 = math.exp %175 : vector<8x128xf32>
    %cst_42 = arith.constant 1.000000e+00 : f32
    %177 = vector.broadcast %cst_42 : f32 to vector<8x128xf32>
    %178 = arith.addf %177, %176 : vector<8x128xf32>
    %179 = arith.divf %177, %178 : vector<8x128xf32>
    %180 = vector.extract_strided_slice %167 {offsets = [0, 256], sizes = [8, 128], strides = [1, 1]} : vector<8x512xf32> to vector<8x128xf32>
    %181 = math.tanh %180 : vector<8x128xf32>
    %182 = vector.extract_strided_slice %167 {offsets = [0, 384], sizes = [8, 128], strides = [1, 1]} : vector<8x512xf32> to vector<8x128xf32>
    %183 = arith.negf %182 : vector<8x128xf32>
    %184 = math.exp %183 : vector<8x128xf32>
    %cst_43 = arith.constant 1.000000e+00 : f32
    %185 = vector.broadcast %cst_43 : f32 to vector<8x128xf32>
    %186 = arith.addf %185, %184 : vector<8x128xf32>
    %187 = arith.divf %185, %186 : vector<8x128xf32>
    %188 = arith.mulf %179, %159 : vector<8x128xf32>
    %189 = arith.mulf %173, %181 : vector<8x128xf32>
    %190 = arith.addf %188, %189 : vector<8x128xf32>
    %191 = math.tanh %190 : vector<8x128xf32>
    %192 = arith.mulf %187, %191 : vector<8x128xf32>
    %c6_i32 = arith.constant 6 : i32
    %c8_i32_44 = arith.constant 8 : i32
    %193 = arith.muli %c6_i32, %c8_i32_44 : i32
    %194 = tpu.assume_multiple %193, 8 : i32
    %195 = arith.index_cast %194 : i32 to index
    %c0_45 = arith.constant 0 : index
    %196 = vector.load %arg18[%195, %c0_45] : memref<64x512xf32, #tpu.memory_space<vmem>>, vector<8x512xf32>
    %cst_46 = arith.constant dense<0.000000e+00> : vector<8x512xf32>
    %197 = tpu.matmul %192, %4, %cst_46 {dimension_numbers = #tpu.dot_dimension_numbers<[1], [0], [0], [1], [0, 0, 1, 1], [], []>} : vector<8x128xf32>, vector<128x512xf32>, vector<8x512xf32> -> vector<8x512xf32>
    %198 = arith.addf %196, %197 : vector<8x512xf32>
    %199 = vector.extract_strided_slice %198 {offsets = [0, 0], sizes = [8, 128], strides = [1, 1]} : vector<8x512xf32> to vector<8x128xf32>
    %200 = arith.negf %199 : vector<8x128xf32>
    %201 = math.exp %200 : vector<8x128xf32>
    %cst_47 = arith.constant 1.000000e+00 : f32
    %202 = vector.broadcast %cst_47 : f32 to vector<8x128xf32>
    %203 = arith.addf %202, %201 : vector<8x128xf32>
    %204 = arith.divf %202, %203 : vector<8x128xf32>
    %205 = vector.extract_strided_slice %198 {offsets = [0, 128], sizes = [8, 128], strides = [1, 1]} : vector<8x512xf32> to vector<8x128xf32>
    %206 = arith.negf %205 : vector<8x128xf32>
    %207 = math.exp %206 : vector<8x128xf32>
    %cst_48 = arith.constant 1.000000e+00 : f32
    %208 = vector.broadcast %cst_48 : f32 to vector<8x128xf32>
    %209 = arith.addf %208, %207 : vector<8x128xf32>
    %210 = arith.divf %208, %209 : vector<8x128xf32>
    %211 = vector.extract_strided_slice %198 {offsets = [0, 256], sizes = [8, 128], strides = [1, 1]} : vector<8x512xf32> to vector<8x128xf32>
    %212 = math.tanh %211 : vector<8x128xf32>
    %213 = vector.extract_strided_slice %198 {offsets = [0, 384], sizes = [8, 128], strides = [1, 1]} : vector<8x512xf32> to vector<8x128xf32>
    %214 = arith.negf %213 : vector<8x128xf32>
    %215 = math.exp %214 : vector<8x128xf32>
    %cst_49 = arith.constant 1.000000e+00 : f32
    %216 = vector.broadcast %cst_49 : f32 to vector<8x128xf32>
    %217 = arith.addf %216, %215 : vector<8x128xf32>
    %218 = arith.divf %216, %217 : vector<8x128xf32>
    %219 = arith.mulf %210, %190 : vector<8x128xf32>
    %220 = arith.mulf %204, %212 : vector<8x128xf32>
    %221 = arith.addf %219, %220 : vector<8x128xf32>
    %222 = math.tanh %221 : vector<8x128xf32>
    %223 = arith.mulf %218, %222 : vector<8x128xf32>
    %c7_i32 = arith.constant 7 : i32
    %c8_i32_50 = arith.constant 8 : i32
    %224 = arith.muli %c7_i32, %c8_i32_50 : i32
    %225 = tpu.assume_multiple %224, 8 : i32
    %226 = arith.index_cast %225 : i32 to index
    %c0_51 = arith.constant 0 : index
    %227 = vector.load %arg18[%226, %c0_51] : memref<64x512xf32, #tpu.memory_space<vmem>>, vector<8x512xf32>
    %cst_52 = arith.constant dense<0.000000e+00> : vector<8x512xf32>
    %228 = tpu.matmul %223, %4, %cst_52 {dimension_numbers = #tpu.dot_dimension_numbers<[1], [0], [0], [1], [0, 0, 1, 1], [], []>} : vector<8x128xf32>, vector<128x512xf32>, vector<8x512xf32> -> vector<8x512xf32>
    %229 = arith.addf %227, %228 : vector<8x512xf32>
    %230 = vector.extract_strided_slice %229 {offsets = [0, 0], sizes = [8, 128], strides = [1, 1]} : vector<8x512xf32> to vector<8x128xf32>
    %231 = arith.negf %230 : vector<8x128xf32>
    %232 = math.exp %231 : vector<8x128xf32>
    %cst_53 = arith.constant 1.000000e+00 : f32
    %233 = vector.broadcast %cst_53 : f32 to vector<8x128xf32>
    %234 = arith.addf %233, %232 : vector<8x128xf32>
    %235 = arith.divf %233, %234 : vector<8x128xf32>
    %236 = vector.extract_strided_slice %229 {offsets = [0, 128], sizes = [8, 128], strides = [1, 1]} : vector<8x512xf32> to vector<8x128xf32>
    %237 = arith.negf %236 : vector<8x128xf32>
    %238 = math.exp %237 : vector<8x128xf32>
    %cst_54 = arith.constant 1.000000e+00 : f32
    %239 = vector.broadcast %cst_54 : f32 to vector<8x128xf32>
    %240 = arith.addf %239, %238 : vector<8x128xf32>
    %241 = arith.divf %239, %240 : vector<8x128xf32>
    %242 = vector.extract_strided_slice %229 {offsets = [0, 256], sizes = [8, 128], strides = [1, 1]} : vector<8x512xf32> to vector<8x128xf32>
    %243 = math.tanh %242 : vector<8x128xf32>
    %244 = vector.extract_strided_slice %229 {offsets = [0, 384], sizes = [8, 128], strides = [1, 1]} : vector<8x512xf32> to vector<8x128xf32>
    %245 = arith.negf %244 : vector<8x128xf32>
    %246 = math.exp %245 : vector<8x128xf32>
    %cst_55 = arith.constant 1.000000e+00 : f32
    %247 = vector.broadcast %cst_55 : f32 to vector<8x128xf32>
    %248 = arith.addf %247, %246 : vector<8x128xf32>
    %249 = arith.divf %247, %248 : vector<8x128xf32>
    %250 = arith.mulf %241, %221 : vector<8x128xf32>
    %251 = arith.mulf %235, %243 : vector<8x128xf32>
    %252 = arith.addf %250, %251 : vector<8x128xf32>
    %253 = math.tanh %252 : vector<8x128xf32>
    %254 = arith.mulf %249, %253 : vector<8x128xf32>
    %c8_i32_56 = arith.constant 8 : i32
    %255 = tpu.iota {dimensions = array<i32: 0>} : vector<8x1xi32>
    %c4_i32_57 = arith.constant 4 : i32
    %256 = vector.broadcast %c4_i32_57 : i32 to vector<8x1xi32>
    %257 = arith.cmpi slt, %255, %256 : vector<8x1xi32>
    %258 = arith.extui %257 : vector<8x1xi1> to vector<8x1xi32>
    %259 = arith.sitofp %258 : vector<8x1xi32> to vector<8x1xf32>
    %c0_58 = arith.constant 0 : index
    %c0_59 = arith.constant 0 : index
    %260 = vector.load %arg3[%c0_58, %c0_59] : memref<128x128xf32, #tpu.memory_space<vmem>>, vector<128x128xf32>
    %cst_60 = arith.constant dense<0.000000e+00> : vector<8x128xf32>
    %261 = tpu.matmul %254, %260, %cst_60 {dimension_numbers = #tpu.dot_dimension_numbers<[1], [0], [0], [1], [0, 0, 1, 1], [], []>} : vector<8x128xf32>, vector<128x128xf32>, vector<8x128xf32> -> vector<8x128xf32>
    %c0_61 = arith.constant 0 : index
    %c0_62 = arith.constant 0 : index
    %262 = vector.load %arg4[%c0_61, %c0_62] : memref<1x128xf32, #tpu.memory_space<vmem>>, vector<1x128xf32>
    %263 = vector.broadcast %262 : vector<1x128xf32> to vector<8x128xf32>
    %264 = arith.addf %261, %263 : vector<8x128xf32>
    %c0_63 = arith.constant 0 : index
    %c0_64 = arith.constant 0 : index
    %265 = vector.load %arg5[%c0_63, %c0_64] : memref<1x128xf32, #tpu.memory_space<vmem>>, vector<1x128xf32>
    %c0_65 = arith.constant 0 : index
    %c0_66 = arith.constant 0 : index
    %266 = vector.load %arg6[%c0_65, %c0_66] : memref<1x128xf32, #tpu.memory_space<vmem>>, vector<1x128xf32>
    %267 = vector.broadcast %259 : vector<8x1xf32> to vector<8x128xf32>
    %268 = arith.mulf %264, %267 : vector<8x128xf32>
    %cst_67 = arith.constant dense<0.000000e+00> : vector<128xf32>
    %269 = vector.multi_reduction <add>, %268, %cst_67 [0] : vector<8x128xf32> to vector<128xf32>
    %270 = vector.shape_cast %269 : vector<128xf32> to vector<1x128xf32>
    %cst_68 = arith.constant 2.500000e-01 : f32
    %271 = vector.broadcast %cst_68 : f32 to vector<1x128xf32>
    %272 = arith.mulf %270, %271 : vector<1x128xf32>
    %273 = vector.broadcast %272 : vector<1x128xf32> to vector<8x128xf32>
    %274 = arith.subf %264, %273 : vector<8x128xf32>
    %275 = vector.broadcast %259 : vector<8x1xf32> to vector<8x128xf32>
    %276 = arith.mulf %274, %275 : vector<8x128xf32>
    %277 = arith.mulf %276, %276 : vector<8x128xf32>
    %cst_69 = arith.constant dense<0.000000e+00> : vector<128xf32>
    %278 = vector.multi_reduction <add>, %277, %cst_69 [0] : vector<8x128xf32> to vector<128xf32>
    %279 = vector.shape_cast %278 : vector<128xf32> to vector<1x128xf32>
    %cst_70 = arith.constant 2.500000e-01 : f32
    %280 = vector.broadcast %cst_70 : f32 to vector<1x128xf32>
    %281 = arith.mulf %279, %280 : vector<1x128xf32>
    %282 = vector.broadcast %272 : vector<1x128xf32> to vector<8x128xf32>
    %283 = arith.subf %264, %282 : vector<8x128xf32>
    %cst_71 = arith.constant 9.99999974E-6 : f32
    %284 = vector.broadcast %cst_71 : f32 to vector<1x128xf32>
    %285 = arith.addf %281, %284 : vector<1x128xf32>
    %286 = math.rsqrt %285 : vector<1x128xf32>
    %287 = vector.broadcast %286 : vector<1x128xf32> to vector<8x128xf32>
    %288 = arith.mulf %283, %287 : vector<8x128xf32>
    %289 = vector.broadcast %265 : vector<1x128xf32> to vector<8x128xf32>
    %290 = arith.mulf %288, %289 : vector<8x128xf32>
    %291 = vector.broadcast %266 : vector<1x128xf32> to vector<8x128xf32>
    %292 = arith.addf %290, %291 : vector<8x128xf32>
    %cst_72 = arith.constant 0.000000e+00 : f32
    %293 = vector.broadcast %cst_72 : f32 to vector<8x128xf32>
    %294 = arith.maximumf %292, %293 : vector<8x128xf32>
    %c0_73 = arith.constant 0 : index
    %c0_74 = arith.constant 0 : index
    %295 = vector.load %arg7[%c0_73, %c0_74] : memref<128x128xf32, #tpu.memory_space<vmem>>, vector<128x128xf32>
    %cst_75 = arith.constant dense<0.000000e+00> : vector<8x128xf32>
    %296 = tpu.matmul %294, %295, %cst_75 {dimension_numbers = #tpu.dot_dimension_numbers<[1], [0], [0], [1], [0, 0, 1, 1], [], []>} : vector<8x128xf32>, vector<128x128xf32>, vector<8x128xf32> -> vector<8x128xf32>
    %c0_76 = arith.constant 0 : index
    %c0_77 = arith.constant 0 : index
    %297 = vector.load %arg8[%c0_76, %c0_77] : memref<1x128xf32, #tpu.memory_space<vmem>>, vector<1x128xf32>
    %298 = vector.broadcast %297 : vector<1x128xf32> to vector<8x128xf32>
    %299 = arith.addf %296, %298 : vector<8x128xf32>
    %c0_78 = arith.constant 0 : index
    %c0_79 = arith.constant 0 : index
    %300 = vector.load %arg9[%c0_78, %c0_79] : memref<1x128xf32, #tpu.memory_space<vmem>>, vector<1x128xf32>
    %c0_80 = arith.constant 0 : index
    %c0_81 = arith.constant 0 : index
    %301 = vector.load %arg10[%c0_80, %c0_81] : memref<1x128xf32, #tpu.memory_space<vmem>>, vector<1x128xf32>
    %302 = vector.broadcast %259 : vector<8x1xf32> to vector<8x128xf32>
    %303 = arith.mulf %299, %302 : vector<8x128xf32>
    %cst_82 = arith.constant dense<0.000000e+00> : vector<128xf32>
    %304 = vector.multi_reduction <add>, %303, %cst_82 [0] : vector<8x128xf32> to vector<128xf32>
    %305 = vector.shape_cast %304 : vector<128xf32> to vector<1x128xf32>
    %cst_83 = arith.constant 2.500000e-01 : f32
    %306 = vector.broadcast %cst_83 : f32 to vector<1x128xf32>
    %307 = arith.mulf %305, %306 : vector<1x128xf32>
    %308 = vector.broadcast %307 : vector<1x128xf32> to vector<8x128xf32>
    %309 = arith.subf %299, %308 : vector<8x128xf32>
    %310 = vector.broadcast %259 : vector<8x1xf32> to vector<8x128xf32>
    %311 = arith.mulf %309, %310 : vector<8x128xf32>
    %312 = arith.mulf %311, %311 : vector<8x128xf32>
    %cst_84 = arith.constant dense<0.000000e+00> : vector<128xf32>
    %313 = vector.multi_reduction <add>, %312, %cst_84 [0] : vector<8x128xf32> to vector<128xf32>
    %314 = vector.shape_cast %313 : vector<128xf32> to vector<1x128xf32>
    %cst_85 = arith.constant 2.500000e-01 : f32
    %315 = vector.broadcast %cst_85 : f32 to vector<1x128xf32>
    %316 = arith.mulf %314, %315 : vector<1x128xf32>
    %317 = vector.broadcast %307 : vector<1x128xf32> to vector<8x128xf32>
    %318 = arith.subf %299, %317 : vector<8x128xf32>
    %cst_86 = arith.constant 9.99999974E-6 : f32
    %319 = vector.broadcast %cst_86 : f32 to vector<1x128xf32>
    %320 = arith.addf %316, %319 : vector<1x128xf32>
    %321 = math.rsqrt %320 : vector<1x128xf32>
    %322 = vector.broadcast %321 : vector<1x128xf32> to vector<8x128xf32>
    %323 = arith.mulf %318, %322 : vector<8x128xf32>
    %324 = vector.broadcast %300 : vector<1x128xf32> to vector<8x128xf32>
    %325 = arith.mulf %323, %324 : vector<8x128xf32>
    %326 = vector.broadcast %301 : vector<1x128xf32> to vector<8x128xf32>
    %327 = arith.addf %325, %326 : vector<8x128xf32>
    %cst_87 = arith.constant 0.000000e+00 : f32
    %328 = vector.broadcast %cst_87 : f32 to vector<8x128xf32>
    %329 = arith.maximumf %327, %328 : vector<8x128xf32>
    %c56 = arith.constant 56 : index
    %c0_88 = arith.constant 0 : index
    %330 = vector.load %arg0[%c56, %c0_88] : memref<64x8xf32, #tpu.memory_space<vmem>>, vector<8x8xf32>
    %c0_89 = arith.constant 0 : index
    %c0_90 = arith.constant 0 : index
    %331 = vector.load %arg11[%c0_89, %c0_90] : memref<8x512xf32, #tpu.memory_space<vmem>>, vector<8x512xf32>
    %cst_91 = arith.constant dense<0.000000e+00> : vector<8x512xf32>
    %332 = tpu.matmul %330, %331, %cst_91 {dimension_numbers = #tpu.dot_dimension_numbers<[1], [0], [0], [1], [0, 0, 1, 1], [], []>} : vector<8x8xf32>, vector<8x512xf32>, vector<8x512xf32> -> vector<8x512xf32>
    %c0_92 = arith.constant 0 : index
    %c0_93 = arith.constant 0 : index
    %333 = vector.load %arg12[%c0_92, %c0_93] : memref<128x512xf32, #tpu.memory_space<vmem>>, vector<128x512xf32>
    %cst_94 = arith.constant dense<0.000000e+00> : vector<8x512xf32>
    %334 = tpu.matmul %329, %333, %cst_94 {dimension_numbers = #tpu.dot_dimension_numbers<[1], [0], [0], [1], [0, 0, 1, 1], [], []>} : vector<8x128xf32>, vector<128x512xf32>, vector<8x512xf32> -> vector<8x512xf32>
    %335 = arith.addf %332, %334 : vector<8x512xf32>
    %cst_95 = arith.constant 0.000000e+00 : f32
    %336 = vector.broadcast %cst_95 : f32 to vector<8x128xf32>
    %337 = vector.extract_strided_slice %335 {offsets = [0, 0], sizes = [8, 128], strides = [1, 1]} : vector<8x512xf32> to vector<8x128xf32>
    %338 = arith.negf %337 : vector<8x128xf32>
    %339 = math.exp %338 : vector<8x128xf32>
    %cst_96 = arith.constant 1.000000e+00 : f32
    %340 = vector.broadcast %cst_96 : f32 to vector<8x128xf32>
    %341 = arith.addf %340, %339 : vector<8x128xf32>
    %342 = arith.divf %340, %341 : vector<8x128xf32>
    %343 = vector.extract_strided_slice %335 {offsets = [0, 128], sizes = [8, 128], strides = [1, 1]} : vector<8x512xf32> to vector<8x128xf32>
    %344 = arith.negf %343 : vector<8x128xf32>
    %345 = math.exp %344 : vector<8x128xf32>
    %cst_97 = arith.constant 1.000000e+00 : f32
    %346 = vector.broadcast %cst_97 : f32 to vector<8x128xf32>
    %347 = arith.addf %346, %345 : vector<8x128xf32>
    %348 = arith.divf %346, %347 : vector<8x128xf32>
    %349 = vector.extract_strided_slice %335 {offsets = [0, 256], sizes = [8, 128], strides = [1, 1]} : vector<8x512xf32> to vector<8x128xf32>
    %350 = math.tanh %349 : vector<8x128xf32>
    %351 = vector.extract_strided_slice %335 {offsets = [0, 384], sizes = [8, 128], strides = [1, 1]} : vector<8x512xf32> to vector<8x128xf32>
    %352 = arith.negf %351 : vector<8x128xf32>
    %353 = math.exp %352 : vector<8x128xf32>
    %cst_98 = arith.constant 1.000000e+00 : f32
    %354 = vector.broadcast %cst_98 : f32 to vector<8x128xf32>
    %355 = arith.addf %354, %353 : vector<8x128xf32>
    %356 = arith.divf %354, %355 : vector<8x128xf32>
    %357 = arith.mulf %348, %336 : vector<8x128xf32>
    %358 = arith.mulf %342, %350 : vector<8x128xf32>
    %359 = arith.addf %357, %358 : vector<8x128xf32>
    %360 = math.tanh %359 : vector<8x128xf32>
    %361 = arith.mulf %356, %360 : vector<8x128xf32>
    %c0_99 = arith.constant 0 : index
    %c0_100 = arith.constant 0 : index
    %362 = vector.load %arg19[%c0_99, %c0_100] : memref<64x128xf32, #tpu.memory_space<vmem>>, vector<8x128xf32>
    tpu.vector_store %arg19[%c0_99, %c0_100], %361 {strides = array<i32>} : memref<64x128xf32, #tpu.memory_space<vmem>>, vector<8x128xf32>,
    %c0_101 = arith.constant 0 : index
    %c0_102 = arith.constant 0 : index
    %363 = vector.load %arg13[%c0_101, %c0_102] : memref<128x512xf32, #tpu.memory_space<vmem>>, vector<128x512xf32>
    %c0_103 = arith.constant 0 : index
    %c0_104 = arith.constant 0 : index
    %364 = vector.load %arg14[%c0_103, %c0_104] : memref<1x512xf32, #tpu.memory_space<vmem>>, vector<1x512xf32>
    %365 = vector.shape_cast %364 : vector<1x512xf32> to vector<1x512xf32>
    %366 = vector.broadcast %365 : vector<1x512xf32> to vector<8x512xf32>
    %c1_i32_105 = arith.constant 1 : i32
    %cst_106 = arith.constant dense<0.000000e+00> : vector<8x512xf32>
    %367 = tpu.matmul %361, %363, %cst_106 {dimension_numbers = #tpu.dot_dimension_numbers<[1], [0], [0], [1], [0, 0, 1, 1], [], []>} : vector<8x128xf32>, vector<128x512xf32>, vector<8x512xf32> -> vector<8x512xf32>
    %368 = arith.addf %367, %366 : vector<8x512xf32>
    %369 = vector.extract_strided_slice %368 {offsets = [0, 0], sizes = [8, 128], strides = [1, 1]} : vector<8x512xf32> to vector<8x128xf32>
    %370 = arith.negf %369 : vector<8x128xf32>
    %371 = math.exp %370 : vector<8x128xf32>
    %cst_107 = arith.constant 1.000000e+00 : f32
    %372 = vector.broadcast %cst_107 : f32 to vector<8x128xf32>
    %373 = arith.addf %372, %371 : vector<8x128xf32>
    %374 = arith.divf %372, %373 : vector<8x128xf32>
    %375 = vector.extract_strided_slice %368 {offsets = [0, 128], sizes = [8, 128], strides = [1, 1]} : vector<8x512xf32> to vector<8x128xf32>
    %376 = arith.negf %375 : vector<8x128xf32>
    %377 = math.exp %376 : vector<8x128xf32>
    %cst_108 = arith.constant 1.000000e+00 : f32
    %378 = vector.broadcast %cst_108 : f32 to vector<8x128xf32>
    %379 = arith.addf %378, %377 : vector<8x128xf32>
    %380 = arith.divf %378, %379 : vector<8x128xf32>
    %381 = vector.extract_strided_slice %368 {offsets = [0, 256], sizes = [8, 128], strides = [1, 1]} : vector<8x512xf32> to vector<8x128xf32>
    %382 = math.tanh %381 : vector<8x128xf32>
    %383 = vector.extract_strided_slice %368 {offsets = [0, 384], sizes = [8, 128], strides = [1, 1]} : vector<8x512xf32> to vector<8x128xf32>
    %384 = arith.negf %383 : vector<8x128xf32>
    %385 = math.exp %384 : vector<8x128xf32>
    %cst_109 = arith.constant 1.000000e+00 : f32
    %386 = vector.broadcast %cst_109 : f32 to vector<8x128xf32>
    %387 = arith.addf %386, %385 : vector<8x128xf32>
    %388 = arith.divf %386, %387 : vector<8x128xf32>
    %389 = arith.mulf %380, %359 : vector<8x128xf32>
    %390 = arith.mulf %374, %382 : vector<8x128xf32>
    %391 = arith.addf %389, %390 : vector<8x128xf32>
    %392 = math.tanh %391 : vector<8x128xf32>
    %393 = arith.mulf %388, %392 : vector<8x128xf32>
    %c8_i32_110 = arith.constant 8 : i32
    %394 = arith.muli %c1_i32_105, %c8_i32_110 : i32
    %395 = tpu.assume_multiple %394, 8 : i32
    %396 = arith.index_cast %395 : i32 to index
    %c0_111 = arith.constant 0 : index
    %397 = vector.load %arg19[%396, %c0_111] : memref<64x128xf32, #tpu.memory_space<vmem>>, vector<8x128xf32>
    tpu.vector_store %arg19[%396, %c0_111], %393 {strides = array<i32>} : memref<64x128xf32, #tpu.memory_space<vmem>>, vector<8x128xf32>,
    %c2_i32_112 = arith.constant 2 : i32
    %cst_113 = arith.constant dense<0.000000e+00> : vector<8x512xf32>
    %398 = tpu.matmul %393, %363, %cst_113 {dimension_numbers = #tpu.dot_dimension_numbers<[1], [0], [0], [1], [0, 0, 1, 1], [], []>} : vector<8x128xf32>, vector<128x512xf32>, vector<8x512xf32> -> vector<8x512xf32>
    %399 = arith.addf %398, %366 : vector<8x512xf32>
    %400 = vector.extract_strided_slice %399 {offsets = [0, 0], sizes = [8, 128], strides = [1, 1]} : vector<8x512xf32> to vector<8x128xf32>
    %401 = arith.negf %400 : vector<8x128xf32>
    %402 = math.exp %401 : vector<8x128xf32>
    %cst_114 = arith.constant 1.000000e+00 : f32
    %403 = vector.broadcast %cst_114 : f32 to vector<8x128xf32>
    %404 = arith.addf %403, %402 : vector<8x128xf32>
    %405 = arith.divf %403, %404 : vector<8x128xf32>
    %406 = vector.extract_strided_slice %399 {offsets = [0, 128], sizes = [8, 128], strides = [1, 1]} : vector<8x512xf32> to vector<8x128xf32>
    %407 = arith.negf %406 : vector<8x128xf32>
    %408 = math.exp %407 : vector<8x128xf32>
    %cst_115 = arith.constant 1.000000e+00 : f32
    %409 = vector.broadcast %cst_115 : f32 to vector<8x128xf32>
    %410 = arith.addf %409, %408 : vector<8x128xf32>
    %411 = arith.divf %409, %410 : vector<8x128xf32>
    %412 = vector.extract_strided_slice %399 {offsets = [0, 256], sizes = [8, 128], strides = [1, 1]} : vector<8x512xf32> to vector<8x128xf32>
    %413 = math.tanh %412 : vector<8x128xf32>
    %414 = vector.extract_strided_slice %399 {offsets = [0, 384], sizes = [8, 128], strides = [1, 1]} : vector<8x512xf32> to vector<8x128xf32>
    %415 = arith.negf %414 : vector<8x128xf32>
    %416 = math.exp %415 : vector<8x128xf32>
    %cst_116 = arith.constant 1.000000e+00 : f32
    %417 = vector.broadcast %cst_116 : f32 to vector<8x128xf32>
    %418 = arith.addf %417, %416 : vector<8x128xf32>
    %419 = arith.divf %417, %418 : vector<8x128xf32>
    %420 = arith.mulf %411, %391 : vector<8x128xf32>
    %421 = arith.mulf %405, %413 : vector<8x128xf32>
    %422 = arith.addf %420, %421 : vector<8x128xf32>
    %423 = math.tanh %422 : vector<8x128xf32>
    %424 = arith.mulf %419, %423 : vector<8x128xf32>
    %c8_i32_117 = arith.constant 8 : i32
    %425 = arith.muli %c2_i32_112, %c8_i32_117 : i32
    %426 = tpu.assume_multiple %425, 8 : i32
    %427 = arith.index_cast %426 : i32 to index
    %c0_118 = arith.constant 0 : index
    %428 = vector.load %arg19[%427, %c0_118] : memref<64x128xf32, #tpu.memory_space<vmem>>, vector<8x128xf32>
    tpu.vector_store %arg19[%427, %c0_118], %424 {strides = array<i32>} : memref<64x128xf32, #tpu.memory_space<vmem>>, vector<8x128xf32>,
    %c3_i32_119 = arith.constant 3 : i32
    %cst_120 = arith.constant dense<0.000000e+00> : vector<8x512xf32>
    %429 = tpu.matmul %424, %363, %cst_120 {dimension_numbers = #tpu.dot_dimension_numbers<[1], [0], [0], [1], [0, 0, 1, 1], [], []>} : vector<8x128xf32>, vector<128x512xf32>, vector<8x512xf32> -> vector<8x512xf32>
    %430 = arith.addf %429, %366 : vector<8x512xf32>
    %431 = vector.extract_strided_slice %430 {offsets = [0, 0], sizes = [8, 128], strides = [1, 1]} : vector<8x512xf32> to vector<8x128xf32>
    %432 = arith.negf %431 : vector<8x128xf32>
    %433 = math.exp %432 : vector<8x128xf32>
    %cst_121 = arith.constant 1.000000e+00 : f32
    %434 = vector.broadcast %cst_121 : f32 to vector<8x128xf32>
    %435 = arith.addf %434, %433 : vector<8x128xf32>
    %436 = arith.divf %434, %435 : vector<8x128xf32>
    %437 = vector.extract_strided_slice %430 {offsets = [0, 128], sizes = [8, 128], strides = [1, 1]} : vector<8x512xf32> to vector<8x128xf32>
    %438 = arith.negf %437 : vector<8x128xf32>
    %439 = math.exp %438 : vector<8x128xf32>
    %cst_122 = arith.constant 1.000000e+00 : f32
    %440 = vector.broadcast %cst_122 : f32 to vector<8x128xf32>
    %441 = arith.addf %440, %439 : vector<8x128xf32>
    %442 = arith.divf %440, %441 : vector<8x128xf32>
    %443 = vector.extract_strided_slice %430 {offsets = [0, 256], sizes = [8, 128], strides = [1, 1]} : vector<8x512xf32> to vector<8x128xf32>
    %444 = math.tanh %443 : vector<8x128xf32>
    %445 = vector.extract_strided_slice %430 {offsets = [0, 384], sizes = [8, 128], strides = [1, 1]} : vector<8x512xf32> to vector<8x128xf32>
    %446 = arith.negf %445 : vector<8x128xf32>
    %447 = math.exp %446 : vector<8x128xf32>
    %cst_123 = arith.constant 1.000000e+00 : f32
    %448 = vector.broadcast %cst_123 : f32 to vector<8x128xf32>
    %449 = arith.addf %448, %447 : vector<8x128xf32>
    %450 = arith.divf %448, %449 : vector<8x128xf32>
    %451 = arith.mulf %442, %422 : vector<8x128xf32>
    %452 = arith.mulf %436, %444 : vector<8x128xf32>
    %453 = arith.addf %451, %452 : vector<8x128xf32>
    %454 = math.tanh %453 : vector<8x128xf32>
    %455 = arith.mulf %450, %454 : vector<8x128xf32>
    %c8_i32_124 = arith.constant 8 : i32
    %456 = arith.muli %c3_i32_119, %c8_i32_124 : i32
    %457 = tpu.assume_multiple %456, 8 : i32
    %458 = arith.index_cast %457 : i32 to index
    %c0_125 = arith.constant 0 : index
    %459 = vector.load %arg19[%458, %c0_125] : memref<64x128xf32, #tpu.memory_space<vmem>>, vector<8x128xf32>
    tpu.vector_store %arg19[%458, %c0_125], %455 {strides = array<i32>} : memref<64x128xf32, #tpu.memory_space<vmem>>, vector<8x128xf32>,
    %c4_i32_126 = arith.constant 4 : i32
    %cst_127 = arith.constant dense<0.000000e+00> : vector<8x512xf32>
    %460 = tpu.matmul %455, %363, %cst_127 {dimension_numbers = #tpu.dot_dimension_numbers<[1], [0], [0], [1], [0, 0, 1, 1], [], []>} : vector<8x128xf32>, vector<128x512xf32>, vector<8x512xf32> -> vector<8x512xf32>
    %461 = arith.addf %460, %366 : vector<8x512xf32>
    %462 = vector.extract_strided_slice %461 {offsets = [0, 0], sizes = [8, 128], strides = [1, 1]} : vector<8x512xf32> to vector<8x128xf32>
    %463 = arith.negf %462 : vector<8x128xf32>
    %464 = math.exp %463 : vector<8x128xf32>
    %cst_128 = arith.constant 1.000000e+00 : f32
    %465 = vector.broadcast %cst_128 : f32 to vector<8x128xf32>
    %466 = arith.addf %465, %464 : vector<8x128xf32>
    %467 = arith.divf %465, %466 : vector<8x128xf32>
    %468 = vector.extract_strided_slice %461 {offsets = [0, 128], sizes = [8, 128], strides = [1, 1]} : vector<8x512xf32> to vector<8x128xf32>
    %469 = arith.negf %468 : vector<8x128xf32>
    %470 = math.exp %469 : vector<8x128xf32>
    %cst_129 = arith.constant 1.000000e+00 : f32
    %471 = vector.broadcast %cst_129 : f32 to vector<8x128xf32>
    %472 = arith.addf %471, %470 : vector<8x128xf32>
    %473 = arith.divf %471, %472 : vector<8x128xf32>
    %474 = vector.extract_strided_slice %461 {offsets = [0, 256], sizes = [8, 128], strides = [1, 1]} : vector<8x512xf32> to vector<8x128xf32>
    %475 = math.tanh %474 : vector<8x128xf32>
    %476 = vector.extract_strided_slice %461 {offsets = [0, 384], sizes = [8, 128], strides = [1, 1]} : vector<8x512xf32> to vector<8x128xf32>
    %477 = arith.negf %476 : vector<8x128xf32>
    %478 = math.exp %477 : vector<8x128xf32>
    %cst_130 = arith.constant 1.000000e+00 : f32
    %479 = vector.broadcast %cst_130 : f32 to vector<8x128xf32>
    %480 = arith.addf %479, %478 : vector<8x128xf32>
    %481 = arith.divf %479, %480 : vector<8x128xf32>
    %482 = arith.mulf %473, %453 : vector<8x128xf32>
    %483 = arith.mulf %467, %475 : vector<8x128xf32>
    %484 = arith.addf %482, %483 : vector<8x128xf32>
    %485 = math.tanh %484 : vector<8x128xf32>
    %486 = arith.mulf %481, %485 : vector<8x128xf32>
    %c8_i32_131 = arith.constant 8 : i32
    %487 = arith.muli %c4_i32_126, %c8_i32_131 : i32
    %488 = tpu.assume_multiple %487, 8 : i32
    %489 = arith.index_cast %488 : i32 to index
    %c0_132 = arith.constant 0 : index
    %490 = vector.load %arg19[%489, %c0_132] : memref<64x128xf32, #tpu.memory_space<vmem>>, vector<8x128xf32>
    tpu.vector_store %arg19[%489, %c0_132], %486 {strides = array<i32>} : memref<64x128xf32, #tpu.memory_space<vmem>>, vector<8x128xf32>,
    %c5_i32_133 = arith.constant 5 : i32
    %cst_134 = arith.constant dense<0.000000e+00> : vector<8x512xf32>
    %491 = tpu.matmul %486, %363, %cst_134 {dimension_numbers = #tpu.dot_dimension_numbers<[1], [0], [0], [1], [0, 0, 1, 1], [], []>} : vector<8x128xf32>, vector<128x512xf32>, vector<8x512xf32> -> vector<8x512xf32>
    %492 = arith.addf %491, %366 : vector<8x512xf32>
    %493 = vector.extract_strided_slice %492 {offsets = [0, 0], sizes = [8, 128], strides = [1, 1]} : vector<8x512xf32> to vector<8x128xf32>
    %494 = arith.negf %493 : vector<8x128xf32>
    %495 = math.exp %494 : vector<8x128xf32>
    %cst_135 = arith.constant 1.000000e+00 : f32
    %496 = vector.broadcast %cst_135 : f32 to vector<8x128xf32>
    %497 = arith.addf %496, %495 : vector<8x128xf32>
    %498 = arith.divf %496, %497 : vector<8x128xf32>
    %499 = vector.extract_strided_slice %492 {offsets = [0, 128], sizes = [8, 128], strides = [1, 1]} : vector<8x512xf32> to vector<8x128xf32>
    %500 = arith.negf %499 : vector<8x128xf32>
    %501 = math.exp %500 : vector<8x128xf32>
    %cst_136 = arith.constant 1.000000e+00 : f32
    %502 = vector.broadcast %cst_136 : f32 to vector<8x128xf32>
    %503 = arith.addf %502, %501 : vector<8x128xf32>
    %504 = arith.divf %502, %503 : vector<8x128xf32>
    %505 = vector.extract_strided_slice %492 {offsets = [0, 256], sizes = [8, 128], strides = [1, 1]} : vector<8x512xf32> to vector<8x128xf32>
    %506 = math.tanh %505 : vector<8x128xf32>
    %507 = vector.extract_strided_slice %492 {offsets = [0, 384], sizes = [8, 128], strides = [1, 1]} : vector<8x512xf32> to vector<8x128xf32>
    %508 = arith.negf %507 : vector<8x128xf32>
    %509 = math.exp %508 : vector<8x128xf32>
    %cst_137 = arith.constant 1.000000e+00 : f32
    %510 = vector.broadcast %cst_137 : f32 to vector<8x128xf32>
    %511 = arith.addf %510, %509 : vector<8x128xf32>
    %512 = arith.divf %510, %511 : vector<8x128xf32>
    %513 = arith.mulf %504, %484 : vector<8x128xf32>
    %514 = arith.mulf %498, %506 : vector<8x128xf32>
    %515 = arith.addf %513, %514 : vector<8x128xf32>
    %516 = math.tanh %515 : vector<8x128xf32>
    %517 = arith.mulf %512, %516 : vector<8x128xf32>
    %c8_i32_138 = arith.constant 8 : i32
    %518 = arith.muli %c5_i32_133, %c8_i32_138 : i32
    %519 = tpu.assume_multiple %518, 8 : i32
    %520 = arith.index_cast %519 : i32 to index
    %c0_139 = arith.constant 0 : index
    %521 = vector.load %arg19[%520, %c0_139] : memref<64x128xf32, #tpu.memory_space<vmem>>, vector<8x128xf32>
    tpu.vector_store %arg19[%520, %c0_139], %517 {strides = array<i32>} : memref<64x128xf32, #tpu.memory_space<vmem>>, vector<8x128xf32>,
    %c6_i32_140 = arith.constant 6 : i32
    %cst_141 = arith.constant dense<0.000000e+00> : vector<8x512xf32>
    %522 = tpu.matmul %517, %363, %cst_141 {dimension_numbers = #tpu.dot_dimension_numbers<[1], [0], [0], [1], [0, 0, 1, 1], [], []>} : vector<8x128xf32>, vector<128x512xf32>, vector<8x512xf32> -> vector<8x512xf32>
    %523 = arith.addf %522, %366 : vector<8x512xf32>
    %524 = vector.extract_strided_slice %523 {offsets = [0, 0], sizes = [8, 128], strides = [1, 1]} : vector<8x512xf32> to vector<8x128xf32>
    %525 = arith.negf %524 : vector<8x128xf32>
    %526 = math.exp %525 : vector<8x128xf32>
    %cst_142 = arith.constant 1.000000e+00 : f32
    %527 = vector.broadcast %cst_142 : f32 to vector<8x128xf32>
    %528 = arith.addf %527, %526 : vector<8x128xf32>
    %529 = arith.divf %527, %528 : vector<8x128xf32>
    %530 = vector.extract_strided_slice %523 {offsets = [0, 128], sizes = [8, 128], strides = [1, 1]} : vector<8x512xf32> to vector<8x128xf32>
    %531 = arith.negf %530 : vector<8x128xf32>
    %532 = math.exp %531 : vector<8x128xf32>
    %cst_143 = arith.constant 1.000000e+00 : f32
    %533 = vector.broadcast %cst_143 : f32 to vector<8x128xf32>
    %534 = arith.addf %533, %532 : vector<8x128xf32>
    %535 = arith.divf %533, %534 : vector<8x128xf32>
    %536 = vector.extract_strided_slice %523 {offsets = [0, 256], sizes = [8, 128], strides = [1, 1]} : vector<8x512xf32> to vector<8x128xf32>
    %537 = math.tanh %536 : vector<8x128xf32>
    %538 = vector.extract_strided_slice %523 {offsets = [0, 384], sizes = [8, 128], strides = [1, 1]} : vector<8x512xf32> to vector<8x128xf32>
    %539 = arith.negf %538 : vector<8x128xf32>
    %540 = math.exp %539 : vector<8x128xf32>
    %cst_144 = arith.constant 1.000000e+00 : f32
    %541 = vector.broadcast %cst_144 : f32 to vector<8x128xf32>
    %542 = arith.addf %541, %540 : vector<8x128xf32>
    %543 = arith.divf %541, %542 : vector<8x128xf32>
    %544 = arith.mulf %535, %515 : vector<8x128xf32>
    %545 = arith.mulf %529, %537 : vector<8x128xf32>
    %546 = arith.addf %544, %545 : vector<8x128xf32>
    %547 = math.tanh %546 : vector<8x128xf32>
    %548 = arith.mulf %543, %547 : vector<8x128xf32>
    %c8_i32_145 = arith.constant 8 : i32
    %549 = arith.muli %c6_i32_140, %c8_i32_145 : i32
    %550 = tpu.assume_multiple %549, 8 : i32
    %551 = arith.index_cast %550 : i32 to index
    %c0_146 = arith.constant 0 : index
    %552 = vector.load %arg19[%551, %c0_146] : memref<64x128xf32, #tpu.memory_space<vmem>>, vector<8x128xf32>
    tpu.vector_store %arg19[%551, %c0_146], %548 {strides = array<i32>} : memref<64x128xf32, #tpu.memory_space<vmem>>, vector<8x128xf32>,
    %c7_i32_147 = arith.constant 7 : i32
    %cst_148 = arith.constant dense<0.000000e+00> : vector<8x512xf32>
    %553 = tpu.matmul %548, %363, %cst_148 {dimension_numbers = #tpu.dot_dimension_numbers<[1], [0], [0], [1], [0, 0, 1, 1], [], []>} : vector<8x128xf32>, vector<128x512xf32>, vector<8x512xf32> -> vector<8x512xf32>
    %554 = arith.addf %553, %366 : vector<8x512xf32>
    %555 = vector.extract_strided_slice %554 {offsets = [0, 0], sizes = [8, 128], strides = [1, 1]} : vector<8x512xf32> to vector<8x128xf32>
    %556 = arith.negf %555 : vector<8x128xf32>
    %557 = math.exp %556 : vector<8x128xf32>
    %cst_149 = arith.constant 1.000000e+00 : f32
    %558 = vector.broadcast %cst_149 : f32 to vector<8x128xf32>
    %559 = arith.addf %558, %557 : vector<8x128xf32>
    %560 = arith.divf %558, %559 : vector<8x128xf32>
    %561 = vector.extract_strided_slice %554 {offsets = [0, 128], sizes = [8, 128], strides = [1, 1]} : vector<8x512xf32> to vector<8x128xf32>
    %562 = arith.negf %561 : vector<8x128xf32>
    %563 = math.exp %562 : vector<8x128xf32>
    %cst_150 = arith.constant 1.000000e+00 : f32
    %564 = vector.broadcast %cst_150 : f32 to vector<8x128xf32>
    %565 = arith.addf %564, %563 : vector<8x128xf32>
    %566 = arith.divf %564, %565 : vector<8x128xf32>
    %567 = vector.extract_strided_slice %554 {offsets = [0, 256], sizes = [8, 128], strides = [1, 1]} : vector<8x512xf32> to vector<8x128xf32>
    %568 = math.tanh %567 : vector<8x128xf32>
    %569 = vector.extract_strided_slice %554 {offsets = [0, 384], sizes = [8, 128], strides = [1, 1]} : vector<8x512xf32> to vector<8x128xf32>
    %570 = arith.negf %569 : vector<8x128xf32>
    %571 = math.exp %570 : vector<8x128xf32>
    %cst_151 = arith.constant 1.000000e+00 : f32
    %572 = vector.broadcast %cst_151 : f32 to vector<8x128xf32>
    %573 = arith.addf %572, %571 : vector<8x128xf32>
    %574 = arith.divf %572, %573 : vector<8x128xf32>
    %575 = arith.mulf %566, %546 : vector<8x128xf32>
    %576 = arith.mulf %560, %568 : vector<8x128xf32>
    %577 = arith.addf %575, %576 : vector<8x128xf32>
    %578 = math.tanh %577 : vector<8x128xf32>
    %579 = arith.mulf %574, %578 : vector<8x128xf32>
    %c8_i32_152 = arith.constant 8 : i32
    %580 = arith.muli %c7_i32_147, %c8_i32_152 : i32
    %581 = tpu.assume_multiple %580, 8 : i32
    %582 = arith.index_cast %581 : i32 to index
    %c0_153 = arith.constant 0 : index
    %583 = vector.load %arg19[%582, %c0_153] : memref<64x128xf32, #tpu.memory_space<vmem>>, vector<8x128xf32>
    tpu.vector_store %arg19[%582, %c0_153], %579 {strides = array<i32>} : memref<64x128xf32, #tpu.memory_space<vmem>>, vector<8x128xf32>,
    %c7_i32_154 = arith.constant 7 : i32
    %c0_155 = arith.constant 0 : index
    %c0_156 = arith.constant 0 : index
    %584 = vector.load %arg19[%c0_155, %c0_156] : memref<64x128xf32, #tpu.memory_space<vmem>>, vector<64x128xf32>
    %c0_157 = arith.constant 0 : index
    %c0_158 = arith.constant 0 : index
    %585 = vector.load %arg15[%c0_157, %c0_158] : memref<128x128xf32, #tpu.memory_space<vmem>>, vector<128x128xf32>
    %cst_159 = arith.constant dense<0.000000e+00> : vector<64x128xf32>
    %586 = tpu.matmul %584, %585, %cst_159 {dimension_numbers = #tpu.dot_dimension_numbers<[1], [0], [0], [1], [0, 0, 1, 1], [], []>} : vector<64x128xf32>, vector<128x128xf32>, vector<64x128xf32> -> vector<64x128xf32>
    %c0_160 = arith.constant 0 : index
    %c0_161 = arith.constant 0 : index
    %587 = vector.load %arg16[%c0_160, %c0_161] : memref<1x128xf32, #tpu.memory_space<vmem>>, vector<1x128xf32>
    %588 = vector.broadcast %587 : vector<1x128xf32> to vector<64x128xf32>
    %589 = arith.addf %586, %588 : vector<64x128xf32>
    %c0_162 = arith.constant 0 : index
    %c0_163 = arith.constant 0 : index
    %590 = vector.load %arg17[%c0_162, %c0_163] : memref<64x128xf32, #tpu.memory_space<vmem>>, vector<64x128xf32>
    tpu.vector_store %arg17[%c0_162, %c0_163], %589 {strides = array<i32>} : memref<64x128xf32, #tpu.memory_space<vmem>>, vector<64x128xf32>,
    return
  }
}

</mosaic_0001>

<bundles_post_ra>
// kernel: tpu_custom_call.1
= control target key start
LH: loop header
LB: loop body
LE: loop exit
PB: predicated region body
PF: predicated region fallthrough
CT: control target
= control target key end

     0   :  { %s6830_s0 = inlined_call_operand.vmem [shape: f32[64,8], index: 0, kind: input, shape index: {}]   ;;  %s6831_s1 = inlined_call_operand.vmem [shape: f32[8,512], index: 1, kind: input, shape index: {}]   ;;  %s6832_s2 = inlined_call_operand.hbm [shape: f32[128,512], index: 2, kind: input, shape index: {}]   ;;  %s6833_s3 = inlined_call_operand.hbm [shape: f32[128,128], index: 3, kind: input, shape index: {}]   ;;  %s6834_s4 = inlined_call_operand.vmem [shape: f32[1,128], index: 4, kind: input, shape index: {}]   ;;  %s6835_s5 = inlined_call_operand.vmem [shape: f32[1,128], index: 5, kind: input, shape index: {}]   ;;  %s6836_s6 = inlined_call_operand.vmem [shape: f32[1,128], index: 6, kind: input, shape index: {}]   ;;  %s6837_s7 = inlined_call_operand.hbm [shape: f32[128,128], index: 7, kind: input, shape index: {}]   ;;  %s6838_s8 = inlined_call_operand.vmem [shape: f32[1,128], index: 8, kind: input, shape index: {}]   ;;  %s6839_s9 = inlined_call_operand.vmem [shape: f32[1,128], index: 9, kind: input, shape index: {}]   ;;  %s6840_s10 = inlined_call_operand.vmem [shape: f32[1,128], index: 10, kind: input, shape index: {}]   ;;  %s6841_s11 = inlined_call_operand.vmem [shape: f32[8,512], index: 11, kind: input, shape index: {}]   ;;  %s6842_s12 = inlined_call_operand.hbm [shape: f32[128,512], index: 12, kind: input, shape index: {}]   ;;  %s6843_s13 = inlined_call_operand.hbm [shape: f32[128,512], index: 13, kind: input, shape index: {}]   ;;  %s6844_s14 = inlined_call_operand.vmem [shape: f32[1,512], index: 14, kind: input, shape index: {}]   ;;  %s6845_s15 = inlined_call_operand.hbm [shape: f32[128,128], index: 15, kind: input, shape index: {}]   ;;  %s6846_s16 = inlined_call_operand.vmem [shape: f32[1,128], index: 16, kind: input, shape index: {}]   ;;  %s6847_s17 = inlined_call_operand.hbm [shape: f32[64,128], index: 17, kind: output, shape index: {}]  }
   0x1   :  { %6994 = sst [smem:[#allocation67_spill]] %s6830_s0 }
   0x2   :  { %6995 = sst [smem:[#allocation68_spill]] %s6831_s1 }
   0x3   :  { %22 = vsyncpa [#allocation5], 0 }
   0x4   :  { %23 = vsyncpa [#allocation8], 0 }
   0x5   :  { %24 = vsyncpa [#allocation11], 0 }
   0x6   :  { %25 = vsyncpa [#allocation14], 0 }
   0x7   :  { %26 = vsyncpa [#allocation6], 0  ;;  %s4792_s24 = smov [#allocation7]  }
   0x8   :  { %s48_s25 = sshll.u32 %s4792_s24, 4  ;;  %s49_s25 = int_to_ptr.vmem [resolvable:$true] %s48_s25 }
   0x9   :  { %s4650_s26 = scalar_lea.vmem %s49_s25, 2048  ;;  %p4655_p1 = scmp.lt.s32.totalorder %s49_s25, %s49_s25 }
   0xa   :  { %p4651_p0 = scmp.ne.s32.totalorder %s49_s25, %s4650_s26  ;;  %p4656_p2 = scmp.lt.s32.totalorder %s4650_s26, %s4650_s26 }
   0xc   :  { %p4657_p3 = por %p4656_p2, %p4655_p1 }
   0xe   :  { %p4658_p4 = pnand %p4657_p3, %p4651_p0 }
  0x10   :  { %4661 = shalt.err (!%p4658_p4)
}
  0x11   :  { %s4793_s27 = smov 128   ;;  %s4794_s28 = smov 8  }
  0x12   :  { %54 = dma.hbm_to_vmem [thread:$0]  %s6833_s3, 2048, %s49_s25, [#allocation8], %s4793_s27, %s4793_s27, %s4794_s28  }
  0x13   :  { %s4795_s30 = smov [#allocation10]   ;;  %s4796_s19 = smov [#allocation4]  }
  0x14   :  { %s86_s18 = sshll.u32 %s4795_s30, 4  ;;  %s36_s1 = sshll.u32 %s4796_s19, 4  ;;  %s87_s18 = int_to_ptr.vmem [resolvable:$true] %s86_s18  ;;  %s37_s1 = int_to_ptr.vmem [resolvable:$true] %s36_s1 }
  0x15   :  { %s4670_s20 = scalar_lea.vmem %s87_s18, 8192  ;;  %p4675_p6 = scmp.lt.s32.totalorder %s87_s18, %s87_s18 }
  0x16   :  { %p4671_p5 = scmp.ne.s32.totalorder %s87_s18, %s4670_s20  ;;  %p4676_p7 = scmp.lt.s32.totalorder %s4670_s20, %s4670_s20 }
  0x18   :  { %p4677_p8 = por %p4676_p7, %p4675_p6 }
  0x1a   :  { %p4678_p9 = pnand %p4677_p8, %p4671_p5 }
  0x1c   :  { %4681 = shalt.err (!%p4678_p9)
}
  0x1d   :  { %s4797_s21 = smov 512   ;;  %s4798_s22 = smov 32  }
  0x1e   :  { %92 = dma.hbm_to_vmem [thread:$0]  %s6842_s12, 8192, %s87_s18, [#allocation11], %s4797_s21, %s4797_s21, %s4798_s22  }
  0x1f   :  { %s4690_s3 = scalar_lea.vmem %s37_s1, 8192  ;;  %p4695_p11 = scmp.lt.s32.totalorder %s37_s1, %s37_s1 }
  0x20   :  { %p4691_p10 = scmp.ne.s32.totalorder %s37_s1, %s4690_s3  ;;  %p4696_p12 = scmp.lt.s32.totalorder %s4690_s3, %s4690_s3 }
  0x22   :  { %p4697_p13 = por %p4696_p12, %p4695_p11 }
  0x24   :  { %p4698_p0 = pnand %p4697_p13, %p4691_p10 }
  0x26   :  { %4701 = shalt.err (!%p4698_p0)
}
  0x27   :  { %42 = dma.hbm_to_vmem [thread:$0]  %s6832_s2, 8192, %s37_s1, [#allocation5], %s4797_s21, %s4797_s21, %s4798_s22  }
  0x28   :  { %s4799_s29 = smov [#allocation9]   ;;  %s4800_s30 = smov [#allocation12]  }
  0x29   :  { %s66_s0 = sshll.u32 %s4799_s29, 4  ;;  %s98_s12 = sshll.u32 %s4800_s30, 4  ;;  %s67_s0 = int_to_ptr.vmem [resolvable:$true] %s66_s0  ;;  %s99_s12 = int_to_ptr.vmem [resolvable:$true] %s98_s12 }
  0x2a   :  { %s4710_s18 = scalar_lea.vmem %s67_s0, 2048  ;;  %p4715_p2 = scmp.lt.s32.totalorder %s67_s0, %s67_s0 }
  0x2b   :  { %p4711_p1 = scmp.ne.s32.totalorder %s67_s0, %s4710_s18  ;;  %p4716_p3 = scmp.lt.s32.totalorder %s4710_s18, %s4710_s18 }
  0x2d   :  { %p4717_p4 = por %p4716_p3, %p4715_p2 }
  0x2f   :  { %p4718_p5 = pnand %p4717_p4, %p4711_p1 }
  0x31   :  { %4721 = shalt.err (!%p4718_p5)
}
  0x32   :  { %72 = dma.hbm_to_vmem [thread:$0]  %s6837_s7, 2048, %s67_s0, [#allocation8], %s4793_s27, %s4793_s27, %s4794_s28  }
  0x33   :  { %s4730_s2 = scalar_lea.vmem %s99_s12, 8192  ;;  %p4735_p7 = scmp.lt.s32.totalorder %s99_s12, %s99_s12 }
  0x34   :  { %p4731_p6 = scmp.ne.s32.totalorder %s99_s12, %s4730_s2  ;;  %p4736_p8 = scmp.lt.s32.totalorder %s4730_s2, %s4730_s2 }
  0x36   :  { %p4737_p9 = por %p4736_p8, %p4735_p7 }
  0x38   :  { %p4738_p10 = pnand %p4737_p9, %p4731_p6 }
  0x3a   :  { %4741 = shalt.err (!%p4738_p10)
}
  0x3b   :  { %104 = dma.hbm_to_vmem [thread:$0]  %s6843_s13, 8192, %s99_s12, [#allocation11], %s4797_s21, %s4797_s21, %s4798_s22  }
  0x3c   :  { %s4801_s24 = smov [#allocation13]  }
  0x3d   :  { %s112_s3 = sshll.u32 %s4801_s24, 4  ;;  %s113_s3 = int_to_ptr.vmem [resolvable:$true] %s112_s3 }
  0x3e   :  { %s4750_s25 = scalar_lea.vmem %s113_s3, 2048  ;;  %p4755_p12 = scmp.lt.s32.totalorder %s113_s3, %s113_s3 }
  0x3f   :  { %p4751_p11 = scmp.ne.s32.totalorder %s113_s3, %s4750_s25  ;;  %p4756_p13 = scmp.lt.s32.totalorder %s4750_s25, %s4750_s25 }
  0x41   :  { %p4757_p0 = por %p4756_p13, %p4755_p12 }
  0x43   :  { %p4758_p1 = pnand %p4757_p0, %p4751_p11 }
  0x45   :  { %4761 = shalt.err (!%p4758_p1)
}
  0x46   :  { %118 = dma.hbm_to_vmem [thread:$0]  %s6845_s15, 2048, %s113_s3, [#allocation14], %s4793_s27, %s4793_s27, %s4794_s28  }
  0x47   :  { %4782 = dma.done.wait [#allocation5], 8192  }
  0x48   :  { %4783 = vsyncadd [#allocation5], 4294959104 }
  0x49   :  { %4784 = dma.done.wait [#allocation8], 4096  }
  0x4a   :  { %4785 = vsyncadd [#allocation8], 4294963200 }
  0x4b   :  { %4786 = dma.done.wait [#allocation11], 16384  }
  0x4c   :  { %4787 = vsyncadd [#allocation11], 4294950912 }
  0x4d   :  { %4788 = dma.done.wait [#allocation14], 2048  }
  0x4e   :  { %4789 = vsyncadd [#allocation14], 4294965248  ;;  %v6850_v0 = vmov 0.0   ;;  %s6996_s22 = sld [smem:[#allocation68_spill]]  ;;  %vm151_vm0 = vcmask 64512   ;;  %v4942_v4 = vld [vmem:[#allocation4 + $0x1e8] sm:$0xff] }
  0x4f   :  { %353 = vmatprep.mubr.f32.mxu1 %v6850_v0  ;;  %240 = vmatprep.mubr.f32.mxu0 %v6850_v0  ;;  %s6997_s12 = sld [smem:[#allocation67_spill]]  ;;  %6998 = vst [vmem:[#allocation21_spill] sm:$0xff] %v4942_v4  ;;  %v4944_v5 = vld [vmem:[#allocation4 + $0x1e0] sm:$0xff]  ;;  %v4946_v6 = vld [vmem:[#allocation4 + $0x1c8] sm:$0xff]  ;;  %v5108_v45 = vld [vmem:[#allocation4 + $0x1f8] sm:$0xff]  ;;  %vm4803_vm1 = vmmov 0  }
  0x50   :  { %v4950_v7 = vld [vmem:[#allocation4 + $0x1c0] sm:$0xff]  ;;  %v4959_v9 = vld [vmem:[#allocation4 + $0x1a8] sm:$0xff]  ;;  %7011 = vst [vmem:[#allocation34_spill] sm:$0xff] %v5108_v45  ;;  %v5111_v46 = vld [vmem:[#allocation4 + $0x1f0] sm:$0xff] }
  0x51   :  { %v4962_v10 = vld [vmem:[#allocation4 + $0x1a0] sm:$0xff]  ;;  %v4965_v11 = vld [vmem:[#allocation4 + $0x188] sm:$0xff]  ;;  %v5115_v47 = vld [vmem:[#allocation4 + $0x1d8] sm:$0xff] }
  0x52   :  { %v4970_v12 = vld [vmem:[#allocation4 + $0x180] sm:$0xff]  ;;  %v4979_v14 = vld [vmem:[#allocation4 + $0x168] sm:$0xff]  ;;  %v5120_v48 = vld [vmem:[#allocation4 + $0x1d0] sm:$0xff] }
  0x53   :  { %v4982_v15 = vld [vmem:[#allocation4 + $0x160] sm:$0xff]  ;;  %v4985_v16 = vld [vmem:[#allocation4 + $0x148] sm:$0xff]  ;;  %v5123_v49 = vld [vmem:[#allocation4 + $0x1b8] sm:$0xff] }
  0x54   :  { %v150_v1 = vld [vmem:[%s6996_s22 + $0x18] sm:$0xff]  ;;  %v149_v2 = vld [vmem:[%s6996_s22 + $0x10] sm:$0xff]  ;;  %v4990_v17 = vld [vmem:[#allocation4 + $0x140] sm:$0xff] }
  0x55   :  { %v139_v3 = vld [vmem:[%s6997_s12] sm:$0xff]  ;;  %319 = vmatprep.subr.mxu1 %v150_v1  ;;  %v4957_v8 = vld [vmem:[%s6997_s12 + $0x8] sm:$0xff]  ;;  %v4977_v13 = vld [vmem:[%s6997_s12 + $0x10] sm:$0xff] }
  0x56   :  { %320 = vmatpush1.msra.mxu1 %v149_v2  ;;  %v4997_v18 = vld [vmem:[%s6997_s12 + $0x18] sm:$0xff]  ;;  %v4999_v19 = vld [vmem:[#allocation4 + $0x128] sm:$0xff]  ;;  %v5002_v20 = vld [vmem:[#allocation4 + $0x120] sm:$0xff] }
  0x57   :  { %4003 = vmatmul.mubr.msk.f32.vlgmr.msra.gmra.mxu1 %vm151_vm0, %v139_v3  ;;  %505 = vmatprep.subr.mxu1 %v4942_v4  ;;  %v148_v21 = vld [vmem:[%s6996_s22 + $0x8] sm:$0xff]  ;;  %v147_v23 = vld [vmem:[%s6996_s22] sm:$0xff]  ;;  %v5066_v35 = vld [vmem:[%s6997_s12 + $0x30] sm:$0xff] }
  0x58   :  { %506 = vmatpush1.msra.mxu1 %v4944_v5  ;;  %359 = vmatprep.mubr.f32.mxu1 %v6850_v0  ;;  %v5008_v22 = vld [vmem:[#allocation4 + $0x108] sm:$0xff]  ;;  %v5016_v24 = vld [vmem:[#allocation4 + $0x100] sm:$0xff]  ;;  %v5088_v40 = vld [vmem:[%s6997_s12 + $0x38] sm:$0xff] }
  0x59   :  { %507 = vmatprep.subr.mxu1 %v4946_v6  ;;  %206 = vmatprep.subr.mxu0 %v148_v21  ;;  %v5023_v25 = vld [vmem:[%s6997_s12 + $0x20] sm:$0xff]  ;;  %v5025_v26 = vld [vmem:[#allocation4 + $0xe8] sm:$0xff]  ;;  %v5127_v50 = vld [vmem:[#allocation4 + $0x1b0] sm:$0xff] }
  0x5a   :  { %508 = vmatpush1.msra.mxu1 %v4950_v7  ;;  %v5028_v27 = vld [vmem:[#allocation4 + $0xe0] sm:$0xff]  ;;  %207 = vmatpush1.msra.mxu0 %v147_v23  ;;  %v5031_v28 = vld [vmem:[#allocation4 + $0xc8] sm:$0xff]  ;;  %v5131_v51 = vld [vmem:[#allocation4 + $0x198] sm:$0xff] }
  0x5b   :  { %4004 = vmatmul.mubr.msk.f32.gmra.mxu1 %vm151_vm0, %v4957_v8  ;;  %509 = vmatprep.subr.mxu1 %v4959_v9  ;;  %6999 = vst [vmem:[#allocation22_spill] sm:$0xff] %v5031_v28  ;;  %v5037_v29 = vld [vmem:[#allocation4 + $0xc0] sm:$0xff]  ;;  %v5044_v30 = vld [vmem:[%s6997_s12 + $0x28] sm:$0xff]  ;;  %v5135_v52 = vld [vmem:[#allocation4 + $0x190] sm:$0xff] }
  0x5c   :  { %510 = vmatpush1.msra.mxu1 %v4962_v10  ;;  %365 = vmatprep.mubr.f32.mxu1 %v6850_v0  ;;  %7000 = vst [vmem:[#allocation23_spill] sm:$0xff] %v5037_v29  ;;  %v5046_v31 = vld [vmem:[#allocation4 + $0xa8] sm:$0xff]  ;;  %v5049_v32 = vld [vmem:[#allocation4 + $0xa0] sm:$0xff]  ;;  %v5140_v53 = vld [vmem:[#allocation4 + $0x178] sm:$0xff] }
  0x5d   :  { %511 = vmatprep.subr.mxu1 %v4965_v11  ;;  %3995 = vmatmul.mubr.msk.f32.vlgmr.msra.gmra.mxu0 %vm151_vm0, %v139_v3  ;;  %7001 = vst [vmem:[#allocation24_spill] sm:$0xff] %v5046_v31  ;;  %v5053_v33 = vld [vmem:[#allocation4 + $0x88] sm:$0xff]  ;;  %v5059_v34 = vld [vmem:[#allocation4 + $0x80] sm:$0xff]  ;;  %v5144_v54 = vld [vmem:[#allocation4 + $0x170] sm:$0xff] }
  0x5e   :  { %512 = vmatpush1.msra.mxu1 %v4970_v12  ;;  %682 = vmatprep.subr.mxu0 %v4942_v4  ;;  %7002 = vst [vmem:[#allocation25_spill] sm:$0xff] %v5059_v34  ;;  %v5068_v36 = vld [vmem:[#allocation4 + $0x68] sm:$0xff]  ;;  %v5071_v37 = vld [vmem:[#allocation4 + $0x60] sm:$0xff]  ;;  %v5148_v55 = vld [vmem:[#allocation4 + $0x158] sm:$0xff] }
  0x5f   :  { %4005 = vmatmul.mubr.msk.f32.gmra.mxu1 %vm151_vm0, %v4977_v13  ;;  %513 = vmatprep.subr.mxu1 %v4979_v14  ;;  %7003 = vst [vmem:[#allocation26_spill] sm:$0xff] %v5068_v36  ;;  %7004 = vst [vmem:[#allocation27_spill] sm:$0xff] %v5071_v37  ;;  %v5075_v38 = vld [vmem:[#allocation4 + $0x48] sm:$0xff]  ;;  %v5081_v39 = vld [vmem:[#allocation4 + $0x40] sm:$0xff] }
  0x60   :  { %514 = vmatpush1.msra.mxu1 %v4982_v15  ;;  %371 = vmatprep.mubr.f32.mxu1 %v6850_v0  ;;  %7005 = vst [vmem:[#allocation28_spill] sm:$0xff] %v5075_v38  ;;  %7006 = vst [vmem:[#allocation29_spill] sm:$0xff] %v5081_v39  ;;  %v5090_v41 = vld [vmem:[#allocation4 + $0x28] sm:$0xff]  ;;  %v5093_v42 = vld [vmem:[#allocation4 + $0x20] sm:$0xff] }
  0x61   :  { %515 = vmatprep.subr.mxu1 %v4985_v16  ;;  %683 = vmatpush1.msra.mxu0 %v4944_v5  ;;  %7007 = vst [vmem:[#allocation30_spill] sm:$0xff] %v5090_v41  ;;  %7008 = vst [vmem:[#allocation31_spill] sm:$0xff] %v5093_v42  ;;  %v5098_v43 = vld [vmem:[#allocation4 + $0x8] sm:$0xff]  ;;  %v5104_v44 = vld [vmem:[#allocation4] sm:$0xff] }
  0x62   :  { %516 = vmatpush1.msra.mxu1 %v4990_v17  ;;  %246 = vmatprep.mubr.f32.mxu0 %v6850_v0  ;;  %7009 = vst [vmem:[#allocation32_spill] sm:$0xff] %v5098_v43  ;;  %7010 = vst [vmem:[#allocation33_spill] sm:$0xff] %v5104_v44  ;;  %v5152_v56 = vld [vmem:[#allocation4 + $0x150] sm:$0xff]  ;;  %v5156_v57 = vld [vmem:[#allocation4 + $0x138] sm:$0xff] }
  0x63   :  { %4006 = vmatmul.mubr.msk.f32.gmra.mxu1 %vm151_vm0, %v4997_v18  ;;  %517 = vmatprep.subr.mxu1 %v4999_v19  ;;  %v5160_v58 = vld [vmem:[#allocation4 + $0x130] sm:$0xff]  ;;  %v5165_v59 = vld [vmem:[#allocation4 + $0x118] sm:$0xff] }
  0x64   :  { %518 = vmatpush1.msra.mxu1 %v5002_v20  ;;  %377 = vmatprep.mubr.f32.mxu1 %v6850_v0  ;;  %v5169_v60 = vld [vmem:[#allocation4 + $0x110] sm:$0xff]  ;;  %v5173_v61 = vld [vmem:[#allocation4 + $0xf8] sm:$0xff] }
  0x65   :  { %519 = vmatprep.subr.mxu1 %v5008_v22  ;;  %684 = vmatprep.subr.mxu0 %v4946_v6  ;;  %v5177_v62 = vld [vmem:[#allocation4 + $0xf0] sm:$0xff]  ;;  %v5181_v63 = vld [vmem:[#allocation4 + $0xd8] sm:$0xff] }
  0x66   :  { %520 = vmatpush1.msra.mxu1 %v5016_v24  ;;  %3996 = vmatmul.mubr.msk.f32.gmra.mxu0 %vm151_vm0, %v4957_v8  ;;  %v5185_v1 = vld [vmem:[#allocation4 + $0xd0] sm:$0xff]  ;;  %v5190_v2 = vld [vmem:[#allocation4 + $0xb8] sm:$0xff] }
  0x67   :  { %4007 = vmatmul.mubr.msk.f32.gmra.mxu1 %vm151_vm0, %v5023_v25  ;;  %521 = vmatprep.subr.mxu1 %v5025_v26  ;;  %v5194_v3 = vld [vmem:[#allocation4 + $0xb0] sm:$0xff]  ;;  %v5198_v8 = vld [vmem:[#allocation4 + $0x98] sm:$0xff] }
  0x68   :  { %522 = vmatpush1.msra.mxu1 %v5028_v27  ;;  %383 = vmatprep.mubr.f32.mxu1 %v6850_v0  ;;  %v5210_v21 = vld [vmem:[#allocation4 + $0x70] sm:$0xff]  ;;  %v5215_v23 = vld [vmem:[#allocation4 + $0x58] sm:$0xff] }
  0x69   :  { %523 = vmatprep.subr.mxu1 %v5031_v28  ;;  %685 = vmatpush1.msra.mxu0 %v4950_v7  ;;  %7014 = vst [vmem:[#allocation37_spill] sm:$0xff] %v5210_v21  ;;  %7015 = vst [vmem:[#allocation38_spill] sm:$0xff] %v5215_v23 }
  0x6a   :  { %524 = vmatpush1.msra.mxu1 %v5037_v29  ;;  %686 = vmatprep.subr.mxu0 %v4959_v9 }
  0x6b   :  { %4008 = vmatmul.mubr.msk.f32.gmra.mxu1 %vm151_vm0, %v5044_v30  ;;  %525 = vmatprep.subr.mxu1 %v5046_v31 }
  0x6c   :  { %526 = vmatpush1.msra.mxu1 %v5049_v32  ;;  %389 = vmatprep.mubr.f32.mxu1 %v6850_v0 }
  0x6d   :  { %527 = vmatprep.subr.mxu1 %v5053_v33  ;;  %687 = vmatpush1.msra.mxu0 %v4962_v10 }
  0x6e   :  { %528 = vmatpush1.msra.mxu1 %v5059_v34  ;;  %252 = vmatprep.mubr.f32.mxu0 %v6850_v0 }
  0x6f   :  { %4009 = vmatmul.mubr.msk.f32.gmra.mxu1 %vm151_vm0, %v5066_v35  ;;  %529 = vmatprep.subr.mxu1 %v5068_v36 }
  0x70   :  { %530 = vmatpush1.msra.mxu1 %v5071_v37  ;;  %395 = vmatprep.mubr.f32.mxu1 %v6850_v0 }
  0x71   :  { %531 = vmatprep.subr.mxu1 %v5075_v38  ;;  %688 = vmatprep.subr.mxu0 %v4965_v11 }
  0x72   :  { %532 = vmatpush1.msra.mxu1 %v5081_v39  ;;  %3997 = vmatmul.mubr.msk.f32.gmra.mxu0 %vm151_vm0, %v4977_v13  ;;  %v5202_v13 = vld [vmem:[#allocation4 + $0x90] sm:$0xff] }
  0x73   :  { %4010 = vmatmul.mubr.msk.f32.gmra.mxu1 %vm151_vm0, %v5088_v40  ;;  %533 = vmatprep.subr.mxu1 %v5090_v41  ;;  %7012 = vst [vmem:[#allocation35_spill] sm:$0xff] %v5202_v13 }
  0x74   :  { %534 = vmatpush1.msra.mxu1 %v5093_v42  ;;  %569 = vmatprep.mubr.f32.mxu1 %v6850_v0 }
  0x75   :  { %535 = vmatprep.subr.mxu1 %v5098_v43  ;;  %689 = vmatpush1.msra.mxu0 %v4970_v12 }
  0x76   :  { %536 = vmatpush1.msra.mxu1 %v5104_v44  ;;  %690 = vmatprep.subr.mxu0 %v4979_v14 }
  0x77   :  { %570 = vmatmul.mubr.f32.vlgmr.msra.gmra.mxu1 %v6850_v0  ;;  %576 = vmatprep.subr.mxu1 %v5108_v45 }
  0x78   :  { %577 = vmatpush1.msra.mxu1 %v5111_v46  ;;  %640 = vmatprep.mubr.f32.mxu1 %v6850_v0 }
  0x79   :  { %578 = vmatprep.subr.mxu1 %v5115_v47  ;;  %691 = vmatpush1.msra.mxu0 %v4982_v15 }
  0x7a   :  { %579 = vmatpush1.msra.mxu1 %v5120_v48  ;;  %258 = vmatprep.mubr.f32.mxu0 %v6850_v0 }
  0x7b   :  { %580 = vmatprep.subr.mxu1 %v5123_v49  ;;  %692 = vmatprep.subr.mxu0 %v4985_v16 }
  0x7c   :  { %581 = vmatpush1.msra.mxu1 %v5127_v50  ;;  %3998 = vmatmul.mubr.msk.f32.gmra.mxu0 %vm151_vm0, %v4997_v18  ;;  %v5206_v18 = vld [vmem:[#allocation4 + $0x78] sm:$0xff] }
  0x7d   :  { %582 = vmatprep.subr.mxu1 %v5131_v51  ;;  %693 = vmatpush1.msra.mxu0 %v4990_v17  ;;  %7013 = vst [vmem:[#allocation36_spill] sm:$0xff] %v5206_v18 }
  0x7e   :  { %583 = vmatpush1.msra.mxu1 %v5135_v52  ;;  %694 = vmatprep.subr.mxu0 %v4999_v19 }
  0x7f   :  { %584 = vmatprep.subr.mxu1 %v5140_v53  ;;  %695 = vmatpush1.msra.mxu0 %v5002_v20 }
  0x80   :  { %585 = vmatpush1.msra.mxu1 %v5144_v54  ;;  %264 = vmatprep.mubr.f32.mxu0 %v6850_v0 }
  0x81   :  { %586 = vmatprep.subr.mxu1 %v5148_v55  ;;  %696 = vmatprep.subr.mxu0 %v5008_v22 }
  0x82   :  { %587 = vmatpush1.msra.mxu1 %v5152_v56  ;;  %3999 = vmatmul.mubr.msk.f32.gmra.mxu0 %vm151_vm0, %v5023_v25  ;;  %v5219_v25 = vld [vmem:[#allocation4 + $0x50] sm:$0xff] }
  0x83   :  { %588 = vmatprep.subr.mxu1 %v5156_v57  ;;  %697 = vmatpush1.msra.mxu0 %v5016_v24  ;;  %7016 = vst [vmem:[#allocation39_spill] sm:$0xff] %v5219_v25 }
  0x84   :  { %589 = vmatpush1.msra.mxu1 %v5160_v58  ;;  %698 = vmatprep.subr.mxu0 %v5025_v26 }
  0x85   :  { %590 = vmatprep.subr.mxu1 %v5165_v59  ;;  %699 = vmatpush1.msra.mxu0 %v5028_v27 }
  0x86   :  { %591 = vmatpush1.msra.mxu1 %v5169_v60  ;;  %270 = vmatprep.mubr.f32.mxu0 %v6850_v0  ;;  %v5223_v0 = vld [vmem:[#allocation4 + $0x38] sm:$0xff] }
  0x87   :  { %592 = vmatprep.subr.mxu1 %v5173_v61  ;;  %700 = vmatprep.subr.mxu0 %v5031_v28  ;;  %7017 = vst [vmem:[#allocation40_spill] sm:$0xff] %v5223_v0  ;;  %v7019_v28 = vmov 0.0  }
  0x88   :  { %593 = vmatpush1.msra.mxu1 %v5177_v62  ;;  %4000 = vmatmul.mubr.msk.f32.gmra.mxu0 %vm151_vm0, %v5044_v30  ;;  %v5227_v30 = vld [vmem:[#allocation4 + $0x30] sm:$0xff] }
  0x89   :  { %594 = vmatprep.subr.mxu1 %v5181_v63  ;;  %701 = vmatpush1.msra.mxu0 %v5037_v29  ;;  %7018 = vst [vmem:[#allocation41_spill] sm:$0xff] %v5227_v30  ;;  %v5231_v29 = vld [vmem:[#allocation4 + $0x18] sm:$0xff] }
  0x8a   :  { %595 = vmatpush1.msra.mxu1 %v5185_v1  ;;  %702 = vmatprep.subr.mxu0 %v5046_v31  ;;  %7020 = vst [vmem:[#allocation42_spill] sm:$0xff] %v5231_v29  ;;  %v5235_v31 = vld [vmem:[#allocation4 + $0x10] sm:$0xff] }
  0x8b   :  { %596 = vmatprep.subr.mxu1 %v5190_v2  ;;  %703 = vmatpush1.msra.mxu0 %v5049_v32  ;;  %7021 = vst [vmem:[#allocation43_spill] sm:$0xff] %v5235_v31 }
  0x8c   :  { %597 = vmatpush1.msra.mxu1 %v5194_v3  ;;  %276 = vmatprep.mubr.f32.mxu0 %v7019_v28 }
  0x8d   :  { %598 = vmatprep.subr.mxu1 %v5198_v8  ;;  %704 = vmatprep.subr.mxu0 %v5053_v33 }
  0x8e   :  { %599 = vmatpush1.msra.mxu1 %v5202_v13  ;;  %4001 = vmatmul.mubr.msk.f32.gmra.mxu0 %vm151_vm0, %v5066_v35 }
  0x8f   :  { %600 = vmatprep.subr.mxu1 %v5206_v18  ;;  %705 = vmatpush1.msra.mxu0 %v5059_v34 }
  0x90   :  { %601 = vmatpush1.msra.mxu1 %v5210_v21  ;;  %706 = vmatprep.subr.mxu0 %v5068_v36 }
  0x91   :  { %602 = vmatprep.subr.mxu1 %v5215_v23  ;;  %707 = vmatpush1.msra.mxu0 %v5071_v37 }
  0x92   :  { %603 = vmatpush1.msra.mxu1 %v5219_v25  ;;  %282 = vmatprep.mubr.f32.mxu0 %v7019_v28 }
  0x93   :  { %604 = vmatprep.subr.mxu1 %v5223_v0  ;;  %708 = vmatprep.subr.mxu0 %v5075_v38 }
  0x94   :  { %605 = vmatpush1.msra.mxu1 %v5227_v30  ;;  %4002 = vmatmul.mubr.msk.f32.gmra.mxu0 %vm151_vm0, %v5088_v40 }
  0x95   :  { %606 = vmatprep.subr.mxu1 %v5231_v29  ;;  %709 = vmatpush1.msra.mxu0 %v5081_v39 }
  0x96   :  { %607 = vmatpush1.msra.mxu1 %v5235_v31  ;;  %710 = vmatprep.subr.mxu0 %v5090_v41 }
  0x97   :  { %641 = vmatmul.mubr.f32.vlgmr.msra.gmra.mxu1 %v7019_v28  ;;  %753 = vmatprep.subr.mxu1 %v5108_v45 }
  0x98   :  { %754 = vmatpush1.msra.mxu1 %v5111_v46  ;;  %711 = vmatpush1.msra.mxu0 %v5093_v42 }
  0x99   :  { %755 = vmatprep.subr.mxu1 %v5115_v47  ;;  %712 = vmatprep.subr.mxu0 %v5098_v43 }
  0x9a   :  { %756 = vmatpush1.msra.mxu1 %v5120_v48  ;;  %713 = vmatpush1.msra.mxu0 %v5104_v44 }
  0x9b   :  { %757 = vmatprep.subr.mxu1 %v5123_v49  ;;  %746 = vmatprep.mubr.f32.mxu0 %v7019_v28 }
  0x9c   :  { %758 = vmatpush1.msra.mxu1 %v5127_v50  ;;  %817 = vmatprep.mubr.f32.mxu1 %v7019_v28 }
  0x9d   :  { %759 = vmatprep.subr.mxu1 %v5131_v51  ;;  %859 = vmatprep.subr.mxu0 %v4942_v4 }
  0x9e   :  { %760 = vmatpush1.msra.mxu1 %v5135_v52 }
  0x9f   :  { %761 = vmatprep.subr.mxu1 %v5140_v53 }
  0xa0   :  { %762 = vmatpush1.msra.mxu1 %v5144_v54 }
  0xa1   :  { %763 = vmatprep.subr.mxu1 %v5148_v55 }
  0xa2   :  { %764 = vmatpush1.msra.mxu1 %v5152_v56 }
  0xa3   :  { %765 = vmatprep.subr.mxu1 %v5156_v57 }
  0xa4   :  { %766 = vmatpush1.msra.mxu1 %v5160_v58 }
  0xa5   :  { %767 = vmatprep.subr.mxu1 %v5165_v59 }
  0xa6   :  { %768 = vmatpush1.msra.mxu1 %v5169_v60 }
  0xa7   :  { %769 = vmatprep.subr.mxu1 %v5173_v61 }
  0xa8   :  { %770 = vmatpush1.msra.mxu1 %v5177_v62 }
  0xa9   :  { %771 = vmatprep.subr.mxu1 %v5181_v63 }
  0xaa   :  { %772 = vmatpush1.msra.mxu1 %v5185_v1 }
  0xab   :  { %773 = vmatprep.subr.mxu1 %v5190_v2 }
  0xac   :  { %774 = vmatpush1.msra.mxu1 %v5194_v3 }
  0xad   :  { %775 = vmatprep.subr.mxu1 %v5198_v8 }
  0xae   :  { %776 = vmatpush1.msra.mxu1 %v5202_v13 }
  0xaf   :  { %777 = vmatprep.subr.mxu1 %v5206_v18 }
  0xb0   :  { %778 = vmatpush1.msra.mxu1 %v5210_v21 }
  0xb1   :  { %779 = vmatprep.subr.mxu1 %v5215_v23 }
  0xb2   :  { %780 = vmatpush1.msra.mxu1 %v5219_v25 }
  0xb3   :  { %781 = vmatprep.subr.mxu1 %v5223_v0 }
  0xb4   :  { %782 = vmatpush1.msra.mxu1 %v5227_v30 }
  0xb5   :  { %783 = vmatprep.subr.mxu1 %v5231_v29 }
  0xb6   :  { %784 = vmatpush1.msra.mxu1 %v5235_v31 }
  0xb7   :  { %930 = vmatprep.subr.mxu1 %v5108_v45 }
 0x117   :  { %v355_v35 = vpop.f32.mrf.mxu1 }
 0x119   :  { %v357_v40 = vpop.f32.mrf.mxu1 }
 0x11b   :  { %v5291_v4 = vpop.f32.mrf.mxu1 }
 0x11c   :  { %7022 = vst [vmem:[#allocation44_spill] sm:$0xff] %v5291_v4 }
 0x11d   :  { %v5293_v28 = vpop.f32.mrf.mxu1 }
 0x11e   :  { %7023 = vst [vmem:[#allocation45_spill] sm:$0xff] %v5293_v28 }
 0x11f   :  { %v5295_v44 = vpop.f32.mrf.mxu1 }
 0x120   :  { %7024 = vst [vmem:[#allocation46_spill] sm:$0xff] %v5295_v44 }
 0x121   :  { %v5297_v43 = vpop.f32.mrf.mxu1 }
 0x122   :  { %7025 = vst [vmem:[#allocation47_spill] sm:$0xff] %v5297_v43  ;;  %v242_v43 = vpop.f32.mrf.mxu0 }
 0x123   :  { %v5299_v42 = vpop.f32.mrf.mxu1 }
 0x124   :  { %7026 = vst [vmem:[#allocation48_spill] sm:$0xff] %v5299_v42  ;;  %v244_v25 = vpop.f32.mrf.mxu0 }
 0x125   :  { %v5301_v0 = vpop.f32.mrf.mxu1 }
 0x126   :  { %7027 = vst [vmem:[#allocation49_spill] sm:$0xff] %v5301_v0 }
 0x127   :  { %v5303_v30 = vpop.f32.mrf.mxu1 }
 0x128   :  { %7028 = vst [vmem:[#allocation50_spill] sm:$0xff] %v5303_v30 }
 0x129   :  { %v5305_v29 = vpop.f32.mrf.mxu1 }
 0x12a   :  { %7029 = vst [vmem:[#allocation51_spill] sm:$0xff] %v5305_v29 }
 0x12b   :  { %v5307_v31 = vpop.f32.mrf.mxu1 }
 0x12c   :  { %7030 = vst [vmem:[#allocation52_spill] sm:$0xff] %v5307_v31 }
 0x12d   :  { %v5309_v45 = vpop.f32.mrf.mxu1 }
 0x12e   :  { %7031 = vst [vmem:[#allocation53_spill] sm:$0xff] %v5309_v45 }
 0x12f   :  { %v5311_v41 = vpop.f32.mrf.mxu1 }
 0x130   :  { %7032 = vst [vmem:[#allocation54_spill] sm:$0xff] %v5311_v41 }
 0x131   :  { %v5313_v4 = vpop.f32.mrf.mxu1 }
 0x132   :  { %7033 = vst [vmem:[#allocation55_spill] sm:$0xff] %v5313_v4 }
 0x133   :  { %v5315_v28 = vpop.f32.mrf.mxu1 }
 0x134   :  { %7034 = vst [vmem:[#allocation56_spill] sm:$0xff] %v5315_v28 }
 0x135   :  { %v5317_v44 = vpop.f32.mrf.mxu1 }
 0x136   :  { %7035 = vst [vmem:[#allocation57_spill] sm:$0xff] %v5317_v44 }
 0x137   :  { %v571_v42 = vpop.f32.mrf.mxu1 }
 0x138   :  { %v647_v30 = vadd.f32 %v571_v42, %v242_v43 }
 0x139   :  { %v573_v0 = vpop.f32.mrf.mxu1 }
 0x13a   :  { %v648_v39 = vadd.f32 %v573_v0, %v244_v25  ;;  %v4011_v29 = vmul.f32 -1.442695, %v647_v30  ;;  %v7043_v30 = vld [vmem:[#allocation38_spill] sm:$0xff] }
 0x13c   :  { %v4012_v23 = vmul.f32 -1.442695, %v648_v39 }
 0x13e   :  { %4254 = vpow2.f32 %v4012_v23 }
 0x13f   :  { %4256 = vpow2.f32 %v4011_v29 }
 0x14b   :  { %v4255_v31 = vpop.eup %4254 }
 0x14c   :  { %v4257_v45 = vpop.eup %4256  ;;  %v660_v38 = vadd.f32 1.0, %v4255_v31 }
 0x14d   :  { %v654_v41 = vadd.f32 1.0, %v4257_v45  ;;  %v7040_v45 = vld [vmem:[#allocation27_spill] sm:$0xff] }
 0x14e   :  { %4258 = vrcp.f32 %v660_v38 }
 0x14f   :  { %4260 = vrcp.f32 %v654_v41 }
 0x157   :  { %v642_v21 = vpop.f32.mrf.mxu1 }
 0x158   :  { %v649_v4 = vadd.f32 %v642_v21, %v355_v35  ;;  %v7042_v21 = vld [vmem:[#allocation28_spill] sm:$0xff]  ;;  %v7044_v35 = vld [vmem:[#allocation29_spill] sm:$0xff] }
 0x159   :  { %v644_v28 = vpop.f32.mrf.mxu1 }
 0x15a   :  { %4262 = vtanh.f32 %v649_v4  ;;  %v650_v44 = vadd.f32 %v644_v28, %v357_v40  ;;  %v7036_v4 = vld [vmem:[#allocation22_spill] sm:$0xff]  ;;  %v7037_v28 = vld [vmem:[#allocation23_spill] sm:$0xff] }
 0x15b   :  { %v4259_v18 = vpop.eup %4258  ;;  %v7045_v40 = vld [vmem:[#allocation39_spill] sm:$0xff] }
 0x15c   :  { %v4013_v37 = vmul.f32 -1.442695, %v650_v44  ;;  %v4261_v0 = vpop.eup %4260  ;;  %v670_v39 = vmul.f32 0.0, %v4259_v18  ;;  %v7039_v44 = vld [vmem:[#allocation36_spill] sm:$0xff]  ;;  %v7041_v18 = vld [vmem:[#allocation37_spill] sm:$0xff] }
 0x15e   :  { %4264 = vpow2.f32 %v4013_v37  ;;  %v7038_v37 = vld [vmem:[#allocation24_spill] sm:$0xff] }
 0x167   :  { %v4263_v42 = vpop.eup %4262 }
 0x168   :  { %v671_v43 = vmul.f32 %v4263_v42, %v4261_v0  ;;  %v7046_v0 = vld [vmem:[#allocation30_spill] sm:$0xff]  ;;  %v7047_v42 = vld [vmem:[#allocation40_spill] sm:$0xff] }
 0x16a   :  { %v5319_v23 = vadd.f32 %v671_v43, %v670_v39  ;;  %v7048_v39 = vld [vmem:[#allocation31_spill] sm:$0xff]  ;;  %v7049_v43 = vld [vmem:[#allocation41_spill] sm:$0xff] }
 0x16b   :  { %v4265_v29 = vpop.eup %4264 }
 0x16c   :  { %v667_v25 = vadd.f32 1.0, %v4265_v29  ;;  %4266 = vtanh.f32 %v5319_v23  ;;  %v7050_v29 = vld [vmem:[#allocation32_spill] sm:$0xff] }
 0x16e   :  { %4268 = vrcp.f32 %v667_v25  ;;  %v7051_v25 = vld [vmem:[#allocation42_spill] sm:$0xff] }
 0x179   :  { %v4267_v31 = vpop.eup %4266 }
 0x17b   :  { %v4269_v38 = vpop.eup %4268 }
 0x17c   :  { %v674_v41 = vmul.f32 %v4269_v38, %v4267_v31  ;;  %v7052_v31 = vld [vmem:[#allocation33_spill] sm:$0xff]  ;;  %v7053_v38 = vmov 0.0  }
 0x17e   :  { %747 = vmatmul.mubr.f32.vlgmr.msra.gmra.mxu0 %v674_v41  ;;  %818 = vmatmul.mubr.f32.vlgmr.msra.gmra.mxu1 %v674_v41  ;;  %v7054_v41 = vld [vmem:[#allocation43_spill] sm:$0xff] }
 0x17f   :  { %860 = vmatpush1.msra.mxu0 %v4944_v5  ;;  %931 = vmatpush1.msra.mxu1 %v5111_v46 }
 0x180   :  { %861 = vmatprep.subr.mxu0 %v4946_v6  ;;  %932 = vmatprep.subr.mxu1 %v5115_v47 }
 0x181   :  { %862 = vmatpush1.msra.mxu0 %v4950_v7  ;;  %933 = vmatpush1.msra.mxu1 %v5120_v48 }
 0x182   :  { %863 = vmatprep.subr.mxu0 %v4959_v9  ;;  %934 = vmatprep.subr.mxu1 %v5123_v49 }
 0x183   :  { %864 = vmatpush1.msra.mxu0 %v4962_v10  ;;  %935 = vmatpush1.msra.mxu1 %v5127_v50 }
 0x184   :  { %865 = vmatprep.subr.mxu0 %v4965_v11  ;;  %936 = vmatprep.subr.mxu1 %v5131_v51 }
 0x185   :  { %866 = vmatpush1.msra.mxu0 %v4970_v12  ;;  %937 = vmatpush1.msra.mxu1 %v5135_v52 }
 0x186   :  { %867 = vmatprep.subr.mxu0 %v4979_v14  ;;  %938 = vmatprep.subr.mxu1 %v5140_v53 }
 0x187   :  { %868 = vmatpush1.msra.mxu0 %v4982_v15  ;;  %939 = vmatpush1.msra.mxu1 %v5144_v54 }
 0x188   :  { %869 = vmatprep.subr.mxu0 %v4985_v16  ;;  %940 = vmatprep.subr.mxu1 %v5148_v55 }
 0x189   :  { %870 = vmatpush1.msra.mxu0 %v4990_v17  ;;  %941 = vmatpush1.msra.mxu1 %v5152_v56 }
 0x18a   :  { %871 = vmatprep.subr.mxu0 %v4999_v19  ;;  %942 = vmatprep.subr.mxu1 %v5156_v57 }
 0x18b   :  { %872 = vmatpush1.msra.mxu0 %v5002_v20  ;;  %943 = vmatpush1.msra.mxu1 %v5160_v58 }
 0x18c   :  { %873 = vmatprep.subr.mxu0 %v5008_v22  ;;  %944 = vmatprep.subr.mxu1 %v5165_v59 }
 0x18d   :  { %874 = vmatpush1.msra.mxu0 %v5016_v24  ;;  %945 = vmatpush1.msra.mxu1 %v5169_v60 }
 0x18e   :  { %875 = vmatprep.subr.mxu0 %v5025_v26  ;;  %946 = vmatprep.subr.mxu1 %v5173_v61 }
 0x18f   :  { %876 = vmatpush1.msra.mxu0 %v5028_v27  ;;  %947 = vmatpush1.msra.mxu1 %v5177_v62 }
 0x190   :  { %877 = vmatprep.subr.mxu0 %v7036_v4  ;;  %948 = vmatprep.subr.mxu1 %v5181_v63 }
 0x191   :  { %878 = vmatpush1.msra.mxu0 %v7037_v28  ;;  %949 = vmatpush1.msra.mxu1 %v5185_v1 }
 0x192   :  { %879 = vmatprep.subr.mxu0 %v7038_v37  ;;  %950 = vmatprep.subr.mxu1 %v5190_v2 }
 0x193   :  { %880 = vmatpush1.msra.mxu0 %v5049_v32  ;;  %951 = vmatpush1.msra.mxu1 %v5194_v3 }
 0x194   :  { %881 = vmatprep.subr.mxu0 %v5053_v33  ;;  %952 = vmatprep.subr.mxu1 %v5198_v8 }
 0x195   :  { %882 = vmatpush1.msra.mxu0 %v5059_v34  ;;  %953 = vmatpush1.msra.mxu1 %v5202_v13  ;;  %v7070_v13 = vld [vmem:[#allocation44_spill] sm:$0xff] }
 0x196   :  { %883 = vmatprep.subr.mxu0 %v5068_v36  ;;  %954 = vmatprep.subr.mxu1 %v7039_v44  ;;  %v7069_v44 = vld [vmem:[#allocation45_spill] sm:$0xff] }
 0x197   :  { %884 = vmatpush1.msra.mxu0 %v7040_v45  ;;  %955 = vmatpush1.msra.mxu1 %v7041_v18 }
 0x198   :  { %885 = vmatprep.subr.mxu0 %v7042_v21  ;;  %956 = vmatprep.subr.mxu1 %v7043_v30 }
 0x199   :  { %886 = vmatpush1.msra.mxu0 %v7044_v35  ;;  %957 = vmatpush1.msra.mxu1 %v7045_v40  ;;  %v7055_v40 = vld [vmem:[#allocation21_spill] sm:$0xff] }
 0x19a   :  { %887 = vmatprep.subr.mxu0 %v7046_v0  ;;  %958 = vmatprep.subr.mxu1 %v7047_v42  ;;  %v7056_v0 = vld [vmem:[#allocation34_spill] sm:$0xff]  ;;  %v248_v42 = vpop.f32.mrf.mxu0 }
 0x19b   :  { %888 = vmatpush1.msra.mxu0 %v7048_v39  ;;  %959 = vmatpush1.msra.mxu1 %v7049_v43 }
 0x19c   :  { %889 = vmatprep.subr.mxu0 %v7050_v29  ;;  %960 = vmatprep.subr.mxu1 %v7051_v25  ;;  %v250_v39 = vpop.f32.mrf.mxu0 }
 0x19d   :  { %890 = vmatpush1.msra.mxu0 %v7052_v31  ;;  %923 = vmatprep.mubr.f32.mxu0 %v7053_v38 }
 0x19e   :  { %961 = vmatpush1.msra.mxu1 %v7054_v41  ;;  %994 = vmatprep.mubr.f32.mxu1 %v7053_v38  ;;  %v5388_v35 = vpop.f32.mrf.mxu0 }
 0x19f   :  { %1036 = vmatprep.subr.mxu0 %v7055_v40  ;;  %1107 = vmatprep.subr.mxu1 %v7056_v0  ;;  %7057 = vst [vmem:[#allocation22_spill] sm:$0xff] %v5388_v35 }
 0x1a0   :  { %v5390_v43 = vpop.f32.mrf.mxu0 }
 0x1a1   :  { %7058 = vst [vmem:[#allocation23_spill] sm:$0xff] %v5390_v43 }
 0x1a2   :  { %v5392_v29 = vpop.f32.mrf.mxu0 }
 0x1a3   :  { %7059 = vst [vmem:[#allocation24_spill] sm:$0xff] %v5392_v29 }
 0x1a4   :  { %v5394_v25 = vpop.f32.mrf.mxu0 }
 0x1a5   :  { %7060 = vst [vmem:[#allocation58_spill] sm:$0xff] %v5394_v25 }
 0x1a6   :  { %v5396_v31 = vpop.f32.mrf.mxu0 }
 0x1a7   :  { %7061 = vst [vmem:[#allocation59_spill] sm:$0xff] %v5396_v31 }
 0x1a8   :  { %v5398_v30 = vpop.f32.mrf.mxu0 }
 0x1a9   :  { %7062 = vst [vmem:[#allocation60_spill] sm:$0xff] %v5398_v30 }
 0x1aa   :  { %v5400_v41 = vpop.f32.mrf.mxu0 }
 0x1ab   :  { %7063 = vst [vmem:[#allocation61_spill] sm:$0xff] %v5400_v41 }
 0x1ac   :  { %v5402_v38 = vpop.f32.mrf.mxu0 }
 0x1ad   :  { %7064 = vst [vmem:[#allocation62_spill] sm:$0xff] %v5402_v38 }
 0x1ae   :  { %v5404_v40 = vpop.f32.mrf.mxu0 }
 0x1af   :  { %7065 = vst [vmem:[#allocation63_spill] sm:$0xff] %v5404_v40 }
 0x1b0   :  { %v5406_v0 = vpop.f32.mrf.mxu0 }
 0x1b1   :  { %7066 = vst [vmem:[#allocation64_spill] sm:$0xff] %v5406_v0 }
 0x1b2   :  { %v5408_v21 = vpop.f32.mrf.mxu0 }
 0x1b3   :  { %7067 = vst [vmem:[#allocation65_spill] sm:$0xff] %v5408_v21 }
 0x1b4   :  { %v5410_v35 = vpop.f32.mrf.mxu0 }
 0x1b5   :  { %7068 = vst [vmem:[#allocation66_spill] sm:$0xff] %v5410_v35 }
 0x23e   :  { %v748_v43 = vpop.f32.mrf.mxu0  ;;  %v819_v31 = vpop.f32.mrf.mxu1 }
 0x23f   :  { %v824_v29 = vadd.f32 %v748_v43, %v248_v42  ;;  %v826_v0 = vadd.f32 %v819_v31, %v7070_v13  ;;  %v7080_v31 = vld [vmem:[#allocation39_spill] sm:$0xff] }
 0x240   :  { %v750_v18 = vpop.f32.mrf.mxu0  ;;  %v821_v41 = vpop.f32.mrf.mxu1 }
 0x241   :  { %v4014_v25 = vmul.f32 -1.442695, %v824_v29  ;;  %v825_v45 = vadd.f32 %v750_v18, %v250_v39  ;;  %v827_v38 = vadd.f32 %v821_v41, %v7069_v44  ;;  %v7082_v41 = vld [vmem:[#allocation40_spill] sm:$0xff] }
 0x243   :  { %4270 = vpow2.f32 %v4014_v25  ;;  %v4015_v30 = vmul.f32 -1.442695, %v825_v45  ;;  %v4016_v36 = vmul.f32 -1.442695, %v827_v38  ;;  %v7079_v25 = vld [vmem:[#allocation29_spill] sm:$0xff]  ;;  %v7081_v38 = vld [vmem:[#allocation30_spill] sm:$0xff] }
 0x245   :  { %4272 = vpow2.f32 %v4015_v30 }
 0x246   :  { %4274 = vpow2.f32 %v4016_v36 }
 0x250   :  { %v4271_v40 = vpop.eup %4270 }
 0x251   :  { %v831_v34 = vadd.f32 1.0, %v4271_v40 }
 0x252   :  { %v4273_v21 = vpop.eup %4272 }
 0x253   :  { %4276 = vrcp.f32 %v831_v34  ;;  %v837_v35 = vadd.f32 1.0, %v4273_v21  ;;  %v4275_v42 = vpop.eup %4274  ;;  %v7074_v34 = vld [vmem:[#allocation36_spill] sm:$0xff]  ;;  %v7076_v21 = vld [vmem:[#allocation37_spill] sm:$0xff] }
 0x254   :  { %4278 = vtanh.f32 %v826_v0  ;;  %v844_v45 = vadd.f32 1.0, %v4275_v42  ;;  %v7078_v0 = vld [vmem:[#allocation38_spill] sm:$0xff]  ;;  %v7083_v42 = vld [vmem:[#allocation31_spill] sm:$0xff] }
 0x255   :  { %4280 = vrcp.f32 %v837_v35  ;;  %v7077_v35 = vld [vmem:[#allocation28_spill] sm:$0xff] }
 0x256   :  { %4282 = vrcp.f32 %v844_v45  ;;  %v7087_v45 = vld [vmem:[#allocation33_spill] sm:$0xff] }
 0x260   :  { %v4277_v18 = vpop.eup %4276 }
 0x261   :  { %v4279_v39 = vpop.eup %4278 }
 0x262   :  { %v4281_v43 = vpop.eup %4280  ;;  %v848_v30 = vmul.f32 %v4279_v39, %v4277_v18  ;;  %v7084_v18 = vld [vmem:[#allocation41_spill] sm:$0xff]  ;;  %v7085_v39 = vld [vmem:[#allocation32_spill] sm:$0xff] }
 0x263   :  { %v847_v29 = vmul.f32 %v4281_v43, %v5319_v23  ;;  %v4283_v13 = vpop.eup %4282  ;;  %v7075_v23 = vld [vmem:[#allocation27_spill] sm:$0xff]  ;;  %v7086_v43 = vld [vmem:[#allocation42_spill] sm:$0xff] }
 0x265   :  { %v5415_v44 = vadd.f32 %v848_v30, %v847_v29  ;;  %v7088_v30 = vmov 0.0   ;;  %v7089_v29 = vld [vmem:[#allocation43_spill] sm:$0xff] }
 0x267   :  { %4284 = vtanh.f32 %v5415_v44 }
 0x274   :  { %v4285_v40 = vpop.eup %4284 }
 0x275   :  { %v851_v36 = vmul.f32 %v4285_v40, %v4283_v13  ;;  %v7090_v13 = vld [vmem:[#allocation21_spill] sm:$0xff]  ;;  %v7091_v40 = vld [vmem:[#allocation34_spill] sm:$0xff] }
 0x277   :  { %924 = vmatmul.mubr.f32.vlgmr.msra.gmra.mxu0 %v851_v36  ;;  %995 = vmatmul.mubr.f32.vlgmr.msra.gmra.mxu1 %v851_v36 }
 0x278   :  { %1037 = vmatpush1.msra.mxu0 %v4944_v5  ;;  %1108 = vmatpush1.msra.mxu1 %v5111_v46  ;;  %v7071_v5 = vld [vmem:[#allocation25_spill] sm:$0xff] }
 0x279   :  { %1038 = vmatprep.subr.mxu0 %v4946_v6  ;;  %1109 = vmatprep.subr.mxu1 %v5115_v47  ;;  %v7072_v6 = vld [vmem:[#allocation35_spill] sm:$0xff] }
 0x27a   :  { %1039 = vmatpush1.msra.mxu0 %v4950_v7  ;;  %1110 = vmatpush1.msra.mxu1 %v5120_v48  ;;  %v7073_v7 = vld [vmem:[#allocation26_spill] sm:$0xff] }
 0x27b   :  { %1040 = vmatprep.subr.mxu0 %v4959_v9  ;;  %1111 = vmatprep.subr.mxu1 %v5123_v49 }
 0x27c   :  { %1041 = vmatpush1.msra.mxu0 %v4962_v10  ;;  %1112 = vmatpush1.msra.mxu1 %v5127_v50 }
 0x27d   :  { %1042 = vmatprep.subr.mxu0 %v4965_v11  ;;  %1113 = vmatprep.subr.mxu1 %v5131_v51 }
 0x27e   :  { %1043 = vmatpush1.msra.mxu0 %v4970_v12  ;;  %1114 = vmatpush1.msra.mxu1 %v5135_v52 }
 0x27f   :  { %1044 = vmatprep.subr.mxu0 %v4979_v14  ;;  %1115 = vmatprep.subr.mxu1 %v5140_v53 }
 0x280   :  { %1045 = vmatpush1.msra.mxu0 %v4982_v15  ;;  %1116 = vmatpush1.msra.mxu1 %v5144_v54 }
 0x281   :  { %1046 = vmatprep.subr.mxu0 %v4985_v16  ;;  %1117 = vmatprep.subr.mxu1 %v5148_v55 }
 0x282   :  { %1047 = vmatpush1.msra.mxu0 %v4990_v17  ;;  %1118 = vmatpush1.msra.mxu1 %v5152_v56 }
 0x283   :  { %1048 = vmatprep.subr.mxu0 %v4999_v19  ;;  %1119 = vmatprep.subr.mxu1 %v5156_v57 }
 0x284   :  { %1049 = vmatpush1.msra.mxu0 %v5002_v20  ;;  %1120 = vmatpush1.msra.mxu1 %v5160_v58 }
 0x285   :  { %1050 = vmatprep.subr.mxu0 %v5008_v22  ;;  %1121 = vmatprep.subr.mxu1 %v5165_v59 }
 0x286   :  { %1051 = vmatpush1.msra.mxu0 %v5016_v24  ;;  %1122 = vmatpush1.msra.mxu1 %v5169_v60 }
 0x287   :  { %1052 = vmatprep.subr.mxu0 %v5025_v26  ;;  %1123 = vmatprep.subr.mxu1 %v5173_v61 }
 0x288   :  { %1053 = vmatpush1.msra.mxu0 %v5028_v27  ;;  %1124 = vmatpush1.msra.mxu1 %v5177_v62 }
 0x289   :  { %1054 = vmatprep.subr.mxu0 %v7036_v4  ;;  %1125 = vmatprep.subr.mxu1 %v5181_v63 }
 0x28a   :  { %1055 = vmatpush1.msra.mxu0 %v7037_v28  ;;  %1126 = vmatpush1.msra.mxu1 %v5185_v1 }
 0x28b   :  { %1056 = vmatprep.subr.mxu0 %v7038_v37  ;;  %1127 = vmatprep.subr.mxu1 %v5190_v2 }
 0x28c   :  { %1057 = vmatpush1.msra.mxu0 %v5049_v32  ;;  %1128 = vmatpush1.msra.mxu1 %v5194_v3 }
 0x28d   :  { %1058 = vmatprep.subr.mxu0 %v5053_v33  ;;  %1129 = vmatprep.subr.mxu1 %v5198_v8 }
 0x28e   :  { %1059 = vmatpush1.msra.mxu0 %v7071_v5  ;;  %1130 = vmatpush1.msra.mxu1 %v7072_v6 }
 0x28f   :  { %1060 = vmatprep.subr.mxu0 %v7073_v7  ;;  %1131 = vmatprep.subr.mxu1 %v7074_v34 }
 0x290   :  { %1061 = vmatpush1.msra.mxu0 %v7075_v23  ;;  %1132 = vmatpush1.msra.mxu1 %v7076_v21  ;;  %v7095_v21 = vld [vmem:[#allocation46_spill] sm:$0xff] }
 0x291   :  { %1062 = vmatprep.subr.mxu0 %v7077_v35  ;;  %1133 = vmatprep.subr.mxu1 %v7078_v0  ;;  %v7094_v0 = vld [vmem:[#allocation47_spill] sm:$0xff] }
 0x292   :  { %1063 = vmatpush1.msra.mxu0 %v7079_v25  ;;  %1134 = vmatpush1.msra.mxu1 %v7080_v31 }
 0x293   :  { %1064 = vmatprep.subr.mxu0 %v7081_v38  ;;  %1135 = vmatprep.subr.mxu1 %v7082_v41 }
 0x294   :  { %1065 = vmatpush1.msra.mxu0 %v7083_v42  ;;  %1136 = vmatpush1.msra.mxu1 %v7084_v18  ;;  %v7092_v42 = vld [vmem:[#allocation22_spill] sm:$0xff] }
 0x295   :  { %1066 = vmatprep.subr.mxu0 %v7085_v39  ;;  %1137 = vmatprep.subr.mxu1 %v7086_v43  ;;  %v7093_v39 = vld [vmem:[#allocation23_spill] sm:$0xff] }
 0x296   :  { %1067 = vmatpush1.msra.mxu0 %v7087_v45  ;;  %1100 = vmatprep.mubr.f32.mxu0 %v7088_v30 }
 0x297   :  { %1138 = vmatpush1.msra.mxu1 %v7089_v29  ;;  %1171 = vmatprep.mubr.f32.mxu1 %v7088_v30 }
 0x298   :  { %1213 = vmatprep.subr.mxu0 %v7090_v13  ;;  %1284 = vmatprep.subr.mxu1 %v7091_v40 }
 0x337   :  { %v925_v36 = vpop.f32.mrf.mxu0  ;;  %v996_v43 = vpop.f32.mrf.mxu1 }
 0x338   :  { %v1001_v41 = vadd.f32 %v925_v36, %v7092_v42  ;;  %v1003_v13 = vadd.f32 %v996_v43, %v7095_v21  ;;  %v5496_v43 = vld [vmem:[#allocation4 + $0x1c8] sm:$0xff] }
 0x339   :  { %v927_v18 = vpop.f32.mrf.mxu0  ;;  %v998_v25 = vpop.f32.mrf.mxu1 }
 0x33a   :  { %v4017_v38 = vmul.f32 -1.442695, %v1001_v41  ;;  %v1002_v31 = vadd.f32 %v927_v18, %v7093_v39  ;;  %v1004_v29 = vadd.f32 %v998_v25, %v7094_v0 }
 0x33c   :  { %4286 = vpow2.f32 %v4017_v38  ;;  %v4018_v45 = vmul.f32 -1.442695, %v1002_v31  ;;  %v4019_v35 = vmul.f32 -1.442695, %v1004_v29 }
 0x33e   :  { %4288 = vpow2.f32 %v4018_v45 }
 0x33f   :  { %4290 = vpow2.f32 %v4019_v35 }
 0x349   :  { %v4287_v30 = vpop.eup %4286 }
 0x34a   :  { %v1008_v23 = vadd.f32 1.0, %v4287_v30 }
 0x34b   :  { %v4289_v40 = vpop.eup %4288 }
 0x34c   :  { %4292 = vrcp.f32 %v1008_v23  ;;  %v1014_v42 = vadd.f32 1.0, %v4289_v40  ;;  %v4291_v41 = vpop.eup %4290  ;;  %v5492_v23 = vld [vmem:[#allocation4 + $0x1e0] sm:$0xff] }
 0x34d   :  { %4294 = vtanh.f32 %v1003_v13  ;;  %v1021_v31 = vadd.f32 1.0, %v4291_v41  ;;  %v7115_v13 = vld [vmem:[#allocation48_spill] sm:$0xff] }
 0x34e   :  { %4296 = vrcp.f32 %v1014_v42 }
 0x34f   :  { %4298 = vrcp.f32 %v1021_v31 }
 0x359   :  { %v4293_v18 = vpop.eup %4292 }
 0x35a   :  { %v4295_v38 = vpop.eup %4294 }
 0x35b   :  { %v4297_v39 = vpop.eup %4296  ;;  %v1025_v45 = vmul.f32 %v4295_v38, %v4293_v18 }
 0x35c   :  { %v1024_v36 = vmul.f32 %v4297_v39, %v5415_v44  ;;  %v4299_v21 = vpop.eup %4298  ;;  %v5500_v44 = vld [vmem:[#allocation4 + $0x1c0] sm:$0xff] }
 0x35e   :  { %v5489_v0 = vadd.f32 %v1025_v45, %v1024_v36 }
 0x360   :  { %4300 = vtanh.f32 %v5489_v0 }
 0x36d   :  { %v4301_v25 = vpop.eup %4300 }
 0x36e   :  { %v1028_v35 = vmul.f32 %v4301_v25, %v4299_v21 }
 0x370   :  { %1101 = vmatmul.mubr.f32.vlgmr.msra.gmra.mxu0 %v1028_v35  ;;  %1172 = vmatmul.mubr.f32.vlgmr.msra.gmra.mxu1 %v1028_v35 }
 0x371   :  { %1214 = vmatpush1.msra.mxu0 %v5492_v23  ;;  %1285 = vmatpush1.msra.mxu1 %v5111_v46  ;;  %v7111_v46 = vld [vmem:[#allocation34_spill] sm:$0xff] }
 0x372   :  { %1215 = vmatprep.subr.mxu0 %v5496_v43  ;;  %1286 = vmatprep.subr.mxu1 %v5115_v47 }
 0x373   :  { %1216 = vmatpush1.msra.mxu0 %v5500_v44  ;;  %1287 = vmatpush1.msra.mxu1 %v5120_v48  ;;  %v7112_v48 = vld [vmem:[#allocation24_spill] sm:$0xff] }
 0x374   :  { %1217 = vmatprep.subr.mxu0 %v4959_v9  ;;  %1288 = vmatprep.subr.mxu1 %v5123_v49  ;;  %v7096_v9 = vld [vmem:[#allocation27_spill] sm:$0xff] }
 0x375   :  { %1218 = vmatpush1.msra.mxu0 %v4962_v10  ;;  %1289 = vmatpush1.msra.mxu1 %v5127_v50  ;;  %v7097_v10 = vld [vmem:[#allocation37_spill] sm:$0xff] }
 0x376   :  { %1219 = vmatprep.subr.mxu0 %v4965_v11  ;;  %1290 = vmatprep.subr.mxu1 %v5131_v51  ;;  %v7098_v11 = vld [vmem:[#allocation28_spill] sm:$0xff] }
 0x377   :  { %1220 = vmatpush1.msra.mxu0 %v4970_v12  ;;  %1291 = vmatpush1.msra.mxu1 %v5135_v52  ;;  %v7099_v12 = vld [vmem:[#allocation38_spill] sm:$0xff] }
 0x378   :  { %1221 = vmatprep.subr.mxu0 %v4979_v14  ;;  %1292 = vmatprep.subr.mxu1 %v5140_v53  ;;  %v7100_v14 = vld [vmem:[#allocation29_spill] sm:$0xff]  ;;  %v7113_v52 = vld [vmem:[#allocation58_spill] sm:$0xff] }
 0x379   :  { %1222 = vmatpush1.msra.mxu0 %v4982_v15  ;;  %1293 = vmatpush1.msra.mxu1 %v5144_v54  ;;  %v7101_v15 = vld [vmem:[#allocation39_spill] sm:$0xff] }
 0x37a   :  { %1223 = vmatprep.subr.mxu0 %v4985_v16  ;;  %1294 = vmatprep.subr.mxu1 %v5148_v55  ;;  %v7102_v16 = vld [vmem:[#allocation30_spill] sm:$0xff] }
 0x37b   :  { %1224 = vmatpush1.msra.mxu0 %v4990_v17  ;;  %1295 = vmatpush1.msra.mxu1 %v5152_v56  ;;  %v7103_v17 = vld [vmem:[#allocation40_spill] sm:$0xff] }
 0x37c   :  { %1225 = vmatprep.subr.mxu0 %v4999_v19  ;;  %1296 = vmatprep.subr.mxu1 %v5156_v57  ;;  %v7104_v19 = vld [vmem:[#allocation31_spill] sm:$0xff] }
 0x37d   :  { %1226 = vmatpush1.msra.mxu0 %v5002_v20  ;;  %1297 = vmatpush1.msra.mxu1 %v5160_v58  ;;  %v7105_v20 = vld [vmem:[#allocation41_spill] sm:$0xff] }
 0x37e   :  { %1227 = vmatprep.subr.mxu0 %v5008_v22  ;;  %1298 = vmatprep.subr.mxu1 %v5165_v59  ;;  %v7106_v22 = vld [vmem:[#allocation32_spill] sm:$0xff] }
 0x37f   :  { %1228 = vmatpush1.msra.mxu0 %v5016_v24  ;;  %1299 = vmatpush1.msra.mxu1 %v5169_v60  ;;  %v7107_v24 = vld [vmem:[#allocation42_spill] sm:$0xff] }
 0x380   :  { %1229 = vmatprep.subr.mxu0 %v5025_v26  ;;  %1300 = vmatprep.subr.mxu1 %v5173_v61  ;;  %v7108_v26 = vld [vmem:[#allocation33_spill] sm:$0xff] }
 0x381   :  { %1230 = vmatpush1.msra.mxu0 %v5028_v27  ;;  %1301 = vmatpush1.msra.mxu1 %v5177_v62  ;;  %v7109_v27 = vmov 0.0  }
 0x382   :  { %1231 = vmatprep.subr.mxu0 %v7036_v4  ;;  %1302 = vmatprep.subr.mxu1 %v5181_v63 }
 0x383   :  { %1232 = vmatpush1.msra.mxu0 %v7037_v28  ;;  %1303 = vmatpush1.msra.mxu1 %v5185_v1 }
 0x384   :  { %1233 = vmatprep.subr.mxu0 %v7038_v37  ;;  %1304 = vmatprep.subr.mxu1 %v5190_v2 }
 0x385   :  { %1234 = vmatpush1.msra.mxu0 %v5049_v32  ;;  %1305 = vmatpush1.msra.mxu1 %v5194_v3  ;;  %v7110_v32 = vld [vmem:[#allocation43_spill] sm:$0xff] }
 0x386   :  { %1235 = vmatprep.subr.mxu0 %v5053_v33  ;;  %1306 = vmatprep.subr.mxu1 %v5198_v8  ;;  %v5562_v33 = vld [vmem:[#allocation4 + $0x1e8] sm:$0xff] }
 0x387   :  { %1236 = vmatpush1.msra.mxu0 %v7071_v5  ;;  %1307 = vmatpush1.msra.mxu1 %v7072_v6 }
 0x388   :  { %1237 = vmatprep.subr.mxu0 %v7073_v7  ;;  %1308 = vmatprep.subr.mxu1 %v7074_v34  ;;  %v7114_v7 = vld [vmem:[#allocation49_spill] sm:$0xff] }
 0x389   :  { %1238 = vmatpush1.msra.mxu0 %v7096_v9  ;;  %1309 = vmatpush1.msra.mxu1 %v7097_v10 }
 0x38a   :  { %1239 = vmatprep.subr.mxu0 %v7098_v11  ;;  %1310 = vmatprep.subr.mxu1 %v7099_v12 }
 0x38b   :  { %1240 = vmatpush1.msra.mxu0 %v7100_v14  ;;  %1311 = vmatpush1.msra.mxu1 %v7101_v15 }
 0x38c   :  { %1241 = vmatprep.subr.mxu0 %v7102_v16  ;;  %1312 = vmatprep.subr.mxu1 %v7103_v17 }
 0x38d   :  { %1242 = vmatpush1.msra.mxu0 %v7104_v19  ;;  %1313 = vmatpush1.msra.mxu1 %v7105_v20  ;;  %v5575_v19 = vld [vmem:[#allocation4 + $0x1f0] sm:$0xff] }
 0x38e   :  { %1243 = vmatprep.subr.mxu0 %v7106_v22  ;;  %1314 = vmatprep.subr.mxu1 %v7107_v24  ;;  %v5579_v22 = vld [vmem:[#allocation4 + $0x1d8] sm:$0xff] }
 0x38f   :  { %1244 = vmatpush1.msra.mxu0 %v7108_v26  ;;  %1277 = vmatprep.mubr.f32.mxu0 %v7109_v27  ;;  %v5586_v26 = vld [vmem:[#allocation4 + $0x1a8] sm:$0xff] }
 0x390   :  { %1315 = vmatpush1.msra.mxu1 %v7110_v32  ;;  %1348 = vmatprep.mubr.f32.mxu1 %v7109_v27 }
 0x391   :  { %1390 = vmatprep.subr.mxu0 %v5562_v33  ;;  %1461 = vmatprep.subr.mxu1 %v7111_v46  ;;  %v5589_v46 = vld [vmem:[#allocation4 + $0x1b8] sm:$0xff] }
 0x430   :  { %v1102_v47 = vpop.f32.mrf.mxu0  ;;  %v1173_v28 = vpop.f32.mrf.mxu1 }
 0x431   :  { %v1178_v49 = vadd.f32 %v1102_v47, %v7112_v48  ;;  %v1180_v42 = vadd.f32 %v1173_v28, %v7115_v13  ;;  %v5592_v47 = vld [vmem:[#allocation4 + $0x1a0] sm:$0xff]  ;;  %v5595_v48 = vld [vmem:[#allocation4 + $0x1b0] sm:$0xff] }
 0x432   :  { %v1104_v50 = vpop.f32.mrf.mxu0  ;;  %v1175_v5 = vpop.f32.mrf.mxu1  ;;  %v5614_v28 = vld [vmem:[#allocation4 + $0x160] sm:$0xff] }
 0x433   :  { %v4020_v51 = vmul.f32 -1.442695, %v1178_v49  ;;  %v1179_v4 = vadd.f32 %v1104_v50, %v7113_v52  ;;  %v1181_v30 = vadd.f32 %v1175_v5, %v7114_v7  ;;  %v5598_v49 = vld [vmem:[#allocation4 + $0x188] sm:$0xff]  ;;  %v5601_v50 = vld [vmem:[#allocation4 + $0x198] sm:$0xff]  ;;  %v5607_v52 = vld [vmem:[#allocation4 + $0x190] sm:$0xff] }
 0x434   :  { %v5622_v5 = vld [vmem:[#allocation4 + $0x140] sm:$0xff]  ;;  %v5626_v7 = vld [vmem:[#allocation4 + $0x128] sm:$0xff] }
 0x435   :  { %4302 = vpow2.f32 %v4020_v51  ;;  %v4021_v37 = vmul.f32 -1.442695, %v1179_v4  ;;  %v4022_v29 = vmul.f32 -1.442695, %v1181_v30  ;;  %v5604_v51 = vld [vmem:[#allocation4 + $0x180] sm:$0xff]  ;;  %v5610_v4 = vld [vmem:[#allocation4 + $0x168] sm:$0xff] }
 0x437   :  { %4304 = vpow2.f32 %v4021_v37  ;;  %v5618_v37 = vld [vmem:[#allocation4 + $0x148] sm:$0xff] }
 0x438   :  { %4306 = vpow2.f32 %v4022_v29 }
 0x442   :  { %v4303_v40 = vpop.eup %4302 }
 0x443   :  { %v1185_v41 = vadd.f32 1.0, %v4303_v40  ;;  %v7125_v40 = vld [vmem:[#allocation60_spill] sm:$0xff] }
 0x444   :  { %v4305_v18 = vpop.eup %4304 }
 0x445   :  { %4308 = vrcp.f32 %v1185_v41  ;;  %v1191_v38 = vadd.f32 1.0, %v4305_v18  ;;  %v4307_v39 = vpop.eup %4306  ;;  %v7126_v18 = vld [vmem:[#allocation51_spill] sm:$0xff] }
 0x446   :  { %4310 = vtanh.f32 %v1180_v42  ;;  %v1198_v21 = vadd.f32 1.0, %v4307_v39 }
 0x447   :  { %4312 = vrcp.f32 %v1191_v38 }
 0x448   :  { %4314 = vrcp.f32 %v1198_v21 }
 0x452   :  { %v4309_v31 = vpop.eup %4308 }
 0x453   :  { %v4311_v45 = vpop.eup %4310 }
 0x454   :  { %v4313_v36 = vpop.eup %4312  ;;  %v1202_v25 = vmul.f32 %v4311_v45, %v4309_v31  ;;  %v7127_v45 = vld [vmem:[#allocation50_spill] sm:$0xff] }
 0x455   :  { %v1201_v35 = vmul.f32 %v4313_v36, %v5489_v0  ;;  %v4315_v11 = vpop.eup %4314  ;;  %v5583_v0 = vld [vmem:[#allocation4 + $0x1d0] sm:$0xff] }
 0x457   :  { %v5571_v9 = vadd.f32 %v1202_v25, %v1201_v35 }
 0x459   :  { %4316 = vtanh.f32 %v5571_v9 }
 0x466   :  { %v4317_v14 = vpop.eup %4316 }
 0x467   :  { %v1205_v16 = vmul.f32 %v4317_v14, %v4315_v11 }
 0x469   :  { %1278 = vmatmul.mubr.f32.vlgmr.msra.gmra.mxu0 %v1205_v16  ;;  %1349 = vmatmul.mubr.f32.vlgmr.msra.gmra.mxu1 %v1205_v16 }
 0x46a   :  { %1391 = vmatpush1.msra.mxu0 %v5492_v23  ;;  %1462 = vmatpush1.msra.mxu1 %v5575_v19 }
 0x46b   :  { %1392 = vmatprep.subr.mxu0 %v5496_v43  ;;  %1463 = vmatprep.subr.mxu1 %v5579_v22 }
 0x46c   :  { %1393 = vmatpush1.msra.mxu0 %v5500_v44  ;;  %1464 = vmatpush1.msra.mxu1 %v5583_v0 }
 0x46d   :  { %1394 = vmatprep.subr.mxu0 %v5586_v26  ;;  %1465 = vmatprep.subr.mxu1 %v5589_v46 }
 0x46e   :  { %1395 = vmatpush1.msra.mxu0 %v5592_v47  ;;  %1466 = vmatpush1.msra.mxu1 %v5595_v48 }
 0x46f   :  { %1396 = vmatprep.subr.mxu0 %v5598_v49  ;;  %1467 = vmatprep.subr.mxu1 %v5601_v50 }
 0x470   :  { %1397 = vmatpush1.msra.mxu0 %v5604_v51  ;;  %1468 = vmatpush1.msra.mxu1 %v5607_v52 }
 0x471   :  { %1398 = vmatprep.subr.mxu0 %v5610_v4  ;;  %1469 = vmatprep.subr.mxu1 %v5140_v53  ;;  %v5630_v53 = vld [vmem:[#allocation4 + $0x120] sm:$0xff] }
 0x472   :  { %1399 = vmatpush1.msra.mxu0 %v5614_v28  ;;  %1470 = vmatpush1.msra.mxu1 %v5144_v54  ;;  %v5634_v54 = vld [vmem:[#allocation4 + $0x108] sm:$0xff] }
 0x473   :  { %1400 = vmatprep.subr.mxu0 %v5618_v37  ;;  %1471 = vmatprep.subr.mxu1 %v5148_v55  ;;  %v5638_v55 = vld [vmem:[#allocation4 + $0x100] sm:$0xff] }
 0x474   :  { %1401 = vmatpush1.msra.mxu0 %v5622_v5  ;;  %1472 = vmatpush1.msra.mxu1 %v5152_v56  ;;  %v5642_v56 = vld [vmem:[#allocation4 + $0xe8] sm:$0xff] }
 0x475   :  { %1402 = vmatprep.subr.mxu0 %v5626_v7  ;;  %1473 = vmatprep.subr.mxu1 %v5156_v57  ;;  %v5646_v57 = vld [vmem:[#allocation4 + $0xe0] sm:$0xff] }
 0x476   :  { %1403 = vmatpush1.msra.mxu0 %v5630_v53  ;;  %1474 = vmatpush1.msra.mxu1 %v5160_v58  ;;  %v5650_v58 = vld [vmem:[#allocation4 + $0xc8] sm:$0xff] }
 0x477   :  { %1404 = vmatprep.subr.mxu0 %v5634_v54  ;;  %1475 = vmatprep.subr.mxu1 %v5165_v59  ;;  %v5654_v59 = vld [vmem:[#allocation4 + $0xc0] sm:$0xff] }
 0x478   :  { %1405 = vmatpush1.msra.mxu0 %v5638_v55  ;;  %1476 = vmatpush1.msra.mxu1 %v5169_v60  ;;  %v5658_v60 = vld [vmem:[#allocation4 + $0xa8] sm:$0xff] }
 0x479   :  { %1406 = vmatprep.subr.mxu0 %v5642_v56  ;;  %1477 = vmatprep.subr.mxu1 %v5173_v61  ;;  %v5662_v61 = vld [vmem:[#allocation4 + $0xa0] sm:$0xff] }
 0x47a   :  { %1407 = vmatpush1.msra.mxu0 %v5646_v57  ;;  %1478 = vmatpush1.msra.mxu1 %v5177_v62  ;;  %v5666_v62 = vld [vmem:[#allocation4 + $0x88] sm:$0xff] }
 0x47b   :  { %1408 = vmatprep.subr.mxu0 %v5650_v58  ;;  %1479 = vmatprep.subr.mxu1 %v5181_v63  ;;  %v5670_v63 = vld [vmem:[#allocation4 + $0x80] sm:$0xff] }
 0x47c   :  { %1409 = vmatpush1.msra.mxu0 %v5654_v59  ;;  %1480 = vmatpush1.msra.mxu1 %v5185_v1  ;;  %v5674_v1 = vld [vmem:[#allocation4 + $0x68] sm:$0xff] }
 0x47d   :  { %1410 = vmatprep.subr.mxu0 %v5658_v60  ;;  %1481 = vmatprep.subr.mxu1 %v5190_v2  ;;  %7116 = vst [vmem:[#allocation45_spill] sm:$0xff] %v5674_v1  ;;  %v5678_v2 = vld [vmem:[#allocation4 + $0x60] sm:$0xff] }
 0x47e   :  { %1411 = vmatpush1.msra.mxu0 %v5662_v61  ;;  %1482 = vmatpush1.msra.mxu1 %v5194_v3  ;;  %7117 = vst [vmem:[#allocation44_spill] sm:$0xff] %v5678_v2  ;;  %v5682_v3 = vld [vmem:[#allocation4 + $0x48] sm:$0xff] }
 0x47f   :  { %1412 = vmatprep.subr.mxu0 %v5666_v62  ;;  %1483 = vmatprep.subr.mxu1 %v5198_v8  ;;  %7118 = vst [vmem:[#allocation25_spill] sm:$0xff] %v5682_v3  ;;  %v5686_v8 = vld [vmem:[#allocation4 + $0x40] sm:$0xff] }
 0x480   :  { %1413 = vmatpush1.msra.mxu0 %v5670_v63  ;;  %1484 = vmatpush1.msra.mxu1 %v7072_v6  ;;  %7119 = vst [vmem:[#allocation35_spill] sm:$0xff] %v5686_v8  ;;  %v5690_v6 = vld [vmem:[#allocation4 + $0x28] sm:$0xff] }
 0x481   :  { %1414 = vmatprep.subr.mxu0 %v5674_v1  ;;  %1485 = vmatprep.subr.mxu1 %v7074_v34  ;;  %7120 = vst [vmem:[#allocation26_spill] sm:$0xff] %v5690_v6  ;;  %v5694_v34 = vld [vmem:[#allocation4 + $0x20] sm:$0xff] }
 0x482   :  { %1415 = vmatpush1.msra.mxu0 %v5678_v2  ;;  %1486 = vmatpush1.msra.mxu1 %v7097_v10  ;;  %7121 = vst [vmem:[#allocation36_spill] sm:$0xff] %v5694_v34  ;;  %v5698_v10 = vld [vmem:[#allocation4 + $0x8] sm:$0xff] }
 0x483   :  { %1416 = vmatprep.subr.mxu0 %v5682_v3  ;;  %1487 = vmatprep.subr.mxu1 %v7099_v12  ;;  %7122 = vst [vmem:[#allocation21_spill] sm:$0xff] %v5698_v10  ;;  %v5702_v12 = vld [vmem:[#allocation4] sm:$0xff] }
 0x484   :  { %1417 = vmatpush1.msra.mxu0 %v5686_v8  ;;  %1488 = vmatpush1.msra.mxu1 %v7101_v15  ;;  %7123 = vst [vmem:[#allocation22_spill] sm:$0xff] %v5702_v12  ;;  %v5709_v15 = vld [vmem:[#allocation4 + $0x1f8] sm:$0xff] }
 0x485   :  { %1418 = vmatprep.subr.mxu0 %v5690_v6  ;;  %1489 = vmatprep.subr.mxu1 %v7103_v17 }
 0x486   :  { %1419 = vmatpush1.msra.mxu0 %v5694_v34  ;;  %1490 = vmatpush1.msra.mxu1 %v7105_v20  ;;  %v7124_v20 = vld [vmem:[#allocation59_spill] sm:$0xff] }
 0x487   :  { %1420 = vmatprep.subr.mxu0 %v5698_v10  ;;  %1491 = vmatprep.subr.mxu1 %v7107_v24 }
 0x488   :  { %1421 = vmatpush1.msra.mxu0 %v5702_v12  ;;  %1454 = vmatprep.mubr.f32.mxu0 %v7109_v27 }
 0x489   :  { %1492 = vmatpush1.msra.mxu1 %v7110_v32  ;;  %1525 = vmatprep.mubr.f32.mxu1 %v7109_v27 }
 0x48a   :  { %1567 = vmatprep.subr.mxu0 %v5562_v33  ;;  %1638 = vmatprep.subr.mxu1 %v5709_v15 }
 0x529   :  { %v1279_v17 = vpop.f32.mrf.mxu0  ;;  %v1350_v42 = vpop.f32.mrf.mxu1 }
 0x52a   :  { %v1355_v30 = vadd.f32 %v1279_v17, %v7124_v20  ;;  %v1357_v36 = vadd.f32 %v1350_v42, %v7127_v45  ;;  %v5763_v45 = vld [vmem:[#allocation4 + $0x110] sm:$0xff] }
 0x52b   :  { %v1281_v24 = vpop.f32.mrf.mxu0  ;;  %v1352_v32 = vpop.f32.mrf.mxu1 }
 0x52c   :  { %v4023_v29 = vmul.f32 -1.442695, %v1355_v30  ;;  %v1356_v13 = vadd.f32 %v1281_v24, %v7125_v40  ;;  %v1358_v38 = vadd.f32 %v1352_v32, %v7126_v18  ;;  %v5743_v32 = vld [vmem:[#allocation4 + $0x158] sm:$0xff]  ;;  %v5747_v18 = vld [vmem:[#allocation4 + $0x150] sm:$0xff] }
 0x52e   :  { %4318 = vpow2.f32 %v4023_v29  ;;  %v4024_v41 = vmul.f32 -1.442695, %v1356_v13  ;;  %v4025_v39 = vmul.f32 -1.442695, %v1358_v38  ;;  %v5751_v38 = vld [vmem:[#allocation4 + $0x138] sm:$0xff] }
 0x530   :  { %4320 = vpow2.f32 %v4024_v41  ;;  %v5739_v41 = vld [vmem:[#allocation4 + $0x170] sm:$0xff] }
 0x531   :  { %4322 = vpow2.f32 %v4025_v39  ;;  %v5755_v39 = vld [vmem:[#allocation4 + $0x130] sm:$0xff] }
 0x53b   :  { %v4319_v31 = vpop.eup %4318 }
 0x53c   :  { %v1362_v21 = vadd.f32 1.0, %v4319_v31  ;;  %v5759_v31 = vld [vmem:[#allocation4 + $0x118] sm:$0xff] }
 0x53d   :  { %v4321_v25 = vpop.eup %4320 }
 0x53e   :  { %4324 = vrcp.f32 %v1362_v21  ;;  %v1368_v35 = vadd.f32 1.0, %v4321_v25  ;;  %v4323_v11 = vpop.eup %4322  ;;  %v5771_v21 = vld [vmem:[#allocation4 + $0xf0] sm:$0xff]  ;;  %v5775_v25 = vld [vmem:[#allocation4 + $0xd8] sm:$0xff] }
 0x53f   :  { %4326 = vtanh.f32 %v1357_v36  ;;  %v1375_v20 = vadd.f32 1.0, %v4323_v11  ;;  %v5767_v36 = vld [vmem:[#allocation4 + $0xf8] sm:$0xff] }
 0x540   :  { %4328 = vrcp.f32 %v1368_v35  ;;  %v5779_v35 = vld [vmem:[#allocation4 + $0xd0] sm:$0xff]  ;;  %v5783_v11 = vld [vmem:[#allocation4 + $0xb8] sm:$0xff] }
 0x541   :  { %4330 = vrcp.f32 %v1375_v20  ;;  %v5799_v20 = vld [vmem:[#allocation4 + $0x78] sm:$0xff] }
 0x542   :  { %7129 = vst [vmem:[#allocation47_spill] sm:$0xff] %v5799_v20 }
 0x54b   :  { %v4325_v14 = vpop.eup %4324 }
 0x54c   :  { %v4327_v16 = vpop.eup %4326 }
 0x54d   :  { %v4329_v17 = vpop.eup %4328  ;;  %v1379_v30 = vmul.f32 %v4327_v16, %v4325_v14  ;;  %v5787_v14 = vld [vmem:[#allocation4 + $0xb0] sm:$0xff]  ;;  %v5791_v16 = vld [vmem:[#allocation4 + $0x98] sm:$0xff] }
 0x54e   :  { %v1378_v24 = vmul.f32 %v4329_v17, %v5571_v9  ;;  %v4331_v40 = vpop.eup %4330  ;;  %v5735_v9 = vld [vmem:[#allocation4 + $0x178] sm:$0xff]  ;;  %v5795_v17 = vld [vmem:[#allocation4 + $0x90] sm:$0xff] }
 0x54f   :  { %7128 = vst [vmem:[#allocation23_spill] sm:$0xff] %v5795_v17 }
 0x550   :  { %v5717_v29 = vadd.f32 %v1379_v30, %v1378_v24  ;;  %v5803_v30 = vld [vmem:[#allocation4 + $0x70] sm:$0xff]  ;;  %v5807_v24 = vld [vmem:[#allocation4 + $0x58] sm:$0xff] }
 0x551   :  { %7130 = vst [vmem:[#allocation46_spill] sm:$0xff] %v5803_v30  ;;  %7131 = vst [vmem:[#allocation27_spill] sm:$0xff] %v5807_v24 }
 0x552   :  { %4332 = vtanh.f32 %v5717_v29 }
 0x55f   :  { %v4333_v13 = vpop.eup %4332 }
 0x560   :  { %v1382_v42 = vmul.f32 %v4333_v13, %v4331_v40  ;;  %v5811_v40 = vld [vmem:[#allocation4 + $0x50] sm:$0xff]  ;;  %v5815_v13 = vld [vmem:[#allocation4 + $0x38] sm:$0xff] }
 0x561   :  { %7132 = vst [vmem:[#allocation37_spill] sm:$0xff] %v5811_v40  ;;  %7133 = vst [vmem:[#allocation28_spill] sm:$0xff] %v5815_v13 }
 0x562   :  { %1455 = vmatmul.mubr.f32.vlgmr.msra.gmra.mxu0 %v1382_v42  ;;  %1526 = vmatmul.mubr.f32.vlgmr.msra.gmra.mxu1 %v1382_v42  ;;  %v5819_v42 = vld [vmem:[#allocation4 + $0x30] sm:$0xff] }
 0x563   :  { %1568 = vmatpush1.msra.mxu0 %v5492_v23  ;;  %1639 = vmatpush1.msra.mxu1 %v5575_v19  ;;  %7134 = vst [vmem:[#allocation38_spill] sm:$0xff] %v5819_v42 }
 0x564   :  { %1569 = vmatprep.subr.mxu0 %v5496_v43  ;;  %1640 = vmatprep.subr.mxu1 %v5579_v22 }
 0x565   :  { %1570 = vmatpush1.msra.mxu0 %v5500_v44  ;;  %1641 = vmatpush1.msra.mxu1 %v5583_v0 }
 0x566   :  { %1571 = vmatprep.subr.mxu0 %v5586_v26  ;;  %1642 = vmatprep.subr.mxu1 %v5589_v46 }
 0x567   :  { %1572 = vmatpush1.msra.mxu0 %v5592_v47  ;;  %1643 = vmatpush1.msra.mxu1 %v5595_v48 }
 0x568   :  { %1573 = vmatprep.subr.mxu0 %v5598_v49  ;;  %1644 = vmatprep.subr.mxu1 %v5601_v50 }
 0x569   :  { %1574 = vmatpush1.msra.mxu0 %v5604_v51  ;;  %1645 = vmatpush1.msra.mxu1 %v5607_v52 }
 0x56a   :  { %1575 = vmatprep.subr.mxu0 %v5610_v4  ;;  %1646 = vmatprep.subr.mxu1 %v5735_v9 }
 0x56b   :  { %1576 = vmatpush1.msra.mxu0 %v5614_v28  ;;  %1647 = vmatpush1.msra.mxu1 %v5739_v41 }
 0x56c   :  { %1577 = vmatprep.subr.mxu0 %v5618_v37  ;;  %1648 = vmatprep.subr.mxu1 %v5743_v32 }
 0x56d   :  { %1578 = vmatpush1.msra.mxu0 %v5622_v5  ;;  %1649 = vmatpush1.msra.mxu1 %v5747_v18 }
 0x56e   :  { %1579 = vmatprep.subr.mxu0 %v5626_v7  ;;  %1650 = vmatprep.subr.mxu1 %v5751_v38 }
 0x56f   :  { %1580 = vmatpush1.msra.mxu0 %v5630_v53  ;;  %1651 = vmatpush1.msra.mxu1 %v5755_v39 }
 0x570   :  { %1581 = vmatprep.subr.mxu0 %v5634_v54  ;;  %1652 = vmatprep.subr.mxu1 %v5759_v31 }
 0x571   :  { %1582 = vmatpush1.msra.mxu0 %v5638_v55  ;;  %1653 = vmatpush1.msra.mxu1 %v5763_v45 }
 0x572   :  { %1583 = vmatprep.subr.mxu0 %v5642_v56  ;;  %1654 = vmatprep.subr.mxu1 %v5767_v36 }
 0x573   :  { %1584 = vmatpush1.msra.mxu0 %v5646_v57  ;;  %1655 = vmatpush1.msra.mxu1 %v5771_v21 }
 0x574   :  { %1585 = vmatprep.subr.mxu0 %v5650_v58  ;;  %1656 = vmatprep.subr.mxu1 %v5775_v25 }
 0x575   :  { %1586 = vmatpush1.msra.mxu0 %v5654_v59  ;;  %1657 = vmatpush1.msra.mxu1 %v5779_v35 }
 0x576   :  { %1587 = vmatprep.subr.mxu0 %v5658_v60  ;;  %1658 = vmatprep.subr.mxu1 %v5783_v11 }
 0x577   :  { %1588 = vmatpush1.msra.mxu0 %v5662_v61  ;;  %1659 = vmatpush1.msra.mxu1 %v5787_v14 }
 0x578   :  { %1589 = vmatprep.subr.mxu0 %v5666_v62  ;;  %1660 = vmatprep.subr.mxu1 %v5791_v16 }
 0x579   :  { %1590 = vmatpush1.msra.mxu0 %v5670_v63  ;;  %1661 = vmatpush1.msra.mxu1 %v5795_v17 }
 0x57a   :  { %1591 = vmatprep.subr.mxu0 %v5674_v1  ;;  %1662 = vmatprep.subr.mxu1 %v5799_v20  ;;  %v7140_v1 = vld [vmem:[#allocation52_spill] sm:$0xff] }
 0x57b   :  { %1592 = vmatpush1.msra.mxu0 %v5678_v2  ;;  %1663 = vmatpush1.msra.mxu1 %v5803_v30  ;;  %v7139_v2 = vld [vmem:[#allocation53_spill] sm:$0xff] }
 0x57c   :  { %1593 = vmatprep.subr.mxu0 %v5682_v3  ;;  %1664 = vmatprep.subr.mxu1 %v5807_v24  ;;  %v5823_v24 = vld [vmem:[#allocation4 + $0x18] sm:$0xff] }
 0x57d   :  { %1594 = vmatpush1.msra.mxu0 %v5686_v8  ;;  %1665 = vmatpush1.msra.mxu1 %v5811_v40  ;;  %7135 = vst [vmem:[#allocation29_spill] sm:$0xff] %v5823_v24 }
 0x57e   :  { %1595 = vmatprep.subr.mxu0 %v5690_v6  ;;  %1666 = vmatprep.subr.mxu1 %v5815_v13  ;;  %v5828_v6 = vld [vmem:[#allocation4 + $0x10] sm:$0xff] }
 0x57f   :  { %1596 = vmatpush1.msra.mxu0 %v5694_v34  ;;  %1667 = vmatpush1.msra.mxu1 %v5819_v42  ;;  %7136 = vst [vmem:[#allocation39_spill] sm:$0xff] %v5828_v6 }
 0x580   :  { %1597 = vmatprep.subr.mxu0 %v5698_v10  ;;  %1668 = vmatprep.subr.mxu1 %v5823_v24  ;;  %v7137_v10 = vld [vmem:[#allocation61_spill] sm:$0xff]  ;;  %v7138_v24 = vld [vmem:[#allocation62_spill] sm:$0xff] }
 0x581   :  { %1598 = vmatpush1.msra.mxu0 %v5702_v12  ;;  %1631 = vmatprep.mubr.f32.mxu0 %v7109_v27 }
 0x582   :  { %1669 = vmatpush1.msra.mxu1 %v5828_v6  ;;  %1702 = vmatprep.mubr.f32.mxu1 %v7109_v27 }
 0x583   :  { %1744 = vmatprep.subr.mxu0 %v5562_v33  ;;  %1815 = vmatprep.subr.mxu1 %v5709_v15 }
 0x622   :  { %v1456_v42 = vpop.f32.mrf.mxu0  ;;  %v1527_v12 = vpop.f32.mrf.mxu1 }
 0x623   :  { %v1532_v34 = vadd.f32 %v1456_v42, %v7137_v10  ;;  %v1534_v33 = vadd.f32 %v1527_v12, %v7140_v1 }
 0x624   :  { %v1458_v13 = vpop.f32.mrf.mxu0  ;;  %v1529_v30 = vpop.f32.mrf.mxu1 }
 0x625   :  { %v4026_v40 = vmul.f32 -1.442695, %v1532_v34  ;;  %v1533_v8 = vadd.f32 %v1458_v13, %v7138_v24  ;;  %v1535_v6 = vadd.f32 %v1529_v30, %v7139_v2  ;;  %v1933_v30 = vld [vmem:[#allocation7 + $0x70] sm:$0xff] }
 0x627   :  { %4334 = vpow2.f32 %v4026_v40  ;;  %v4027_v3 = vmul.f32 -1.442695, %v1533_v8  ;;  %v4028_v20 = vmul.f32 -1.442695, %v1535_v6 }
 0x629   :  { %4336 = vpow2.f32 %v4027_v3 }
 0x62a   :  { %4338 = vpow2.f32 %v4028_v20  ;;  %v1934_v20 = vld [vmem:[#allocation7 + $0x78] sm:$0xff] }
 0x634   :  { %v4335_v27 = vpop.eup %4334 }
 0x635   :  { %v1539_v17 = vadd.f32 1.0, %v4335_v27 }
 0x636   :  { %v4337_v15 = vpop.eup %4336 }
 0x637   :  { %4340 = vrcp.f32 %v1539_v17  ;;  %v1545_v10 = vadd.f32 1.0, %v4337_v15  ;;  %v4339_v34 = vpop.eup %4338  ;;  %v1931_v15 = vld [vmem:[#allocation7 + $0x60] sm:$0xff] }
 0x638   :  { %4342 = vtanh.f32 %v1534_v33  ;;  %v1552_v8 = vadd.f32 1.0, %v4339_v34  ;;  %v1932_v33 = vld [vmem:[#allocation7 + $0x68] sm:$0xff]  ;;  %v1929_v34 = vld [vmem:[#allocation7 + $0x50] sm:$0xff] }
 0x639   :  { %4344 = vrcp.f32 %v1545_v10  ;;  %v1930_v10 = vld [vmem:[#allocation7 + $0x58] sm:$0xff] }
 0x63a   :  { %4346 = vrcp.f32 %v1552_v8  ;;  %v1925_v8 = vld [vmem:[#allocation7 + $0x30] sm:$0xff] }
 0x644   :  { %v4341_v24 = vpop.eup %4340 }
 0x645   :  { %v4343_v40 = vpop.eup %4342 }
 0x646   :  { %v4345_v13 = vpop.eup %4344  ;;  %v1556_v3 = vmul.f32 %v4343_v40, %v4341_v24  ;;  %v1928_v24 = vld [vmem:[#allocation7 + $0x48] sm:$0xff]  ;;  %v1927_v40 = vld [vmem:[#allocation7 + $0x40] sm:$0xff] }
 0x647   :  { %v1555_v42 = vmul.f32 %v4345_v13, %v5717_v29  ;;  %v4347_v27 = vpop.eup %4346  ;;  %v1926_v13 = vld [vmem:[#allocation7 + $0x38] sm:$0xff] }
 0x649   :  { %v5839_v2 = vadd.f32 %v1556_v3, %v1555_v42  ;;  %v1924_v3 = vld [vmem:[#allocation7 + $0x28] sm:$0xff]  ;;  %v1923_v42 = vld [vmem:[#allocation7 + $0x20] sm:$0xff] }
 0x64b   :  { %4348 = vtanh.f32 %v5839_v2 }
 0x658   :  { %v4349_v1 = vpop.eup %4348 }
 0x659   :  { %v1559_v6 = vmul.f32 %v4349_v1, %v4347_v27  ;;  %v1921_v27 = vld [vmem:[#allocation7 + $0x10] sm:$0xff]  ;;  %v1920_v1 = vld [vmem:[#allocation7 + $0x8] sm:$0xff] }
 0x65b   :  { %1632 = vmatmul.mubr.f32.vlgmr.msra.gmra.mxu0 %v1559_v6  ;;  %1703 = vmatmul.mubr.f32.vlgmr.msra.gmra.mxu1 %v1559_v6  ;;  %v1919_v6 = vld [vmem:[#allocation7] sm:$0xff] }
 0x65c   :  { %1745 = vmatpush1.msra.mxu0 %v5492_v23  ;;  %1816 = vmatpush1.msra.mxu1 %v5575_v19  ;;  %v7141_v23 = vld [vmem:[#allocation23_spill] sm:$0xff]  ;;  %v7144_v19 = vld [vmem:[#allocation44_spill] sm:$0xff] }
 0x65d   :  { %1746 = vmatprep.subr.mxu0 %v5496_v43  ;;  %1817 = vmatprep.subr.mxu1 %v5579_v22  ;;  %v7142_v43 = vld [vmem:[#allocation45_spill] sm:$0xff]  ;;  %v7145_v22 = vld [vmem:[#allocation46_spill] sm:$0xff] }
 0x65e   :  { %1747 = vmatpush1.msra.mxu0 %v5500_v44  ;;  %1818 = vmatpush1.msra.mxu1 %v5583_v0  ;;  %v7143_v44 = vld [vmem:[#allocation47_spill] sm:$0xff]  ;;  %v7146_v0 = vld [vmem:[#allocation25_spill] sm:$0xff] }
 0x65f   :  { %1748 = vmatprep.subr.mxu0 %v5586_v26  ;;  %1819 = vmatprep.subr.mxu1 %v5589_v46  ;;  %v7147_v26 = vld [vmem:[#allocation27_spill] sm:$0xff] }
 0x660   :  { %1749 = vmatpush1.msra.mxu0 %v5592_v47  ;;  %1820 = vmatpush1.msra.mxu1 %v5595_v48  ;;  %v7148_v46 = vld [vmem:[#allocation35_spill] sm:$0xff]  ;;  %v7149_v47 = vld [vmem:[#allocation37_spill] sm:$0xff]  ;;  %v7150_v48 = vld [vmem:[#allocation26_spill] sm:$0xff] }
 0x661   :  { %1750 = vmatprep.subr.mxu0 %v5598_v49  ;;  %1821 = vmatprep.subr.mxu1 %v5601_v50  ;;  %v7151_v49 = vld [vmem:[#allocation28_spill] sm:$0xff] }
 0x662   :  { %1751 = vmatpush1.msra.mxu0 %v5604_v51  ;;  %1822 = vmatpush1.msra.mxu1 %v5607_v52  ;;  %v7152_v50 = vld [vmem:[#allocation36_spill] sm:$0xff]  ;;  %v7153_v51 = vld [vmem:[#allocation38_spill] sm:$0xff]  ;;  %v7154_v52 = vld [vmem:[#allocation21_spill] sm:$0xff] }
 0x663   :  { %1752 = vmatprep.subr.mxu0 %v5610_v4  ;;  %1823 = vmatprep.subr.mxu1 %v5735_v9  ;;  %v7155_v4 = vld [vmem:[#allocation29_spill] sm:$0xff]  ;;  %v7162_v9 = vld [vmem:[#allocation54_spill] sm:$0xff] }
 0x664   :  { %1753 = vmatpush1.msra.mxu0 %v5614_v28  ;;  %1824 = vmatpush1.msra.mxu1 %v5739_v41  ;;  %v7156_v28 = vld [vmem:[#allocation22_spill] sm:$0xff] }
 0x665   :  { %1754 = vmatprep.subr.mxu0 %v5618_v37  ;;  %1825 = vmatprep.subr.mxu1 %v5743_v32  ;;  %v7157_v37 = vmov 0.0  }
 0x666   :  { %1755 = vmatpush1.msra.mxu0 %v5622_v5  ;;  %1826 = vmatpush1.msra.mxu1 %v5747_v18  ;;  %v7158_v5 = vld [vmem:[#allocation39_spill] sm:$0xff] }
 0x667   :  { %1756 = vmatprep.subr.mxu0 %v5626_v7  ;;  %1827 = vmatprep.subr.mxu1 %v5751_v38 }
 0x668   :  { %1757 = vmatpush1.msra.mxu0 %v5630_v53  ;;  %1828 = vmatpush1.msra.mxu1 %v5755_v39  ;;  %v7159_v53 = vld [vmem:[#allocation63_spill] sm:$0xff] }
 0x669   :  { %1758 = vmatprep.subr.mxu0 %v5634_v54  ;;  %1829 = vmatprep.subr.mxu1 %v5759_v31 }
 0x66a   :  { %1759 = vmatpush1.msra.mxu0 %v5638_v55  ;;  %1830 = vmatpush1.msra.mxu1 %v5763_v45 }
 0x66b   :  { %1760 = vmatprep.subr.mxu0 %v5642_v56  ;;  %1831 = vmatprep.subr.mxu1 %v5767_v36 }
 0x66c   :  { %1761 = vmatpush1.msra.mxu0 %v5646_v57  ;;  %1832 = vmatpush1.msra.mxu1 %v5771_v21  ;;  %v7160_v57 = vld [vmem:[#allocation64_spill] sm:$0xff] }
 0x66d   :  { %1762 = vmatprep.subr.mxu0 %v5650_v58  ;;  %1833 = vmatprep.subr.mxu1 %v5775_v25 }
 0x66e   :  { %1763 = vmatpush1.msra.mxu0 %v5654_v59  ;;  %1834 = vmatpush1.msra.mxu1 %v5779_v35 }
 0x66f   :  { %1764 = vmatprep.subr.mxu0 %v5658_v60  ;;  %1835 = vmatprep.subr.mxu1 %v5783_v11 }
 0x670   :  { %1765 = vmatpush1.msra.mxu0 %v5662_v61  ;;  %1836 = vmatpush1.msra.mxu1 %v5787_v14 }
 0x671   :  { %1766 = vmatprep.subr.mxu0 %v5666_v62  ;;  %1837 = vmatprep.subr.mxu1 %v5791_v16  ;;  %v7161_v62 = vld [vmem:[#allocation55_spill] sm:$0xff] }
 0x672   :  { %1767 = vmatpush1.msra.mxu0 %v5670_v63  ;;  %1838 = vmatpush1.msra.mxu1 %v7141_v23 }
 0x673   :  { %1768 = vmatprep.subr.mxu0 %v7142_v43  ;;  %1839 = vmatprep.subr.mxu1 %v7143_v44  ;;  %v7163_v43 = vld [vmem:[#allocation65_spill] sm:$0xff] }
 0x674   :  { %1769 = vmatpush1.msra.mxu0 %v7144_v19  ;;  %1840 = vmatpush1.msra.mxu1 %v7145_v22 }
 0x675   :  { %1770 = vmatprep.subr.mxu0 %v7146_v0  ;;  %1841 = vmatprep.subr.mxu1 %v7147_v26  ;;  %v7164_v0 = vld [vmem:[#allocation66_spill] sm:$0xff] }
 0x676   :  { %1771 = vmatpush1.msra.mxu0 %v7148_v46  ;;  %1842 = vmatpush1.msra.mxu1 %v7149_v47 }
 0x677   :  { %1772 = vmatprep.subr.mxu0 %v7150_v48  ;;  %1843 = vmatprep.subr.mxu1 %v7151_v49  ;;  %v7165_v49 = vld [vmem:[#allocation57_spill] sm:$0xff] }
 0x678   :  { %1773 = vmatpush1.msra.mxu0 %v7152_v50  ;;  %1844 = vmatpush1.msra.mxu1 %v7153_v51 }
 0x679   :  { %1774 = vmatprep.subr.mxu0 %v7154_v52  ;;  %1845 = vmatprep.subr.mxu1 %v7155_v4  ;;  %v7166_v4 = vld [vmem:[#allocation56_spill] sm:$0xff] }
 0x67a   :  { %1775 = vmatpush1.msra.mxu0 %v7156_v28  ;;  %1808 = vmatprep.mubr.f32.mxu0 %v7157_v37 }
 0x67b   :  { %1846 = vmatpush1.msra.mxu1 %v7158_v5  ;;  %1879 = vmatprep.mubr.f32.mxu1 %v7157_v37 }
 0x67c   :  { %4127 = vmatprep.subr.mxu0 %v7157_v37  ;;  %4162 = vmatprep.subr.mxu1 %v7157_v37 }
 0x71b   :  { %v1633_v7 = vpop.f32.mrf.mxu0  ;;  %v1704_v59 = vpop.f32.mrf.mxu1 }
 0x71c   :  { %v1709_v54 = vadd.f32 %v1633_v7, %v7159_v53  ;;  %v1711_v41 = vadd.f32 %v1704_v59, %v7162_v9  ;;  %v2064_v9 = vld [vmem:[#allocation9 + $0x70] sm:$0xff] }
 0x71d   :  { %v1635_v55 = vpop.f32.mrf.mxu0  ;;  %v1706_v61 = vpop.f32.mrf.mxu1 }
 0x71e   :  { %v4029_v56 = vmul.f32 -1.442695, %v1709_v54  ;;  %v1710_v58 = vadd.f32 %v1635_v55, %v7160_v57  ;;  %v1712_v63 = vadd.f32 %v1706_v61, %v7161_v62 }
 0x720   :  { %4350 = vpow2.f32 %v4029_v56  ;;  %v4030_v60 = vmul.f32 -1.442695, %v1710_v58  ;;  %v4031_v12 = vmul.f32 -1.442695, %v1712_v63 }
 0x722   :  { %4352 = vpow2.f32 %v4030_v60 }
 0x723   :  { %4354 = vpow2.f32 %v4031_v12 }
 0x72d   :  { %v4351_v29 = vpop.eup %4350 }
 0x72e   :  { %v1716_v32 = vadd.f32 1.0, %v4351_v29  ;;  %v2065_v29 = vld [vmem:[#allocation9 + $0x78] sm:$0xff] }
 0x72f   :  { %v4353_v18 = vpop.eup %4352 }
 0x730   :  { %4356 = vrcp.f32 %v1716_v32  ;;  %v1722_v38 = vadd.f32 1.0, %v4353_v18  ;;  %v4355_v39 = vpop.eup %4354  ;;  %v2062_v32 = vld [vmem:[#allocation9 + $0x60] sm:$0xff]  ;;  %v2061_v18 = vld [vmem:[#allocation9 + $0x58] sm:$0xff] }
 0x731   :  { %4358 = vtanh.f32 %v1711_v41  ;;  %v1729_v21 = vadd.f32 1.0, %v4355_v39  ;;  %v2063_v41 = vld [vmem:[#allocation9 + $0x68] sm:$0xff] }
 0x732   :  { %4360 = vrcp.f32 %v1722_v38  ;;  %v2060_v38 = vld [vmem:[#allocation9 + $0x50] sm:$0xff]  ;;  %v2059_v39 = vld [vmem:[#allocation9 + $0x48] sm:$0xff] }
 0x733   :  { %4362 = vrcp.f32 %v1729_v21  ;;  %v2055_v21 = vld [vmem:[#allocation9 + $0x28] sm:$0xff] }
 0x73d   :  { %v4357_v31 = vpop.eup %4356 }
 0x73e   :  { %v4359_v45 = vpop.eup %4358 }
 0x73f   :  { %v4361_v36 = vpop.eup %4360  ;;  %v1733_v25 = vmul.f32 %v4359_v45, %v4357_v31  ;;  %v2058_v31 = vld [vmem:[#allocation9 + $0x40] sm:$0xff]  ;;  %v2057_v45 = vld [vmem:[#allocation9 + $0x38] sm:$0xff] }
 0x740   :  { %v1732_v35 = vmul.f32 %v4361_v36, %v5839_v2  ;;  %v4363_v14 = vpop.eup %4362  ;;  %v1922_v2 = vld [vmem:[#allocation7 + $0x18] sm:$0xff]  ;;  %v2056_v36 = vld [vmem:[#allocation9 + $0x30] sm:$0xff] }
 0x742   :  { %v5913_v11 = vadd.f32 %v1733_v25, %v1732_v35  ;;  %v2054_v25 = vld [vmem:[#allocation9 + $0x20] sm:$0xff]  ;;  %v2053_v35 = vld [vmem:[#allocation9 + $0x18] sm:$0xff] }
 0x744   :  { %4364 = vtanh.f32 %v5913_v11 }
 0x751   :  { %v4365_v16 = vpop.eup %4364 }
 0x752   :  { %v1736_v17 = vmul.f32 %v4365_v16, %v4363_v14  ;;  %v2051_v14 = vld [vmem:[#allocation9 + $0x8] sm:$0xff]  ;;  %v2050_v16 = vld [vmem:[#allocation9] sm:$0xff] }
 0x754   :  { %1809 = vmatmul.mubr.f32.vlgmr.msra.gmra.mxu0 %v1736_v17  ;;  %1880 = vmatmul.mubr.f32.vlgmr.msra.gmra.mxu1 %v1736_v17  ;;  %v1914_v17 = vlaneseq }
 0x755   :  { %4128 = vmatpush3.msra.mxu0 %v1934_v20  ;;  %4159 = vmatprep.mubr.msk.f32.mxu0 %vm4803_vm1, %v7157_v37 }
 0x756   :  { %4129 = vmatprep.subr.mxu0 %v7157_v37  ;;  %4194 = vmatprep.mubr.msk.f32.mxu1 %vm4803_vm1, %v7157_v37  ;;  %v5954_v20 = vshrl.u32 %v1914_v17, 7  ;;  %v2218_v17 = vld [vmem:[#allocation10 + $0x100] sm:$0xff] }
 0x757   :  { %4130 = vmatpush3.msra.mxu0 %v1933_v30  ;;  %4163 = vmatpush3.msra.mxu1 %v2065_v29  ;;  %v4036_v30 = vld [vmem:[%s6834_s4] ss:$0 sm:$0xff] }
 0x758   :  { %4131 = vmatprep.subr.mxu0 %v7157_v37  ;;  %4164 = vmatprep.subr.mxu1 %v7157_v37  ;;  %7167 = vst [vmem:[#allocation30_spill] sm:$0xff] %v5954_v20  ;;  %vm1916_vm2 = vcmp.lt.s32.totalorder %v5954_v20, 4  ;;  %v2234_v29 = vld [vmem:[#allocation10 + $0x180] sm:$0xff] }
 0x759   :  { %4132 = vmatpush3.msra.mxu0 %v1932_v33  ;;  %4165 = vmatpush3.msra.mxu1 %v2064_v9  ;;  %v5961_v33 = vsel %vm1916_vm2, 1.0, %v7157_v37  ;;  %v2236_v9 = vld [vmem:[#allocation10 + $0x190] sm:$0xff]  ;;  %v6186_v20 = vld [vmem:[#allocation12] sm:$0xff] }
 0x75a   :  { %4133 = vmatprep.subr.mxu0 %v7157_v37  ;;  %4166 = vmatprep.subr.mxu1 %v7157_v37  ;;  %7186 = vst [vmem:[#allocation53_spill] sm:$0xff] %v6186_v20 }
 0x75b   :  { %4134 = vmatpush3.msra.mxu0 %v1931_v15  ;;  %4167 = vmatpush3.msra.mxu1 %v2063_v41  ;;  %v2231_v41 = vld [vmem:[#allocation10 + $0x168] sm:$0xff] }
 0x75c   :  { %4135 = vmatprep.subr.mxu0 %v7157_v37  ;;  %4168 = vmatprep.subr.mxu1 %v7157_v37 }
 0x75d   :  { %4136 = vmatpush3.msra.mxu0 %v1930_v10  ;;  %4169 = vmatpush3.msra.mxu1 %v2062_v32  ;;  %v2233_v32 = vld [vmem:[#allocation10 + $0x178] sm:$0xff] }
 0x75e   :  { %4137 = vmatprep.subr.mxu0 %v7157_v37  ;;  %4170 = vmatprep.subr.mxu1 %v7157_v37 }
 0x75f   :  { %4138 = vmatpush3.msra.mxu0 %v1929_v34  ;;  %4171 = vmatpush3.msra.mxu1 %v2061_v18  ;;  %v2230_v18 = vld [vmem:[#allocation10 + $0x160] sm:$0xff] }
 0x760   :  { %4139 = vmatprep.subr.mxu0 %v7157_v37  ;;  %4172 = vmatprep.subr.mxu1 %v7157_v37 }
 0x761   :  { %4140 = vmatpush3.msra.mxu0 %v1928_v24  ;;  %4173 = vmatpush3.msra.mxu1 %v2060_v38  ;;  %v2232_v38 = vld [vmem:[#allocation10 + $0x170] sm:$0xff] }
 0x762   :  { %4141 = vmatprep.subr.mxu0 %v7157_v37  ;;  %4174 = vmatprep.subr.mxu1 %v7157_v37 }
 0x763   :  { %4142 = vmatpush3.msra.mxu0 %v1927_v40  ;;  %4175 = vmatpush3.msra.mxu1 %v2059_v39  ;;  %v2227_v39 = vld [vmem:[#allocation10 + $0x148] sm:$0xff] }
 0x764   :  { %4143 = vmatprep.subr.mxu0 %v7157_v37  ;;  %4176 = vmatprep.subr.mxu1 %v7157_v37 }
 0x765   :  { %4144 = vmatpush3.msra.mxu0 %v1926_v13  ;;  %4177 = vmatpush3.msra.mxu1 %v2058_v31  ;;  %v2229_v31 = vld [vmem:[#allocation10 + $0x158] sm:$0xff] }
 0x766   :  { %4145 = vmatprep.subr.mxu0 %v7157_v37  ;;  %4178 = vmatprep.subr.mxu1 %v7157_v37 }
 0x767   :  { %4146 = vmatpush3.msra.mxu0 %v1925_v8  ;;  %4179 = vmatpush3.msra.mxu1 %v2057_v45  ;;  %v2226_v45 = vld [vmem:[#allocation10 + $0x140] sm:$0xff] }
 0x768   :  { %4147 = vmatprep.subr.mxu0 %v7157_v37  ;;  %4180 = vmatprep.subr.mxu1 %v7157_v37 }
 0x769   :  { %4148 = vmatpush3.msra.mxu0 %v1924_v3  ;;  %4181 = vmatpush3.msra.mxu1 %v2056_v36  ;;  %v2228_v36 = vld [vmem:[#allocation10 + $0x150] sm:$0xff] }
 0x76a   :  { %4149 = vmatprep.subr.mxu0 %v7157_v37  ;;  %4182 = vmatprep.subr.mxu1 %v7157_v37 }
 0x76b   :  { %4150 = vmatpush3.msra.mxu0 %v1923_v42  ;;  %4183 = vmatpush3.msra.mxu1 %v2055_v21  ;;  %v2223_v21 = vld [vmem:[#allocation10 + $0x128] sm:$0xff] }
 0x76c   :  { %4151 = vmatprep.subr.mxu0 %v7157_v37  ;;  %4184 = vmatprep.subr.mxu1 %v7157_v37 }
 0x76d   :  { %4152 = vmatpush3.msra.mxu0 %v1922_v2  ;;  %4185 = vmatpush3.msra.mxu1 %v2054_v25  ;;  %v2225_v25 = vld [vmem:[#allocation10 + $0x138] sm:$0xff] }
 0x76e   :  { %4153 = vmatprep.subr.mxu0 %v7157_v37  ;;  %4186 = vmatprep.subr.mxu1 %v7157_v37 }
 0x76f   :  { %4154 = vmatpush3.msra.mxu0 %v1921_v27  ;;  %4187 = vmatpush3.msra.mxu1 %v2053_v35  ;;  %v2222_v35 = vld [vmem:[#allocation10 + $0x120] sm:$0xff] }
 0x770   :  { %4155 = vmatprep.subr.mxu0 %v7157_v37  ;;  %4188 = vmatprep.subr.mxu1 %v7157_v37 }
 0x771   :  { %4156 = vmatpush3.msra.mxu0 %v1920_v1 }
 0x772   :  { %4157 = vmatprep.subr.mxu0 %v7157_v37 }
 0x773   :  { %4158 = vmatpush3.msra.mxu0 %v1919_v6 }
 0x814   :  { %v1810_v23 = vpop.f32.mrf.mxu0  ;;  %v1881_v46 = vpop.f32.mrf.mxu1 }
 0x815   :  { %v1886_v44 = vadd.f32 %v1810_v23, %v7163_v43  ;;  %v1888_v28 = vadd.f32 %v1881_v46, %v7166_v4 }
 0x816   :  { %v1812_v19 = vpop.f32.mrf.mxu0  ;;  %v1883_v48 = vpop.f32.mrf.mxu1 }
 0x817   :  { %v4032_v22 = vmul.f32 -1.442695, %v1886_v44  ;;  %v1887_v26 = vadd.f32 %v1812_v19, %v7164_v0  ;;  %v1889_v50 = vadd.f32 %v1883_v48, %v7165_v49  ;;  %v4037_v49 = vld [vmem:[%s6835_s5] ss:$0 sm:$0xff] }
 0x819   :  { %4366 = vpow2.f32 %v4032_v22  ;;  %v4033_v47 = vmul.f32 -1.442695, %v1887_v26  ;;  %v4034_v51 = vmul.f32 -1.442695, %v1889_v50 }
 0x81b   :  { %4368 = vpow2.f32 %v4033_v47 }
 0x81c   :  { %4370 = vpow2.f32 %v4034_v51  ;;  %v4038_v51 = vld [vmem:[%s6836_s6] ss:$0 sm:$0xff] }
 0x826   :  { %v4367_v52 = vpop.eup %4366 }
 0x827   :  { %v1893_v5 = vadd.f32 1.0, %v4367_v52 }
 0x828   :  { %v4369_v7 = vpop.eup %4368 }
 0x829   :  { %4372 = vrcp.f32 %v1893_v5  ;;  %v1899_v53 = vadd.f32 1.0, %v4369_v7  ;;  %v4371_v54 = vpop.eup %4370  ;;  %v2247_v5 = vld [vmem:[#allocation10 + $0x1e8] sm:$0xff]  ;;  %v2249_v7 = vld [vmem:[#allocation10 + $0x1f8] sm:$0xff] }
 0x82a   :  { %4374 = vtanh.f32 %v1888_v28  ;;  %v1906_v58 = vadd.f32 1.0, %v4371_v54  ;;  %2250 = vmatprep.subr.mxu0 %v2247_v5  ;;  %v2248_v54 = vld [vmem:[#allocation10 + $0x1f0] sm:$0xff]  ;;  %v2186_v5 = vld [vmem:[#allocation10] sm:$0xff] }
 0x82b   :  { %4376 = vrcp.f32 %v1899_v53  ;;  %v2246_v53 = vld [vmem:[#allocation10 + $0x1e0] sm:$0xff] }
 0x82c   :  { %4378 = vrcp.f32 %v1906_v58  ;;  %v2244_v58 = vld [vmem:[#allocation10 + $0x1d0] sm:$0xff] }
 0x836   :  { %v4373_v55 = vpop.eup %4372 }
 0x837   :  { %v4375_v56 = vpop.eup %4374 }
 0x838   :  { %v4377_v57 = vpop.eup %4376  ;;  %v1910_v59 = vmul.f32 %v4375_v56, %v4373_v55  ;;  %v2243_v55 = vld [vmem:[#allocation10 + $0x1c8] sm:$0xff]  ;;  %v2245_v56 = vld [vmem:[#allocation10 + $0x1d8] sm:$0xff] }
 0x839   :  { %v1909_v60 = vmul.f32 %v4377_v57, %v5913_v11  ;;  %v4379_v62 = vpop.eup %4378  ;;  %v2052_v11 = vld [vmem:[#allocation9 + $0x10] sm:$0xff]  ;;  %v2242_v57 = vld [vmem:[#allocation10 + $0x1c0] sm:$0xff] }
 0x83a   :  { %4189 = vmatpush3.msra.mxu1 %v2052_v11  ;;  %v2224_v11 = vld [vmem:[#allocation10 + $0x130] sm:$0xff] }
 0x83b   :  { %v1911_v61 = vadd.f32 %v1910_v59, %v1909_v60  ;;  %4190 = vmatprep.subr.mxu1 %v7157_v37  ;;  %v2239_v59 = vld [vmem:[#allocation10 + $0x1a8] sm:$0xff]  ;;  %v2241_v60 = vld [vmem:[#allocation10 + $0x1b8] sm:$0xff] }
 0x83c   :  { %4191 = vmatpush3.msra.mxu1 %v2051_v14  ;;  %v2219_v14 = vld [vmem:[#allocation10 + $0x108] sm:$0xff] }
 0x83d   :  { %4380 = vtanh.f32 %v1911_v61  ;;  %4192 = vmatprep.subr.mxu1 %v7157_v37  ;;  %v2238_v61 = vld [vmem:[#allocation10 + $0x1a0] sm:$0xff] }
 0x83e   :  { %4193 = vmatpush3.msra.mxu1 %v2050_v16  ;;  %v2221_v16 = vld [vmem:[#allocation10 + $0x118] sm:$0xff] }
 0x83f   :  { %2321 = vmatprep.subr.mxu1 %v2249_v7  ;;  %v2189_v7 = vld [vmem:[#allocation10 + $0x18] sm:$0xff] }
 0x84a   :  { %v4381_v63 = vpop.eup %4380 }
 0x84b   :  { %v1913_v12 = vmul.f32 %v4381_v63, %v4379_v62  ;;  %v2240_v62 = vld [vmem:[#allocation10 + $0x1b0] sm:$0xff]  ;;  %v2235_v63 = vld [vmem:[#allocation10 + $0x188] sm:$0xff] }
 0x84d   :  { %4160 = vmatmul.mubr.f32.vlgmr.msra.gmra.mxu0 %v1913_v12  ;;  %v2237_v12 = vld [vmem:[#allocation10 + $0x198] sm:$0xff] }
 0x84e   :  { %2314 = vmatprep.mubr.f32.mxu0 %v7157_v37  ;;  %2251 = vmatpush1.msra.mxu0 %v2246_v53  ;;  %v2188_v53 = vld [vmem:[#allocation10 + $0x10] sm:$0xff] }
 0x84f   :  { %2252 = vmatprep.subr.mxu0 %v2243_v55  ;;  %v4039_v55 = vld [vmem:[%s6838_s8] ss:$0 sm:$0xff] }
 0x850   :  { %2253 = vmatpush1.msra.mxu0 %v2242_v57 }
 0x851   :  { %2254 = vmatprep.subr.mxu0 %v2239_v59 }
 0x852   :  { %2255 = vmatpush1.msra.mxu0 %v2238_v61 }
 0x853   :  { %2256 = vmatprep.subr.mxu0 %v2235_v63 }
 0x854   :  { %2257 = vmatpush1.msra.mxu0 %v2234_v29 }
 0x855   :  { %2258 = vmatprep.subr.mxu0 %v2231_v41 }
 0x856   :  { %2259 = vmatpush1.msra.mxu0 %v2230_v18 }
 0x857   :  { %2260 = vmatprep.subr.mxu0 %v2227_v39 }
 0x858   :  { %2261 = vmatpush1.msra.mxu0 %v2226_v45 }
 0x859   :  { %2262 = vmatprep.subr.mxu0 %v2223_v21 }
 0x85a   :  { %2263 = vmatpush1.msra.mxu0 %v2222_v35 }
 0x85b   :  { %2264 = vmatprep.subr.mxu0 %v2219_v14  ;;  %v4040_v14 = vld [vmem:[%s6839_s9] ss:$0 sm:$0xff] }
 0x85c   :  { %2265 = vmatpush1.msra.mxu0 %v2218_v17 }
 0x90d   :  { %v2008_v15 = vpop.f32.mrf.mxu0 }
 0x90e   :  { %v2009_v10 = vadd.f32 %v4036_v30, %v2008_v15  ;;  %v2220_v30 = vld [vmem:[#allocation10 + $0x110] sm:$0xff]  ;;  %v2215_v15 = vld [vmem:[#allocation10 + $0xe8] sm:$0xff] }
 0x90f   :  { %v4161_v34 = vpop.f32.mrf.mxu0  ;;  %2266 = vmatprep.subr.mxu0 %v2215_v15 }
 0x910   :  { %v2014_v24 = vmul.f32 %v5961_v33, %v2009_v10  ;;  %v2214_v34 = vld [vmem:[#allocation10 + $0xe0] sm:$0xff] }
 0x911   :  { %2267 = vmatpush1.msra.mxu0 %v2214_v34  ;;  %v2185_v34 = vld [vmem:[%s6841_s11 + $0x18] sm:$0xff] }
 0x912   :  { %v2015_v40 = vrot.slane %v2014_v24, 4 }
 0x914   :  { %v2016_v13 = vadd.f32 %v2015_v40, %v2014_v24  ;;  %v2216_v24 = vld [vmem:[#allocation10 + $0xf0] sm:$0xff]  ;;  %v2211_v40 = vld [vmem:[#allocation10 + $0xc8] sm:$0xff] }
 0x915   :  { %2268 = vmatprep.subr.mxu0 %v2211_v40  ;;  %v2184_v40 = vld [vmem:[%s6841_s11 + $0x10] sm:$0xff] }
 0x916   :  { %v2017_v8 = vrot.slane %v2016_v13, 2 }
 0x918   :  { %v2018_v3 = vadd.f32 %v2017_v8, %v2016_v13  ;;  %v2213_v13 = vld [vmem:[#allocation10 + $0xd8] sm:$0xff]  ;;  %v2210_v8 = vld [vmem:[#allocation10 + $0xc0] sm:$0xff] }
 0x919   :  { %2269 = vmatpush1.msra.mxu0 %v2210_v8  ;;  %v6006_v8 = vld [vmem:[#allocation12 + $0x1f8] sm:$0xff] }
 0x91a   :  { %v2019_v42 = vrot.slane %v2018_v3, 1  ;;  %7169 = vst [vmem:[#allocation31_spill] sm:$0xff] %v6006_v8 }
 0x91c   :  { %v2020_v2 = vadd.f32 %v2019_v42, %v2018_v3  ;;  %v2212_v3 = vld [vmem:[#allocation10 + $0xd0] sm:$0xff]  ;;  %v2207_v42 = vld [vmem:[#allocation10 + $0xa8] sm:$0xff] }
 0x91d   :  { %2270 = vmatprep.subr.mxu0 %v2207_v42  ;;  %v6012_v42 = vld [vmem:[#allocation12 + $0x1f0] sm:$0xff] }
 0x91e   :  { %v2021_v27 = vmul.f32 0.25, %v2020_v2  ;;  %v2209_v2 = vld [vmem:[#allocation10 + $0xb8] sm:$0xff] }
 0x920   :  { %v2022_v1 = vsub.f32 %v2009_v10, %v2021_v27  ;;  %v2217_v10 = vld [vmem:[#allocation10 + $0xf8] sm:$0xff]  ;;  %v2206_v27 = vld [vmem:[#allocation10 + $0xa0] sm:$0xff] }
 0x921   :  { %2271 = vmatpush1.msra.mxu0 %v2206_v27  ;;  %v6018_v27 = vld [vmem:[#allocation12 + $0x1d8] sm:$0xff] }
 0x922   :  { %v2023_v6 = vmul.f32 %v5961_v33, %v2022_v1 }
 0x924   :  { %v2024_v23 = vmul.f32 %v2023_v6, %v2023_v6  ;;  %v2203_v6 = vld [vmem:[#allocation10 + $0x88] sm:$0xff] }
 0x925   :  { %2272 = vmatprep.subr.mxu0 %v2203_v6  ;;  %v6024_v6 = vld [vmem:[#allocation12 + $0x1d0] sm:$0xff] }
 0x926   :  { %v2025_v43 = vrot.slane %v2024_v23, 4 }
 0x928   :  { %v2026_v44 = vadd.f32 %v2025_v43, %v2024_v23  ;;  %v2205_v23 = vld [vmem:[#allocation10 + $0x98] sm:$0xff]  ;;  %v2202_v43 = vld [vmem:[#allocation10 + $0x80] sm:$0xff] }
 0x929   :  { %2273 = vmatpush1.msra.mxu0 %v2202_v43  ;;  %v6030_v43 = vld [vmem:[#allocation12 + $0x1b8] sm:$0xff] }
 0x92a   :  { %v2027_v19 = vrot.slane %v2026_v44, 2 }
 0x92c   :  { %v2028_v22 = vadd.f32 %v2027_v19, %v2026_v44  ;;  %v2204_v44 = vld [vmem:[#allocation10 + $0x90] sm:$0xff]  ;;  %v2199_v19 = vld [vmem:[#allocation10 + $0x68] sm:$0xff] }
 0x92d   :  { %2274 = vmatprep.subr.mxu0 %v2199_v19  ;;  %v6036_v19 = vld [vmem:[#allocation12 + $0x1b0] sm:$0xff] }
 0x92e   :  { %v2029_v0 = vrot.slane %v2028_v22, 1 }
 0x930   :  { %v2030_v26 = vadd.f32 %v2029_v0, %v2028_v22  ;;  %v2201_v22 = vld [vmem:[#allocation10 + $0x78] sm:$0xff]  ;;  %v2198_v0 = vld [vmem:[#allocation10 + $0x60] sm:$0xff] }
 0x931   :  { %2275 = vmatpush1.msra.mxu0 %v2198_v0  ;;  %v6042_v0 = vld [vmem:[#allocation12 + $0x198] sm:$0xff] }
 0x932   :  { %v2031_v46 = vmul.f32 0.25, %v2030_v26  ;;  %v2200_v26 = vld [vmem:[#allocation10 + $0x70] sm:$0xff] }
 0x934   :  { %v2032_v47 = vadd.f32 1e-05, %v2031_v46  ;;  %v2195_v46 = vld [vmem:[#allocation10 + $0x48] sm:$0xff] }
 0x935   :  { %2276 = vmatprep.subr.mxu0 %v2195_v46  ;;  %v6048_v46 = vld [vmem:[#allocation12 + $0x190] sm:$0xff] }
 0x936   :  { %4382 = vrsqrt.f32 %v2032_v47  ;;  %v2194_v47 = vld [vmem:[#allocation10 + $0x40] sm:$0xff] }
 0x937   :  { %2277 = vmatpush1.msra.mxu0 %v2194_v47  ;;  %v6052_v47 = vld [vmem:[#allocation12 + $0x168] sm:$0xff] }
 0x943   :  { %v4383_v48 = vpop.eup %4382 }
 0x944   :  { %v2034_v50 = vmul.f32 %v4383_v48, %v2022_v1  ;;  %v2208_v1 = vld [vmem:[#allocation10 + $0xb0] sm:$0xff]  ;;  %v2197_v48 = vld [vmem:[#allocation10 + $0x58] sm:$0xff] }
 0x946   :  { %v2041_v52 = vmul.f32 %v4037_v49, %v2034_v50  ;;  %v2191_v49 = vld [vmem:[#allocation10 + $0x28] sm:$0xff]  ;;  %v2196_v50 = vld [vmem:[#allocation10 + $0x50] sm:$0xff] }
 0x947   :  { %2278 = vmatprep.subr.mxu0 %v2191_v49  ;;  %v6058_v49 = vld [vmem:[#allocation12 + $0x160] sm:$0xff] }
 0x948   :  { %v2048_v4 = vadd.f32 %v4038_v51, %v2041_v52  ;;  %v2190_v51 = vld [vmem:[#allocation10 + $0x20] sm:$0xff]  ;;  %v2193_v52 = vld [vmem:[#allocation10 + $0x38] sm:$0xff] }
 0x949   :  { %2279 = vmatpush1.msra.mxu0 %v2190_v51  ;;  %v6064_v51 = vld [vmem:[#allocation12 + $0x148] sm:$0xff] }
 0x94a   :  { %v2049_v28 = vmax.f32 %v2048_v4, 0.0  ;;  %v2187_v4 = vld [vmem:[#allocation10 + $0x8] sm:$0xff] }
 0x94b   :  { %2280 = vmatprep.subr.mxu0 %v2187_v4  ;;  %v6070_v4 = vld [vmem:[#allocation12 + $0x140] sm:$0xff] }
 0x94c   :  { %4195 = vmatmul.mubr.f32.vlgmr.msra.gmra.mxu1 %v2049_v28  ;;  %v2192_v28 = vld [vmem:[#allocation10 + $0x30] sm:$0xff]  ;;  %2281 = vmatpush1.msra.mxu0 %v2186_v5  ;;  %v6076_v5 = vld [vmem:[#allocation12 + $0x128] sm:$0xff] }
 0x94d   :  { %2385 = vmatprep.mubr.f32.mxu1 %v7157_v37  ;;  %2322 = vmatpush1.msra.mxu1 %v2248_v54  ;;  %v2183_v54 = vld [vmem:[%s6841_s11 + $0x8] sm:$0xff] }
 0x94e   :  { %2323 = vmatprep.subr.mxu1 %v2245_v56  ;;  %2425 = vmatprep.subr.mxu0 %v2183_v54  ;;  %v6084_v54 = vld [vmem:[#allocation12 + $0x130] sm:$0xff] }
 0x94f   :  { %2324 = vmatpush1.msra.mxu1 %v2244_v58 }
 0x950   :  { %2325 = vmatprep.subr.mxu1 %v2241_v60 }
 0x951   :  { %2326 = vmatpush1.msra.mxu1 %v2240_v62 }
 0x952   :  { %2327 = vmatprep.subr.mxu1 %v2237_v12 }
 0x953   :  { %2328 = vmatpush1.msra.mxu1 %v2236_v9 }
 0x954   :  { %2329 = vmatprep.subr.mxu1 %v2233_v32 }
 0x955   :  { %2330 = vmatpush1.msra.mxu1 %v2232_v38 }
 0x956   :  { %2331 = vmatprep.subr.mxu1 %v2229_v31 }
 0x957   :  { %2332 = vmatpush1.msra.mxu1 %v2228_v36 }
 0x958   :  { %2333 = vmatprep.subr.mxu1 %v2225_v25 }
 0x959   :  { %2334 = vmatpush1.msra.mxu1 %v2224_v11 }
 0x95a   :  { %2335 = vmatprep.subr.mxu1 %v2221_v16 }
 0x95b   :  { %2336 = vmatpush1.msra.mxu1 %v2220_v30 }
 0x95c   :  { %2337 = vmatprep.subr.mxu1 %v2217_v10  ;;  %v2182_v10 = vld [vmem:[%s6841_s11] sm:$0xff] }
 0x95d   :  { %2338 = vmatpush1.msra.mxu1 %v2216_v24  ;;  %v2181_v24 = vld [vmem:[%s6997_s12 + $0x38] sm:$0xff] }
 0x95e   :  { %2339 = vmatprep.subr.mxu1 %v2213_v13  ;;  %v6004_v13 = vld [vmem:[#allocation12 + $0x1e8] sm:$0xff] }
 0x95f   :  { %2340 = vmatpush1.msra.mxu1 %v2212_v3  ;;  %7168 = vst [vmem:[#allocation40_spill] sm:$0xff] %v6004_v13  ;;  %v6010_v3 = vld [vmem:[#allocation12 + $0x1e0] sm:$0xff] }
 0x960   :  { %2341 = vmatprep.subr.mxu1 %v2209_v2  ;;  %v6016_v2 = vld [vmem:[#allocation12 + $0x1c8] sm:$0xff] }
 0x961   :  { %2342 = vmatpush1.msra.mxu1 %v2208_v1  ;;  %v6022_v1 = vld [vmem:[#allocation12 + $0x1c0] sm:$0xff] }
 0x962   :  { %2343 = vmatprep.subr.mxu1 %v2205_v23  ;;  %v6028_v23 = vld [vmem:[#allocation12 + $0x1a8] sm:$0xff] }
 0x963   :  { %2344 = vmatpush1.msra.mxu1 %v2204_v44  ;;  %v6034_v44 = vld [vmem:[#allocation12 + $0x1a0] sm:$0xff] }
 0x964   :  { %2345 = vmatprep.subr.mxu1 %v2201_v22  ;;  %v6040_v22 = vld [vmem:[#allocation12 + $0x188] sm:$0xff] }
 0x965   :  { %2346 = vmatpush1.msra.mxu1 %v2200_v26  ;;  %v6046_v26 = vld [vmem:[#allocation12 + $0x180] sm:$0xff] }
 0x966   :  { %2347 = vmatprep.subr.mxu1 %v2197_v48  ;;  %v6054_v48 = vld [vmem:[#allocation12 + $0x178] sm:$0xff] }
 0x967   :  { %2348 = vmatpush1.msra.mxu1 %v2196_v50  ;;  %v6060_v50 = vld [vmem:[#allocation12 + $0x170] sm:$0xff] }
 0x968   :  { %2349 = vmatprep.subr.mxu1 %v2193_v52  ;;  %v6066_v52 = vld [vmem:[#allocation12 + $0x158] sm:$0xff] }
 0x969   :  { %2350 = vmatpush1.msra.mxu1 %v2192_v28  ;;  %v6072_v28 = vld [vmem:[#allocation12 + $0x150] sm:$0xff] }
 0x96a   :  { %2351 = vmatprep.subr.mxu1 %v2189_v7  ;;  %v6078_v7 = vld [vmem:[#allocation12 + $0x138] sm:$0xff] }
 0x96b   :  { %2352 = vmatpush1.msra.mxu1 %v2188_v53  ;;  %v6082_v53 = vld [vmem:[#allocation12 + $0x120] sm:$0xff] }
 0x96c   :  { %2719 = vmatprep.subr.mxu1 %v6006_v8 }
 0xa0c   :  { %v2139_v56 = vpop.f32.mrf.mxu1 }
 0xa0d   :  { %v2140_v57 = vadd.f32 %v4039_v55, %v2139_v56  ;;  %v6088_v55 = vld [vmem:[#allocation12 + $0x108] sm:$0xff]  ;;  %v6090_v56 = vld [vmem:[#allocation12 + $0x118] sm:$0xff] }
 0xa0e   :  { %v4196_v58 = vpop.f32.mrf.mxu1 }
 0xa0f   :  { %v2145_v59 = vmul.f32 %v5961_v33, %v2140_v57  ;;  %v6096_v58 = vld [vmem:[#allocation12 + $0x110] sm:$0xff] }
 0xa11   :  { %v2146_v60 = vrot.slane %v2145_v59, 4 }
 0xa13   :  { %v2147_v61 = vadd.f32 %v2146_v60, %v2145_v59  ;;  %v6100_v59 = vld [vmem:[#allocation12 + $0xe8] sm:$0xff]  ;;  %v6102_v60 = vld [vmem:[#allocation12 + $0xf8] sm:$0xff] }
 0xa15   :  { %v2148_v62 = vrot.slane %v2147_v61, 2 }
 0xa17   :  { %v2149_v63 = vadd.f32 %v2148_v62, %v2147_v61  ;;  %v6104_v61 = vld [vmem:[#allocation12 + $0xe0] sm:$0xff]  ;;  %v6108_v62 = vld [vmem:[#allocation12 + $0xf0] sm:$0xff] }
 0xa19   :  { %v2150_v12 = vrot.slane %v2149_v63, 1 }
 0xa1b   :  { %v2151_v29 = vadd.f32 %v2150_v12, %v2149_v63  ;;  %v6110_v63 = vld [vmem:[#allocation12 + $0xc8] sm:$0xff]  ;;  %v6112_v12 = vld [vmem:[#allocation12 + $0xd8] sm:$0xff] }
 0xa1d   :  { %v2152_v9 = vmul.f32 0.25, %v2151_v29  ;;  %v6116_v29 = vld [vmem:[#allocation12 + $0xc0] sm:$0xff] }
 0xa1f   :  { %v2153_v41 = vsub.f32 %v2140_v57, %v2152_v9  ;;  %v6094_v57 = vld [vmem:[#allocation12 + $0x100] sm:$0xff]  ;;  %v6118_v9 = vld [vmem:[#allocation12 + $0xd0] sm:$0xff] }
 0xa21   :  { %v2154_v32 = vmul.f32 %v5961_v33, %v2153_v41  ;;  %v4041_v33 = vld [vmem:[%s6840_s10] ss:$0 sm:$0xff] }
 0xa23   :  { %v2155_v18 = vmul.f32 %v2154_v32, %v2154_v32  ;;  %v6124_v32 = vld [vmem:[#allocation12 + $0xb8] sm:$0xff] }
 0xa25   :  { %v2156_v38 = vrot.slane %v2155_v18, 4 }
 0xa27   :  { %v2157_v39 = vadd.f32 %v2156_v38, %v2155_v18  ;;  %v6126_v18 = vld [vmem:[#allocation12 + $0xa0] sm:$0xff]  ;;  %v6128_v38 = vld [vmem:[#allocation12 + $0xb0] sm:$0xff] }
 0xa29   :  { %v2158_v31 = vrot.slane %v2157_v39, 2 }
 0xa2b   :  { %v2159_v45 = vadd.f32 %v2158_v31, %v2157_v39  ;;  %v6132_v39 = vld [vmem:[#allocation12 + $0x88] sm:$0xff]  ;;  %v6134_v31 = vld [vmem:[#allocation12 + $0x98] sm:$0xff] }
 0xa2d   :  { %v2160_v36 = vrot.slane %v2159_v45, 1 }
 0xa2f   :  { %v2161_v21 = vadd.f32 %v2160_v36, %v2159_v45  ;;  %v6138_v45 = vld [vmem:[#allocation12 + $0x80] sm:$0xff]  ;;  %v6140_v36 = vld [vmem:[#allocation12 + $0x90] sm:$0xff] }
 0xa30   :  { %7170 = vst [vmem:[#allocation41_spill] sm:$0xff] %v6138_v45  ;;  %7171 = vst [vmem:[#allocation32_spill] sm:$0xff] %v6140_v36 }
 0xa31   :  { %v2162_v25 = vmul.f32 0.25, %v2161_v21  ;;  %v6144_v21 = vld [vmem:[#allocation12 + $0x68] sm:$0xff] }
 0xa32   :  { %7172 = vst [vmem:[#allocation42_spill] sm:$0xff] %v6144_v21 }
 0xa33   :  { %v2163_v35 = vadd.f32 1e-05, %v2162_v25  ;;  %v6146_v25 = vld [vmem:[#allocation12 + $0x78] sm:$0xff] }
 0xa34   :  { %7173 = vst [vmem:[#allocation33_spill] sm:$0xff] %v6146_v25 }
 0xa35   :  { %4384 = vrsqrt.f32 %v2163_v35  ;;  %v6150_v35 = vld [vmem:[#allocation12 + $0x60] sm:$0xff] }
 0xa36   :  { %7174 = vst [vmem:[#allocation43_spill] sm:$0xff] %v6150_v35 }
 0xa42   :  { %v4385_v11 = vpop.eup %4384 }
 0xa43   :  { %v2165_v16 = vmul.f32 %v4385_v11, %v2153_v41  ;;  %v6120_v41 = vld [vmem:[#allocation12 + $0xa8] sm:$0xff]  ;;  %v6152_v11 = vld [vmem:[#allocation12 + $0x70] sm:$0xff] }
 0xa44   :  { %7175 = vst [vmem:[#allocation34_spill] sm:$0xff] %v6152_v11 }
 0xa45   :  { %v2172_v17 = vmul.f32 %v4040_v14, %v2165_v16  ;;  %v6156_v14 = vld [vmem:[#allocation12 + $0x48] sm:$0xff]  ;;  %v6158_v16 = vld [vmem:[#allocation12 + $0x58] sm:$0xff] }
 0xa46   :  { %7176 = vst [vmem:[#allocation24_spill] sm:$0xff] %v6156_v14  ;;  %7177 = vst [vmem:[#allocation58_spill] sm:$0xff] %v6158_v16 }
 0xa47   :  { %v2179_v30 = vadd.f32 %v4041_v33, %v2172_v17  ;;  %v6162_v33 = vld [vmem:[#allocation12 + $0x40] sm:$0xff]  ;;  %v6164_v17 = vld [vmem:[#allocation12 + $0x50] sm:$0xff] }
 0xa48   :  { %7178 = vst [vmem:[#allocation49_spill] sm:$0xff] %v6162_v33  ;;  %7179 = vst [vmem:[#allocation48_spill] sm:$0xff] %v6164_v17 }
 0xa49   :  { %v2180_v15 = vmax.f32 %v2179_v30, 0.0  ;;  %v6168_v30 = vld [vmem:[#allocation12 + $0x28] sm:$0xff] }
 0xa4a   :  { %7180 = vst [vmem:[#allocation59_spill] sm:$0xff] %v6168_v30 }
 0xa4b   :  { %2315 = vmatmul.mubr.f32.vlgmr.msra.gmra.mxu0 %v2180_v15  ;;  %2386 = vmatmul.mubr.f32.vlgmr.msra.gmra.mxu1 %v2180_v15  ;;  %v6170_v15 = vld [vmem:[#allocation12 + $0x38] sm:$0xff] }
 0xa4c   :  { %2426 = vmatpush1.msra.mxu0 %v2182_v10  ;;  %2459 = vmatprep.mubr.f32.mxu0 %v7157_v37  ;;  %7181 = vst [vmem:[#allocation60_spill] sm:$0xff] %v6170_v15  ;;  %v6174_v10 = vld [vmem:[#allocation12 + $0x20] sm:$0xff] }
 0xa4d   :  { %2496 = vmatprep.subr.mxu0 %v2185_v34  ;;  %2783 = vmatprep.mubr.f32.mxu1 %v7157_v37  ;;  %7182 = vst [vmem:[#allocation51_spill] sm:$0xff] %v6174_v10  ;;  %v6176_v34 = vld [vmem:[#allocation12 + $0x30] sm:$0xff] }
 0xa4e   :  { %2720 = vmatpush1.msra.mxu1 %v6012_v42  ;;  %7183 = vst [vmem:[#allocation50_spill] sm:$0xff] %v6176_v34 }
 0xa4f   :  { %4042 = vmatmul.mubr.msk.f32.vlgmr.msra.gmra.mxu0 %vm151_vm0, %v2181_v24  ;;  %2721 = vmatprep.subr.mxu1 %v6018_v27 }
 0xa50   :  { %2497 = vmatpush1.msra.mxu0 %v2184_v40  ;;  %2530 = vmatprep.mubr.f32.mxu0 %v7157_v37  ;;  %v6182_v40 = vld [vmem:[#allocation12 + $0x18] sm:$0xff] }
 0xa51   :  { %2648 = vmatprep.subr.mxu0 %v6004_v13  ;;  %2722 = vmatpush1.msra.mxu1 %v6024_v6  ;;  %7185 = vst [vmem:[#allocation62_spill] sm:$0xff] %v6182_v40 }
 0xa52   :  { %2723 = vmatprep.subr.mxu1 %v6030_v43 }
 0xa53   :  { %4043 = vmatmul.mubr.msk.f32.vlgmr.msra.gmra.mxu0 %vm151_vm0, %v2181_v24  ;;  %2724 = vmatpush1.msra.mxu1 %v6036_v19  ;;  %v6180_v24 = vld [vmem:[#allocation12 + $0x8] sm:$0xff] }
 0xa54   :  { %2712 = vmatprep.mubr.f32.mxu0 %v7157_v37  ;;  %2649 = vmatpush1.msra.mxu0 %v6010_v3  ;;  %7184 = vst [vmem:[#allocation61_spill] sm:$0xff] %v6180_v24  ;;  %v6188_v37 = vld [vmem:[#allocation12 + $0x10] sm:$0xff] }
 0xa55   :  { %2650 = vmatprep.subr.mxu0 %v6016_v2  ;;  %2725 = vmatprep.subr.mxu1 %v6042_v0  ;;  %7187 = vst [vmem:[#allocation52_spill] sm:$0xff] %v6188_v37 }
 0xa56   :  { %2651 = vmatpush1.msra.mxu0 %v6022_v1  ;;  %2726 = vmatpush1.msra.mxu1 %v6048_v46 }
 0xa57   :  { %2652 = vmatprep.subr.mxu0 %v6028_v23  ;;  %2727 = vmatprep.subr.mxu1 %v6054_v48 }
 0xa58   :  { %2653 = vmatpush1.msra.mxu0 %v6034_v44  ;;  %2728 = vmatpush1.msra.mxu1 %v6060_v50 }
 0xa59   :  { %2654 = vmatprep.subr.mxu0 %v6040_v22  ;;  %2729 = vmatprep.subr.mxu1 %v6066_v52 }
 0xa5a   :  { %2655 = vmatpush1.msra.mxu0 %v6046_v26  ;;  %2730 = vmatpush1.msra.mxu1 %v6072_v28 }
 0xa5b   :  { %2656 = vmatprep.subr.mxu0 %v6052_v47  ;;  %2731 = vmatprep.subr.mxu1 %v6078_v7 }
 0xa5c   :  { %2657 = vmatpush1.msra.mxu0 %v6058_v49  ;;  %2732 = vmatpush1.msra.mxu1 %v6084_v54 }
 0xa5d   :  { %2658 = vmatprep.subr.mxu0 %v6064_v51  ;;  %2733 = vmatprep.subr.mxu1 %v6090_v56 }
 0xa5e   :  { %2659 = vmatpush1.msra.mxu0 %v6070_v4  ;;  %2734 = vmatpush1.msra.mxu1 %v6096_v58 }
 0xa5f   :  { %2660 = vmatprep.subr.mxu0 %v6076_v5  ;;  %2735 = vmatprep.subr.mxu1 %v6102_v60 }
 0xa60   :  { %2661 = vmatpush1.msra.mxu0 %v6082_v53  ;;  %2736 = vmatpush1.msra.mxu1 %v6108_v62 }
 0xa61   :  { %2662 = vmatprep.subr.mxu0 %v6088_v55  ;;  %2737 = vmatprep.subr.mxu1 %v6112_v12 }
 0xa62   :  { %2663 = vmatpush1.msra.mxu0 %v6094_v57  ;;  %2738 = vmatpush1.msra.mxu1 %v6118_v9 }
 0xa63   :  { %2664 = vmatprep.subr.mxu0 %v6100_v59  ;;  %2739 = vmatprep.subr.mxu1 %v6124_v32 }
 0xa64   :  { %2665 = vmatpush1.msra.mxu0 %v6104_v61  ;;  %2740 = vmatpush1.msra.mxu1 %v6128_v38 }
 0xa65   :  { %2666 = vmatprep.subr.mxu0 %v6110_v63  ;;  %2741 = vmatprep.subr.mxu1 %v6134_v31 }
 0xa66   :  { %2667 = vmatpush1.msra.mxu0 %v6116_v29  ;;  %2742 = vmatpush1.msra.mxu1 %v6140_v36 }
 0xa67   :  { %2668 = vmatprep.subr.mxu0 %v6120_v41  ;;  %2743 = vmatprep.subr.mxu1 %v6146_v25 }
 0xa68   :  { %2669 = vmatpush1.msra.mxu0 %v6126_v18  ;;  %2744 = vmatpush1.msra.mxu1 %v6152_v11 }
 0xa69   :  { %2670 = vmatprep.subr.mxu0 %v6132_v39  ;;  %2745 = vmatprep.subr.mxu1 %v6158_v16 }
 0xa6a   :  { %2671 = vmatpush1.msra.mxu0 %v6138_v45  ;;  %2746 = vmatpush1.msra.mxu1 %v6164_v17 }
 0xa6b   :  { %2672 = vmatprep.subr.mxu0 %v6144_v21  ;;  %2747 = vmatprep.subr.mxu1 %v6170_v15 }
 0xa6c   :  { %2673 = vmatpush1.msra.mxu0 %v6150_v35  ;;  %2748 = vmatpush1.msra.mxu1 %v6176_v34 }
 0xa6d   :  { %2674 = vmatprep.subr.mxu0 %v6156_v14  ;;  %2749 = vmatprep.subr.mxu1 %v6182_v40 }
 0xa6e   :  { %2675 = vmatpush1.msra.mxu0 %v6162_v33  ;;  %2750 = vmatpush1.msra.mxu1 %v6188_v37 }
 0xa6f   :  { %2676 = vmatprep.subr.mxu0 %v6168_v30  ;;  %2887 = vmatprep.subr.mxu1 %v6006_v8 }
 0xa70   :  { %2677 = vmatpush1.msra.mxu0 %v6174_v10 }
 0xa71   :  { %2678 = vmatprep.subr.mxu0 %v6180_v24 }
 0xa72   :  { %2679 = vmatpush1.msra.mxu0 %v6186_v20 }
 0xa73   :  { %2816 = vmatprep.subr.mxu0 %v6004_v13 }
 0xb0b   :  { %v2316_v15 = vpop.f32.mrf.mxu0  ;;  %v2387_v11 = vpop.f32.mrf.mxu1 }
 0xb0d   :  { %v2318_v30 = vpop.f32.mrf.mxu0  ;;  %v2389_v20 = vpop.f32.mrf.mxu1 }
 0xb0f   :  { %v2461_v17 = vpop.f32.mrf.mxu0 }
 0xb10   :  { %v2462_v33 = vadd.f32 %v2461_v17, %v2316_v15 }
 0xb11   :  { %v2463_v16 = vpop.f32.mrf.mxu0 }
 0xb12   :  { %v4044_v10 = vmul.f32 -1.442695, %v2462_v33  ;;  %v2464_v14 = vadd.f32 %v2463_v16, %v2318_v30 }
 0xb13   :  { %v2532_v24 = vpop.f32.mrf.mxu0 }
 0xb14   :  { %4386 = vpow2.f32 %v4044_v10  ;;  %v4045_v34 = vmul.f32 -1.442695, %v2464_v14  ;;  %v2533_v13 = vadd.f32 %v2532_v24, %v2387_v11  ;;  %v7194_v11 = vld [vmem:[#allocation24_spill] sm:$0xff]  ;;  %v7195_v24 = vld [vmem:[#allocation58_spill] sm:$0xff] }
 0xb15   :  { %v2534_v40 = vpop.f32.mrf.mxu0 }
 0xb16   :  { %4388 = vpow2.f32 %v4045_v34  ;;  %v2535_v35 = vadd.f32 %v2534_v40, %v2389_v20  ;;  %v7196_v40 = vld [vmem:[#allocation49_spill] sm:$0xff] }
 0xb18   :  { %v4046_v37 = vmul.f32 -1.442695, %v2535_v35 }
 0xb1a   :  { %4390 = vpow2.f32 %v4046_v37  ;;  %v7189_v37 = vld [vmem:[#allocation32_spill] sm:$0xff] }
 0xb21   :  { %v4387_v25 = vpop.eup %4386 }
 0xb22   :  { %v2540_v21 = vadd.f32 1.0, %v4387_v25 }
 0xb23   :  { %v4389_v8 = vpop.eup %4388 }
 0xb24   :  { %4392 = vrcp.f32 %v2540_v21  ;;  %v2546_v36 = vadd.f32 1.0, %v4389_v8  ;;  %v7191_v8 = vld [vmem:[#allocation33_spill] sm:$0xff]  ;;  %v7193_v21 = vld [vmem:[#allocation34_spill] sm:$0xff] }
 0xb25   :  { %4394 = vtanh.f32 %v2533_v13  ;;  %v7190_v13 = vld [vmem:[#allocation42_spill] sm:$0xff] }
 0xb26   :  { %4396 = vrcp.f32 %v2546_v36  ;;  %v7192_v36 = vld [vmem:[#allocation43_spill] sm:$0xff] }
 0xb27   :  { %v4391_v33 = vpop.eup %4390 }
 0xb28   :  { %v2553_v30 = vadd.f32 1.0, %v4391_v33  ;;  %v7197_v33 = vld [vmem:[#allocation48_spill] sm:$0xff] }
 0xb2a   :  { %4398 = vrcp.f32 %v2553_v30  ;;  %v7201_v30 = vld [vmem:[#allocation50_spill] sm:$0xff] }
 0xb31   :  { %v4393_v16 = vpop.eup %4392 }
 0xb32   :  { %v4395_v17 = vpop.eup %4394 }
 0xb33   :  { %v4397_v14 = vpop.eup %4396  ;;  %v2557_v10 = vmul.f32 %v4395_v17, %v4393_v16  ;;  %v7198_v16 = vld [vmem:[#allocation59_spill] sm:$0xff]  ;;  %v7199_v17 = vld [vmem:[#allocation60_spill] sm:$0xff] }
 0xb34   :  { %v2556_v15 = vmul.f32 0.0, %v4397_v14  ;;  %v7200_v14 = vld [vmem:[#allocation51_spill] sm:$0xff] }
 0xb36   :  { %v6198_v34 = vadd.f32 %v2557_v10, %v2556_v15  ;;  %v7202_v15 = vld [vmem:[#allocation61_spill] sm:$0xff]  ;;  %v7203_v10 = vld [vmem:[#allocation62_spill] sm:$0xff] }
 0xb37   :  { %v4399_v20 = vpop.eup %4398 }
 0xb38   :  { %4400 = vtanh.f32 %v6198_v34 }
 0xb45   :  { %v4401_v25 = vpop.eup %4400 }
 0xb46   :  { %v6201_v35 = vmul.f32 %v4401_v25, %v4399_v20  ;;  %v7204_v20 = vld [vmem:[#allocation53_spill] sm:$0xff]  ;;  %v7205_v25 = vmov 0.0  }
 0xb48   :  { %7188 = vst [vmem:[#allocation23_spill] sm:$0xff] %v6201_v35  ;;  %2713 = vmatmul.mubr.f32.vlgmr.msra.gmra.mxu0 %v6201_v35  ;;  %2784 = vmatmul.mubr.f32.vlgmr.msra.gmra.mxu1 %v6201_v35  ;;  %v7206_v35 = vld [vmem:[#allocation52_spill] sm:$0xff] }
 0xb49   :  { %2817 = vmatpush1.msra.mxu0 %v6010_v3  ;;  %2888 = vmatpush1.msra.mxu1 %v6012_v42 }
 0xb4a   :  { %2818 = vmatprep.subr.mxu0 %v6016_v2  ;;  %2889 = vmatprep.subr.mxu1 %v6018_v27 }
 0xb4b   :  { %2819 = vmatpush1.msra.mxu0 %v6022_v1  ;;  %2890 = vmatpush1.msra.mxu1 %v6024_v6 }
 0xb4c   :  { %2820 = vmatprep.subr.mxu0 %v6028_v23  ;;  %2891 = vmatprep.subr.mxu1 %v6030_v43 }
 0xb4d   :  { %2821 = vmatpush1.msra.mxu0 %v6034_v44  ;;  %2892 = vmatpush1.msra.mxu1 %v6036_v19 }
 0xb4e   :  { %2822 = vmatprep.subr.mxu0 %v6040_v22  ;;  %2893 = vmatprep.subr.mxu1 %v6042_v0 }
 0xb4f   :  { %2823 = vmatpush1.msra.mxu0 %v6046_v26  ;;  %2894 = vmatpush1.msra.mxu1 %v6048_v46 }
 0xb50   :  { %2824 = vmatprep.subr.mxu0 %v6052_v47  ;;  %2895 = vmatprep.subr.mxu1 %v6054_v48 }
 0xb51   :  { %2825 = vmatpush1.msra.mxu0 %v6058_v49  ;;  %2896 = vmatpush1.msra.mxu1 %v6060_v50 }
 0xb52   :  { %2826 = vmatprep.subr.mxu0 %v6064_v51  ;;  %2897 = vmatprep.subr.mxu1 %v6066_v52 }
 0xb53   :  { %2827 = vmatpush1.msra.mxu0 %v6070_v4  ;;  %2898 = vmatpush1.msra.mxu1 %v6072_v28 }
 0xb54   :  { %2828 = vmatprep.subr.mxu0 %v6076_v5  ;;  %2899 = vmatprep.subr.mxu1 %v6078_v7 }
 0xb55   :  { %2829 = vmatpush1.msra.mxu0 %v6082_v53  ;;  %2900 = vmatpush1.msra.mxu1 %v6084_v54 }
 0xb56   :  { %2830 = vmatprep.subr.mxu0 %v6088_v55  ;;  %2901 = vmatprep.subr.mxu1 %v6090_v56 }
 0xb57   :  { %2831 = vmatpush1.msra.mxu0 %v6094_v57  ;;  %2902 = vmatpush1.msra.mxu1 %v6096_v58 }
 0xb58   :  { %2832 = vmatprep.subr.mxu0 %v6100_v59  ;;  %2903 = vmatprep.subr.mxu1 %v6102_v60 }
 0xb59   :  { %2833 = vmatpush1.msra.mxu0 %v6104_v61  ;;  %2904 = vmatpush1.msra.mxu1 %v6108_v62 }
 0xb5a   :  { %2834 = vmatprep.subr.mxu0 %v6110_v63  ;;  %2905 = vmatprep.subr.mxu1 %v6112_v12 }
 0xb5b   :  { %2835 = vmatpush1.msra.mxu0 %v6116_v29  ;;  %2906 = vmatpush1.msra.mxu1 %v6118_v9 }
 0xb5c   :  { %2836 = vmatprep.subr.mxu0 %v6120_v41  ;;  %2907 = vmatprep.subr.mxu1 %v6124_v32 }
 0xb5d   :  { %2837 = vmatpush1.msra.mxu0 %v6126_v18  ;;  %2908 = vmatpush1.msra.mxu1 %v6128_v38 }
 0xb5e   :  { %2838 = vmatprep.subr.mxu0 %v6132_v39  ;;  %2909 = vmatprep.subr.mxu1 %v6134_v31 }
 0xb5f   :  { %2839 = vmatpush1.msra.mxu0 %v6138_v45  ;;  %2910 = vmatpush1.msra.mxu1 %v7189_v37 }
 0xb60   :  { %2840 = vmatprep.subr.mxu0 %v7190_v13  ;;  %2911 = vmatprep.subr.mxu1 %v7191_v8 }
 0xb61   :  { %2841 = vmatpush1.msra.mxu0 %v7192_v36  ;;  %2912 = vmatpush1.msra.mxu1 %v7193_v21 }
 0xb62   :  { %2842 = vmatprep.subr.mxu0 %v7194_v11  ;;  %2913 = vmatprep.subr.mxu1 %v7195_v24 }
 0xb63   :  { %2843 = vmatpush1.msra.mxu0 %v7196_v40  ;;  %2914 = vmatpush1.msra.mxu1 %v7197_v33  ;;  %v7207_v33 = vld [vmem:[#allocation40_spill] sm:$0xff] }
 0xb64   :  { %2844 = vmatprep.subr.mxu0 %v7198_v16  ;;  %2915 = vmatprep.subr.mxu1 %v7199_v17  ;;  %v7208_v16 = vld [vmem:[#allocation31_spill] sm:$0xff]  ;;  %v7209_v17 = vld [vmem:[#allocation30_spill] sm:$0xff] }
 0xb65   :  { %2845 = vmatpush1.msra.mxu0 %v7200_v14  ;;  %2916 = vmatpush1.msra.mxu1 %v7201_v30  ;;  %v2630_v14 = vsub.s32 0, %v7209_v17 }
 0xb66   :  { %2846 = vmatprep.subr.mxu0 %v7202_v15  ;;  %2917 = vmatprep.subr.mxu1 %v7203_v10  ;;  %v2626_v15 = vld [vmem:[%s6844_s14] sm:$0xf]  ;;  %v2634_v10 = vsub.s32 1, %v7209_v17 }
 0xb67   :  { %2847 = vmatpush1.msra.mxu0 %v7204_v20  ;;  %2880 = vmatprep.mubr.f32.mxu0 %v7205_v25  ;;  %v6276_v30 = vrot.slane %v2626_v15, %v2630_v14  ;;  %v2638_v14 = vsub.s32 2, %v7209_v17 }
 0xb68   :  { %2918 = vmatpush1.msra.mxu1 %v7206_v35  ;;  %2951 = vmatprep.mubr.f32.mxu1 %v7205_v25  ;;  %v6278_v20 = vrot.slane %v2626_v15, %v2634_v10 }
 0xb69   :  { %2984 = vmatprep.subr.mxu0 %v7207_v33  ;;  %3055 = vmatprep.subr.mxu1 %v7208_v16  ;;  %7210 = vst [vmem:[#allocation45_spill] sm:$0xff] %v6276_v30  ;;  %v2642_v16 = vsub.s32 3, %v7209_v17  ;;  %v6287_v13 = vrot.slane %v2626_v15, %v2638_v14 }
 0xb6a   :  { %7211 = vst [vmem:[#allocation47_spill] sm:$0xff] %v6278_v20 }
 0xb6b   :  { %v6283_v36 = vrot.slane %v2626_v15, %v2642_v16 }
 0xc08   :  { %v2714_v40 = vpop.f32.mrf.mxu0  ;;  %v2785_v11 = vpop.f32.mrf.mxu1 }
 0xc09   :  { %v2715_v35 = vadd.f32 %v2714_v40, %v6276_v30 }
 0xc0a   :  { %v2716_v25 = vpop.f32.mrf.mxu0  ;;  %v2787_v8 = vpop.f32.mrf.mxu1 }
 0xc0b   :  { %v4047_v24 = vmul.f32 -1.442695, %v2715_v35  ;;  %v2717_v33 = vadd.f32 %v2716_v25, %v6278_v20  ;;  %v2788_v10 = vadd.f32 %v2787_v8, %v6283_v36  ;;  %v2786_v35 = vadd.f32 %v2785_v11, %v6287_v13 }
 0xc0d   :  { %4402 = vpow2.f32 %v4047_v24  ;;  %v4048_v21 = vmul.f32 -1.442695, %v2717_v33  ;;  %v4049_v40 = vmul.f32 -1.442695, %v2788_v10  ;;  %v7217_v10 = vld [vmem:[#allocation43_spill] sm:$0xff] }
 0xc0f   :  { %4404 = vpow2.f32 %v4048_v21 }
 0xc10   :  { %4406 = vpow2.f32 %v4049_v40  ;;  %v7218_v40 = vld [vmem:[#allocation34_spill] sm:$0xff] }
 0xc1a   :  { %v4403_v30 = vpop.eup %4402 }
 0xc1b   :  { %v2793_v25 = vadd.f32 1.0, %v4403_v30 }
 0xc1c   :  { %v4405_v20 = vpop.eup %4404 }
 0xc1d   :  { %4408 = vrcp.f32 %v2793_v25  ;;  %v2799_v24 = vadd.f32 1.0, %v4405_v20  ;;  %v4407_v21 = vpop.eup %4406  ;;  %v7216_v20 = vld [vmem:[#allocation33_spill] sm:$0xff]  ;;  %v7220_v25 = vld [vmem:[#allocation58_spill] sm:$0xff] }
 0xc1e   :  { %4410 = vtanh.f32 %v2786_v35  ;;  %v2806_v17 = vadd.f32 1.0, %v4407_v21  ;;  %v7219_v35 = vld [vmem:[#allocation24_spill] sm:$0xff] }
 0xc1f   :  { %4412 = vrcp.f32 %v2799_v24  ;;  %v7221_v24 = vld [vmem:[#allocation49_spill] sm:$0xff]  ;;  %v7222_v21 = vld [vmem:[#allocation48_spill] sm:$0xff] }
 0xc20   :  { %4414 = vrcp.f32 %v2806_v17  ;;  %v7225_v17 = vld [vmem:[#allocation51_spill] sm:$0xff] }
 0xc2a   :  { %v4409_v33 = vpop.eup %4408 }
 0xc2b   :  { %v4411_v16 = vpop.eup %4410 }
 0xc2c   :  { %v4413_v37 = vpop.eup %4412  ;;  %v2810_v45 = vmul.f32 %v4411_v16, %v4409_v33  ;;  %v7223_v33 = vld [vmem:[#allocation59_spill] sm:$0xff]  ;;  %v7224_v16 = vld [vmem:[#allocation60_spill] sm:$0xff] }
 0xc2d   :  { %v2809_v8 = vmul.f32 %v4413_v37, %v6198_v34  ;;  %v4415_v11 = vpop.eup %4414  ;;  %v7214_v34 = vld [vmem:[#allocation32_spill] sm:$0xff]  ;;  %v7215_v37 = vld [vmem:[#allocation42_spill] sm:$0xff] }
 0xc2f   :  { %v6291_v15 = vadd.f32 %v2810_v45, %v2809_v8  ;;  %v7213_v45 = vld [vmem:[#allocation41_spill] sm:$0xff]  ;;  %v7226_v8 = vld [vmem:[#allocation50_spill] sm:$0xff] }
 0xc31   :  { %4416 = vtanh.f32 %v6291_v15 }
 0xc3e   :  { %v4417_v30 = vpop.eup %4416 }
 0xc3f   :  { %v6294_v14 = vmul.f32 %v4417_v30, %v4415_v11  ;;  %v7227_v11 = vld [vmem:[#allocation61_spill] sm:$0xff]  ;;  %v7228_v30 = vld [vmem:[#allocation62_spill] sm:$0xff] }
 0xc41   :  { %7212 = vst [vmem:[#allocation44_spill] sm:$0xff] %v6294_v14  ;;  %2881 = vmatmul.mubr.f32.vlgmr.msra.gmra.mxu0 %v6294_v14  ;;  %2952 = vmatmul.mubr.f32.vlgmr.msra.gmra.mxu1 %v6294_v14  ;;  %v7229_v14 = vld [vmem:[#allocation53_spill] sm:$0xff] }
 0xc42   :  { %2985 = vmatpush1.msra.mxu0 %v6010_v3  ;;  %3056 = vmatpush1.msra.mxu1 %v6012_v42 }
 0xc43   :  { %2986 = vmatprep.subr.mxu0 %v6016_v2  ;;  %3057 = vmatprep.subr.mxu1 %v6018_v27 }
 0xc44   :  { %2987 = vmatpush1.msra.mxu0 %v6022_v1  ;;  %3058 = vmatpush1.msra.mxu1 %v6024_v6 }
 0xc45   :  { %2988 = vmatprep.subr.mxu0 %v6028_v23  ;;  %3059 = vmatprep.subr.mxu1 %v6030_v43 }
 0xc46   :  { %2989 = vmatpush1.msra.mxu0 %v6034_v44  ;;  %3060 = vmatpush1.msra.mxu1 %v6036_v19 }
 0xc47   :  { %2990 = vmatprep.subr.mxu0 %v6040_v22  ;;  %3061 = vmatprep.subr.mxu1 %v6042_v0 }
 0xc48   :  { %2991 = vmatpush1.msra.mxu0 %v6046_v26  ;;  %3062 = vmatpush1.msra.mxu1 %v6048_v46 }
 0xc49   :  { %2992 = vmatprep.subr.mxu0 %v6052_v47  ;;  %3063 = vmatprep.subr.mxu1 %v6054_v48 }
 0xc4a   :  { %2993 = vmatpush1.msra.mxu0 %v6058_v49  ;;  %3064 = vmatpush1.msra.mxu1 %v6060_v50 }
 0xc4b   :  { %2994 = vmatprep.subr.mxu0 %v6064_v51  ;;  %3065 = vmatprep.subr.mxu1 %v6066_v52 }
 0xc4c   :  { %2995 = vmatpush1.msra.mxu0 %v6070_v4  ;;  %3066 = vmatpush1.msra.mxu1 %v6072_v28 }
 0xc4d   :  { %2996 = vmatprep.subr.mxu0 %v6076_v5  ;;  %3067 = vmatprep.subr.mxu1 %v6078_v7 }
 0xc4e   :  { %2997 = vmatpush1.msra.mxu0 %v6082_v53  ;;  %3068 = vmatpush1.msra.mxu1 %v6084_v54 }
 0xc4f   :  { %2998 = vmatprep.subr.mxu0 %v6088_v55  ;;  %3069 = vmatprep.subr.mxu1 %v6090_v56 }
 0xc50   :  { %2999 = vmatpush1.msra.mxu0 %v6094_v57  ;;  %3070 = vmatpush1.msra.mxu1 %v6096_v58 }
 0xc51   :  { %3000 = vmatprep.subr.mxu0 %v6100_v59  ;;  %3071 = vmatprep.subr.mxu1 %v6102_v60 }
 0xc52   :  { %3001 = vmatpush1.msra.mxu0 %v6104_v61  ;;  %3072 = vmatpush1.msra.mxu1 %v6108_v62 }
 0xc53   :  { %3002 = vmatprep.subr.mxu0 %v6110_v63  ;;  %3073 = vmatprep.subr.mxu1 %v6112_v12 }
 0xc54   :  { %3003 = vmatpush1.msra.mxu0 %v6116_v29  ;;  %3074 = vmatpush1.msra.mxu1 %v6118_v9 }
 0xc55   :  { %3004 = vmatprep.subr.mxu0 %v6120_v41  ;;  %3075 = vmatprep.subr.mxu1 %v6124_v32 }
 0xc56   :  { %3005 = vmatpush1.msra.mxu0 %v6126_v18  ;;  %3076 = vmatpush1.msra.mxu1 %v6128_v38 }
 0xc57   :  { %3006 = vmatprep.subr.mxu0 %v6132_v39  ;;  %3077 = vmatprep.subr.mxu1 %v6134_v31 }
 0xc58   :  { %3007 = vmatpush1.msra.mxu0 %v7213_v45  ;;  %3078 = vmatpush1.msra.mxu1 %v7214_v34 }
 0xc59   :  { %3008 = vmatprep.subr.mxu0 %v7215_v37  ;;  %3079 = vmatprep.subr.mxu1 %v7216_v20 }
 0xc5a   :  { %3009 = vmatpush1.msra.mxu0 %v7217_v10  ;;  %3080 = vmatpush1.msra.mxu1 %v7218_v40 }
 0xc5b   :  { %3010 = vmatprep.subr.mxu0 %v7219_v35  ;;  %3081 = vmatprep.subr.mxu1 %v7220_v25  ;;  %v7230_v35 = vmov 0.0   ;;  %v7231_v25 = vld [vmem:[#allocation52_spill] sm:$0xff] }
 0xc5c   :  { %3011 = vmatpush1.msra.mxu0 %v7221_v24  ;;  %3082 = vmatpush1.msra.mxu1 %v7222_v21  ;;  %v7232_v21 = vld [vmem:[#allocation40_spill] sm:$0xff] }
 0xc5d   :  { %3012 = vmatprep.subr.mxu0 %v7223_v33  ;;  %3083 = vmatprep.subr.mxu1 %v7224_v16  ;;  %v7233_v33 = vld [vmem:[#allocation31_spill] sm:$0xff] }
 0xc5e   :  { %3013 = vmatpush1.msra.mxu0 %v7225_v17  ;;  %3084 = vmatpush1.msra.mxu1 %v7226_v8  ;;  %v7234_v17 = vld [vmem:[#allocation45_spill] sm:$0xff] }
 0xc5f   :  { %3014 = vmatprep.subr.mxu0 %v7227_v11  ;;  %3085 = vmatprep.subr.mxu1 %v7228_v30  ;;  %v7235_v11 = vld [vmem:[#allocation47_spill] sm:$0xff] }
 0xc60   :  { %3015 = vmatpush1.msra.mxu0 %v7229_v14  ;;  %3048 = vmatprep.mubr.f32.mxu0 %v7230_v35 }
 0xc61   :  { %3086 = vmatpush1.msra.mxu1 %v7231_v25  ;;  %3119 = vmatprep.mubr.f32.mxu1 %v7230_v35 }
 0xc62   :  { %3152 = vmatprep.subr.mxu0 %v7232_v21  ;;  %3223 = vmatprep.subr.mxu1 %v7233_v33 }
 0xd01   :  { %v2882_v16 = vpop.f32.mrf.mxu0  ;;  %v2953_v30 = vpop.f32.mrf.mxu1 }
 0xd02   :  { %v2883_v24 = vadd.f32 %v2882_v16, %v7234_v17  ;;  %v2954_v21 = vadd.f32 %v2953_v30, %v6287_v13  ;;  %v7243_v30 = vld [vmem:[#allocation58_spill] sm:$0xff] }
 0xd03   :  { %v2884_v8 = vpop.f32.mrf.mxu0  ;;  %v2955_v20 = vpop.f32.mrf.mxu1 }
 0xd04   :  { %v4050_v40 = vmul.f32 -1.442695, %v2883_v24  ;;  %v2885_v10 = vadd.f32 %v2884_v8, %v7235_v11  ;;  %v2956_v25 = vadd.f32 %v2955_v20, %v6283_v36 }
 0xd06   :  { %4418 = vpow2.f32 %v4050_v40  ;;  %v4051_v14 = vmul.f32 -1.442695, %v2885_v10  ;;  %v4052_v37 = vmul.f32 -1.442695, %v2956_v25 }
 0xd08   :  { %4420 = vpow2.f32 %v4051_v14 }
 0xd09   :  { %4422 = vpow2.f32 %v4052_v37 }
 0xd13   :  { %v4419_v35 = vpop.eup %4418 }
 0xd14   :  { %v2961_v34 = vadd.f32 1.0, %v4419_v35 }
 0xd15   :  { %v4421_v33 = vpop.eup %4420 }
 0xd16   :  { %4424 = vrcp.f32 %v2961_v34  ;;  %v2967_v16 = vadd.f32 1.0, %v4421_v33  ;;  %v4423_v24 = vpop.eup %4422  ;;  %v7238_v34 = vld [vmem:[#allocation42_spill] sm:$0xff]  ;;  %v7240_v33 = vld [vmem:[#allocation43_spill] sm:$0xff] }
 0xd17   :  { %4426 = vtanh.f32 %v2954_v21  ;;  %v2974_v10 = vadd.f32 1.0, %v4423_v24  ;;  %v7239_v21 = vld [vmem:[#allocation33_spill] sm:$0xff]  ;;  %v7245_v24 = vld [vmem:[#allocation48_spill] sm:$0xff] }
 0xd18   :  { %4428 = vrcp.f32 %v2967_v16  ;;  %v7244_v16 = vld [vmem:[#allocation49_spill] sm:$0xff] }
 0xd19   :  { %4430 = vrcp.f32 %v2974_v10  ;;  %v7248_v10 = vld [vmem:[#allocation51_spill] sm:$0xff] }
 0xd23   :  { %v4425_v8 = vpop.eup %4424 }
 0xd24   :  { %v4427_v40 = vpop.eup %4426 }
 0xd25   :  { %v4429_v11 = vpop.eup %4428  ;;  %v2978_v14 = vmul.f32 %v4427_v40, %v4425_v8  ;;  %v7246_v8 = vld [vmem:[#allocation59_spill] sm:$0xff]  ;;  %v7247_v40 = vld [vmem:[#allocation60_spill] sm:$0xff] }
 0xd26   :  { %v2977_v17 = vmul.f32 %v4429_v11, %v6291_v15  ;;  %v4431_v35 = vpop.eup %4430  ;;  %v7237_v15 = vld [vmem:[#allocation32_spill] sm:$0xff] }
 0xd27   :  { %v7242_v11 = vld [vmem:[#allocation24_spill] sm:$0xff] }
 0xd28   :  { %v6369_v20 = vadd.f32 %v2978_v14, %v2977_v17  ;;  %v7241_v17 = vld [vmem:[#allocation34_spill] sm:$0xff] }
 0xd29   :  { %v7249_v14 = vld [vmem:[#allocation50_spill] sm:$0xff] }
 0xd2a   :  { %4432 = vtanh.f32 %v6369_v20 }
 0xd37   :  { %v4433_v25 = vpop.eup %4432 }
 0xd38   :  { %v6372_v37 = vmul.f32 %v4433_v25, %v4431_v35  ;;  %v7250_v35 = vld [vmem:[#allocation61_spill] sm:$0xff]  ;;  %v7251_v25 = vld [vmem:[#allocation62_spill] sm:$0xff] }
 0xd3a   :  { %7236 = vst [vmem:[#allocation46_spill] sm:$0xff] %v6372_v37  ;;  %3049 = vmatmul.mubr.f32.vlgmr.msra.gmra.mxu0 %v6372_v37  ;;  %3120 = vmatmul.mubr.f32.vlgmr.msra.gmra.mxu1 %v6372_v37  ;;  %v7252_v37 = vld [vmem:[#allocation53_spill] sm:$0xff] }
 0xd3b   :  { %3153 = vmatpush1.msra.mxu0 %v6010_v3  ;;  %3224 = vmatpush1.msra.mxu1 %v6012_v42 }
 0xd3c   :  { %3154 = vmatprep.subr.mxu0 %v6016_v2  ;;  %3225 = vmatprep.subr.mxu1 %v6018_v27 }
 0xd3d   :  { %3155 = vmatpush1.msra.mxu0 %v6022_v1  ;;  %3226 = vmatpush1.msra.mxu1 %v6024_v6 }
 0xd3e   :  { %3156 = vmatprep.subr.mxu0 %v6028_v23  ;;  %3227 = vmatprep.subr.mxu1 %v6030_v43 }
 0xd3f   :  { %3157 = vmatpush1.msra.mxu0 %v6034_v44  ;;  %3228 = vmatpush1.msra.mxu1 %v6036_v19 }
 0xd40   :  { %3158 = vmatprep.subr.mxu0 %v6040_v22  ;;  %3229 = vmatprep.subr.mxu1 %v6042_v0 }
 0xd41   :  { %3159 = vmatpush1.msra.mxu0 %v6046_v26  ;;  %3230 = vmatpush1.msra.mxu1 %v6048_v46 }
 0xd42   :  { %3160 = vmatprep.subr.mxu0 %v6052_v47  ;;  %3231 = vmatprep.subr.mxu1 %v6054_v48 }
 0xd43   :  { %3161 = vmatpush1.msra.mxu0 %v6058_v49  ;;  %3232 = vmatpush1.msra.mxu1 %v6060_v50 }
 0xd44   :  { %3162 = vmatprep.subr.mxu0 %v6064_v51  ;;  %3233 = vmatprep.subr.mxu1 %v6066_v52 }
 0xd45   :  { %3163 = vmatpush1.msra.mxu0 %v6070_v4  ;;  %3234 = vmatpush1.msra.mxu1 %v6072_v28 }
 0xd46   :  { %3164 = vmatprep.subr.mxu0 %v6076_v5  ;;  %3235 = vmatprep.subr.mxu1 %v6078_v7 }
 0xd47   :  { %3165 = vmatpush1.msra.mxu0 %v6082_v53  ;;  %3236 = vmatpush1.msra.mxu1 %v6084_v54 }
 0xd48   :  { %3166 = vmatprep.subr.mxu0 %v6088_v55  ;;  %3237 = vmatprep.subr.mxu1 %v6090_v56 }
 0xd49   :  { %3167 = vmatpush1.msra.mxu0 %v6094_v57  ;;  %3238 = vmatpush1.msra.mxu1 %v6096_v58 }
 0xd4a   :  { %3168 = vmatprep.subr.mxu0 %v6100_v59  ;;  %3239 = vmatprep.subr.mxu1 %v6102_v60 }
 0xd4b   :  { %3169 = vmatpush1.msra.mxu0 %v6104_v61  ;;  %3240 = vmatpush1.msra.mxu1 %v6108_v62 }
 0xd4c   :  { %3170 = vmatprep.subr.mxu0 %v6110_v63  ;;  %3241 = vmatprep.subr.mxu1 %v6112_v12 }
 0xd4d   :  { %3171 = vmatpush1.msra.mxu0 %v6116_v29  ;;  %3242 = vmatpush1.msra.mxu1 %v6118_v9 }
 0xd4e   :  { %3172 = vmatprep.subr.mxu0 %v6120_v41  ;;  %3243 = vmatprep.subr.mxu1 %v6124_v32 }
 0xd4f   :  { %3173 = vmatpush1.msra.mxu0 %v6126_v18  ;;  %3244 = vmatpush1.msra.mxu1 %v6128_v38 }
 0xd50   :  { %3174 = vmatprep.subr.mxu0 %v6132_v39  ;;  %3245 = vmatprep.subr.mxu1 %v6134_v31 }
 0xd51   :  { %3175 = vmatpush1.msra.mxu0 %v7213_v45  ;;  %3246 = vmatpush1.msra.mxu1 %v7237_v15 }
 0xd52   :  { %3176 = vmatprep.subr.mxu0 %v7238_v34  ;;  %3247 = vmatprep.subr.mxu1 %v7239_v21 }
 0xd53   :  { %3177 = vmatpush1.msra.mxu0 %v7240_v33  ;;  %3248 = vmatpush1.msra.mxu1 %v7241_v17 }
 0xd54   :  { %3178 = vmatprep.subr.mxu0 %v7242_v11  ;;  %3249 = vmatprep.subr.mxu1 %v7243_v30  ;;  %v7253_v11 = vmov 0.0   ;;  %v7254_v30 = vld [vmem:[#allocation52_spill] sm:$0xff] }
 0xd55   :  { %3179 = vmatpush1.msra.mxu0 %v7244_v16  ;;  %3250 = vmatpush1.msra.mxu1 %v7245_v24  ;;  %v7255_v24 = vld [vmem:[#allocation40_spill] sm:$0xff] }
 0xd56   :  { %3180 = vmatprep.subr.mxu0 %v7246_v8  ;;  %3251 = vmatprep.subr.mxu1 %v7247_v40  ;;  %v7256_v8 = vld [vmem:[#allocation31_spill] sm:$0xff] }
 0xd57   :  { %3181 = vmatpush1.msra.mxu0 %v7248_v10  ;;  %3252 = vmatpush1.msra.mxu1 %v7249_v14  ;;  %v7257_v10 = vld [vmem:[#allocation45_spill] sm:$0xff] }
 0xd58   :  { %3182 = vmatprep.subr.mxu0 %v7250_v35  ;;  %3253 = vmatprep.subr.mxu1 %v7251_v25  ;;  %v7258_v35 = vld [vmem:[#allocation47_spill] sm:$0xff] }
 0xd59   :  { %3183 = vmatpush1.msra.mxu0 %v7252_v37  ;;  %3216 = vmatprep.mubr.f32.mxu0 %v7253_v11 }
 0xd5a   :  { %3254 = vmatpush1.msra.mxu1 %v7254_v30  ;;  %3287 = vmatprep.mubr.f32.mxu1 %v7253_v11 }
 0xd5b   :  { %3320 = vmatprep.subr.mxu0 %v7255_v24  ;;  %3391 = vmatprep.subr.mxu1 %v7256_v8 }
 0xdfa   :  { %v3050_v40 = vpop.f32.mrf.mxu0  ;;  %v3121_v25 = vpop.f32.mrf.mxu1 }
 0xdfb   :  { %v3051_v16 = vadd.f32 %v3050_v40, %v7257_v10  ;;  %v3122_v24 = vadd.f32 %v3121_v25, %v6287_v13  ;;  %v6539_v25 = vld [vmem:[#allocation12 + $0x1f0] sm:$0xff] }
 0xdfc   :  { %v3052_v14 = vpop.f32.mrf.mxu0  ;;  %v3123_v21 = vpop.f32.mrf.mxu1 }
 0xdfd   :  { %v4053_v17 = vmul.f32 -1.442695, %v3051_v16  ;;  %v3053_v33 = vadd.f32 %v3052_v14, %v7258_v35  ;;  %v3124_v30 = vadd.f32 %v3123_v21, %v6283_v36 }
 0xdff   :  { %4434 = vpow2.f32 %v4053_v17  ;;  %v4054_v37 = vmul.f32 -1.442695, %v3053_v33  ;;  %v4055_v34 = vmul.f32 -1.442695, %v3124_v30 }
 0xe01   :  { %4436 = vpow2.f32 %v4054_v37 }
 0xe02   :  { %4438 = vpow2.f32 %v4055_v34 }
 0xe0c   :  { %v4435_v11 = vpop.eup %4434 }
 0xe0d   :  { %v3129_v15 = vadd.f32 1.0, %v4435_v11 }
 0xe0e   :  { %v4437_v8 = vpop.eup %4436 }
 0xe0f   :  { %4440 = vrcp.f32 %v3129_v15  ;;  %v3135_v40 = vadd.f32 1.0, %v4437_v8  ;;  %v4439_v16 = vpop.eup %4438  ;;  %v6545_v8 = vld [vmem:[#allocation12 + $0x1d8] sm:$0xff] }
 0xe10   :  { %4442 = vtanh.f32 %v3122_v24  ;;  %v3142_v33 = vadd.f32 1.0, %v4439_v16  ;;  %v6542_v24 = vld [vmem:[#allocation12 + $0x1c8] sm:$0xff]  ;;  %v6551_v16 = vld [vmem:[#allocation12 + $0x1d0] sm:$0xff] }
 0xe11   :  { %4444 = vrcp.f32 %v3135_v40  ;;  %v6548_v40 = vld [vmem:[#allocation12 + $0x1c0] sm:$0xff] }
 0xe12   :  { %4446 = vrcp.f32 %v3142_v33  ;;  %v6560_v33 = vld [vmem:[#allocation12 + $0x1a0] sm:$0xff] }
 0xe1c   :  { %v4441_v14 = vpop.eup %4440 }
 0xe1d   :  { %v4443_v17 = vpop.eup %4442 }
 0xe1e   :  { %v4445_v35 = vpop.eup %4444  ;;  %v3146_v37 = vmul.f32 %v4443_v17, %v4441_v14  ;;  %v6554_v14 = vld [vmem:[#allocation12 + $0x1a8] sm:$0xff]  ;;  %v6557_v17 = vld [vmem:[#allocation12 + $0x1b8] sm:$0xff] }
 0xe1f   :  { %v3145_v10 = vmul.f32 %v4445_v35, %v6369_v20  ;;  %v4447_v11 = vpop.eup %4446  ;;  %v6536_v35 = vld [vmem:[#allocation12 + $0x1e0] sm:$0xff] }
 0xe21   :  { %v6447_v21 = vadd.f32 %v3146_v37, %v3145_v10  ;;  %v6563_v37 = vld [vmem:[#allocation12 + $0x1b0] sm:$0xff] }
 0xe23   :  { %4448 = vtanh.f32 %v6447_v21 }
 0xe30   :  { %v4449_v30 = vpop.eup %4448 }
 0xe31   :  { %v6450_v34 = vmul.f32 %v4449_v30, %v4447_v11  ;;  %v6569_v11 = vld [vmem:[#allocation12 + $0x198] sm:$0xff]  ;;  %v6572_v30 = vld [vmem:[#allocation12 + $0x180] sm:$0xff] }
 0xe33   :  { %7259 = vst [vmem:[#allocation25_spill] sm:$0xff] %v6450_v34  ;;  %3217 = vmatmul.mubr.f32.vlgmr.msra.gmra.mxu0 %v6450_v34  ;;  %3288 = vmatmul.mubr.f32.vlgmr.msra.gmra.mxu1 %v6450_v34  ;;  %v6701_v34 = vld [vmem:[#allocation12 + $0x38] sm:$0xff] }
 0xe34   :  { %3321 = vmatpush1.msra.mxu0 %v6010_v3  ;;  %3392 = vmatpush1.msra.mxu1 %v6012_v42  ;;  %v7260_v3 = vld [vmem:[#allocation32_spill] sm:$0xff]  ;;  %v7261_v42 = vld [vmem:[#allocation42_spill] sm:$0xff]  ;;  %7291 = vst [vmem:[#allocation63_spill] sm:$0xff] %v6701_v34 }
 0xe35   :  { %3322 = vmatprep.subr.mxu0 %v6016_v2  ;;  %3393 = vmatprep.subr.mxu1 %v6018_v27  ;;  %v7262_v2 = vld [vmem:[#allocation33_spill] sm:$0xff]  ;;  %v7263_v27 = vld [vmem:[#allocation43_spill] sm:$0xff] }
 0xe36   :  { %3323 = vmatpush1.msra.mxu0 %v6022_v1  ;;  %3394 = vmatpush1.msra.mxu1 %v6024_v6  ;;  %v7264_v1 = vld [vmem:[#allocation34_spill] sm:$0xff]  ;;  %v7265_v6 = vld [vmem:[#allocation24_spill] sm:$0xff] }
 0xe37   :  { %3324 = vmatprep.subr.mxu0 %v6028_v23  ;;  %3395 = vmatprep.subr.mxu1 %v6030_v43  ;;  %v7266_v23 = vld [vmem:[#allocation58_spill] sm:$0xff]  ;;  %v7267_v43 = vld [vmem:[#allocation49_spill] sm:$0xff] }
 0xe38   :  { %3325 = vmatpush1.msra.mxu0 %v6034_v44  ;;  %3396 = vmatpush1.msra.mxu1 %v6036_v19  ;;  %v7268_v44 = vld [vmem:[#allocation48_spill] sm:$0xff]  ;;  %v7269_v19 = vld [vmem:[#allocation59_spill] sm:$0xff] }
 0xe39   :  { %3326 = vmatprep.subr.mxu0 %v6040_v22  ;;  %3397 = vmatprep.subr.mxu1 %v6042_v0  ;;  %v7270_v22 = vld [vmem:[#allocation60_spill] sm:$0xff]  ;;  %v7271_v0 = vld [vmem:[#allocation51_spill] sm:$0xff] }
 0xe3a   :  { %3327 = vmatpush1.msra.mxu0 %v6046_v26  ;;  %3398 = vmatpush1.msra.mxu1 %v6048_v46  ;;  %v7272_v26 = vld [vmem:[#allocation50_spill] sm:$0xff]  ;;  %v7273_v46 = vld [vmem:[#allocation61_spill] sm:$0xff] }
 0xe3b   :  { %3328 = vmatprep.subr.mxu0 %v6052_v47  ;;  %3399 = vmatprep.subr.mxu1 %v6054_v48  ;;  %v7274_v47 = vld [vmem:[#allocation62_spill] sm:$0xff]  ;;  %v7275_v48 = vld [vmem:[#allocation53_spill] sm:$0xff] }
 0xe3c   :  { %3329 = vmatpush1.msra.mxu0 %v6058_v49  ;;  %3400 = vmatpush1.msra.mxu1 %v6060_v50  ;;  %v7276_v49 = vmov 0.0   ;;  %v7277_v50 = vld [vmem:[#allocation52_spill] sm:$0xff] }
 0xe3d   :  { %3330 = vmatprep.subr.mxu0 %v6064_v51  ;;  %3401 = vmatprep.subr.mxu1 %v6066_v52  ;;  %v6518_v51 = vld [vmem:[#allocation12 + $0x1e8] sm:$0xff]  ;;  %v6521_v52 = vld [vmem:[#allocation12 + $0x1f8] sm:$0xff] }
 0xe3e   :  { %3331 = vmatpush1.msra.mxu0 %v6070_v4  ;;  %3402 = vmatpush1.msra.mxu1 %v6072_v28  ;;  %v7278_v28 = vld [vmem:[#allocation45_spill] sm:$0xff] }
 0xe3f   :  { %3332 = vmatprep.subr.mxu0 %v6076_v5  ;;  %3403 = vmatprep.subr.mxu1 %v6078_v7 }
 0xe40   :  { %3333 = vmatpush1.msra.mxu0 %v6082_v53  ;;  %3404 = vmatpush1.msra.mxu1 %v6084_v54  ;;  %v7279_v54 = vld [vmem:[#allocation47_spill] sm:$0xff] }
 0xe41   :  { %3334 = vmatprep.subr.mxu0 %v6088_v55  ;;  %3405 = vmatprep.subr.mxu1 %v6090_v56 }
 0xe42   :  { %3335 = vmatpush1.msra.mxu0 %v6094_v57  ;;  %3406 = vmatpush1.msra.mxu1 %v6096_v58 }
 0xe43   :  { %3336 = vmatprep.subr.mxu0 %v6100_v59  ;;  %3407 = vmatprep.subr.mxu1 %v6102_v60 }
 0xe44   :  { %3337 = vmatpush1.msra.mxu0 %v6104_v61  ;;  %3408 = vmatpush1.msra.mxu1 %v6108_v62 }
 0xe45   :  { %3338 = vmatprep.subr.mxu0 %v6110_v63  ;;  %3409 = vmatprep.subr.mxu1 %v6112_v12 }
 0xe46   :  { %3339 = vmatpush1.msra.mxu0 %v6116_v29  ;;  %3410 = vmatpush1.msra.mxu1 %v6118_v9 }
 0xe47   :  { %3340 = vmatprep.subr.mxu0 %v6120_v41  ;;  %3411 = vmatprep.subr.mxu1 %v6124_v32 }
 0xe48   :  { %3341 = vmatpush1.msra.mxu0 %v6126_v18  ;;  %3412 = vmatpush1.msra.mxu1 %v6128_v38 }
 0xe49   :  { %3342 = vmatprep.subr.mxu0 %v6132_v39  ;;  %3413 = vmatprep.subr.mxu1 %v6134_v31 }
 0xe4a   :  { %3343 = vmatpush1.msra.mxu0 %v7213_v45  ;;  %3414 = vmatpush1.msra.mxu1 %v7260_v3  ;;  %v6575_v3 = vld [vmem:[#allocation12 + $0x190] sm:$0xff] }
 0xe4b   :  { %3344 = vmatprep.subr.mxu0 %v7261_v42  ;;  %3415 = vmatprep.subr.mxu1 %v7262_v2  ;;  %v6578_v42 = vld [vmem:[#allocation12 + $0x168] sm:$0xff]  ;;  %v6581_v2 = vld [vmem:[#allocation12 + $0x178] sm:$0xff] }
 0xe4c   :  { %3345 = vmatpush1.msra.mxu0 %v7263_v27  ;;  %3416 = vmatpush1.msra.mxu1 %v7264_v1  ;;  %v6584_v27 = vld [vmem:[#allocation12 + $0x160] sm:$0xff]  ;;  %v6587_v1 = vld [vmem:[#allocation12 + $0x170] sm:$0xff] }
 0xe4d   :  { %3346 = vmatprep.subr.mxu0 %v7265_v6  ;;  %3417 = vmatprep.subr.mxu1 %v7266_v23  ;;  %v6590_v6 = vld [vmem:[#allocation12 + $0x148] sm:$0xff]  ;;  %v6593_v23 = vld [vmem:[#allocation12 + $0x158] sm:$0xff] }
 0xe4e   :  { %3347 = vmatpush1.msra.mxu0 %v7267_v43  ;;  %3418 = vmatpush1.msra.mxu1 %v7268_v44  ;;  %v6596_v43 = vld [vmem:[#allocation12 + $0x140] sm:$0xff]  ;;  %v6599_v44 = vld [vmem:[#allocation12 + $0x150] sm:$0xff] }
 0xe4f   :  { %3348 = vmatprep.subr.mxu0 %v7269_v19  ;;  %3419 = vmatprep.subr.mxu1 %v7270_v22  ;;  %v6602_v19 = vld [vmem:[#allocation12 + $0x128] sm:$0xff]  ;;  %v6605_v22 = vld [vmem:[#allocation12 + $0x138] sm:$0xff] }
 0xe50   :  { %3349 = vmatpush1.msra.mxu0 %v7271_v0  ;;  %3420 = vmatpush1.msra.mxu1 %v7272_v26  ;;  %v6608_v0 = vld [vmem:[#allocation12 + $0x120] sm:$0xff]  ;;  %v6611_v26 = vld [vmem:[#allocation12 + $0x130] sm:$0xff] }
 0xe51   :  { %3350 = vmatprep.subr.mxu0 %v7273_v46  ;;  %3421 = vmatprep.subr.mxu1 %v7274_v47  ;;  %v6614_v46 = vld [vmem:[#allocation12 + $0x108] sm:$0xff]  ;;  %v6617_v47 = vld [vmem:[#allocation12 + $0x118] sm:$0xff] }
 0xe52   :  { %3351 = vmatpush1.msra.mxu0 %v7275_v48  ;;  %3384 = vmatprep.mubr.f32.mxu0 %v7276_v49  ;;  %v6620_v48 = vld [vmem:[#allocation12 + $0x100] sm:$0xff] }
 0xe53   :  { %3422 = vmatpush1.msra.mxu1 %v7277_v50  ;;  %3455 = vmatprep.mubr.f32.mxu1 %v7276_v49  ;;  %v6623_v50 = vld [vmem:[#allocation12 + $0x110] sm:$0xff] }
 0xe54   :  { %3488 = vmatprep.subr.mxu0 %v6518_v51  ;;  %3559 = vmatprep.subr.mxu1 %v6521_v52 }
 0xef3   :  { %v3218_v4 = vpop.f32.mrf.mxu0  ;;  %v3289_v56 = vpop.f32.mrf.mxu1 }
 0xef4   :  { %v3219_v5 = vadd.f32 %v3218_v4, %v7278_v28  ;;  %v3290_v62 = vadd.f32 %v3289_v56, %v6287_v13  ;;  %v6626_v4 = vld [vmem:[#allocation12 + $0xe8] sm:$0xff]  ;;  %v6641_v56 = vld [vmem:[#allocation12 + $0xd8] sm:$0xff] }
 0xef5   :  { %v3220_v7 = vpop.f32.mrf.mxu0  ;;  %v3291_v58 = vpop.f32.mrf.mxu1 }
 0xef6   :  { %v4056_v53 = vmul.f32 -1.442695, %v3219_v5  ;;  %v3221_v55 = vadd.f32 %v3220_v7, %v7279_v54  ;;  %v3292_v59 = vadd.f32 %v3291_v58, %v6283_v36  ;;  %v6629_v5 = vld [vmem:[#allocation12 + $0xf8] sm:$0xff]  ;;  %v6632_v7 = vld [vmem:[#allocation12 + $0xe0] sm:$0xff]  ;;  %v6647_v58 = vld [vmem:[#allocation12 + $0xd0] sm:$0xff] }
 0xef8   :  { %4450 = vpow2.f32 %v4056_v53  ;;  %v4057_v57 = vmul.f32 -1.442695, %v3221_v55  ;;  %v4058_v60 = vmul.f32 -1.442695, %v3292_v59  ;;  %v6635_v53 = vld [vmem:[#allocation12 + $0xf0] sm:$0xff]  ;;  %v6638_v55 = vld [vmem:[#allocation12 + $0xc8] sm:$0xff] }
 0xef9   :  { %v6650_v59 = vld [vmem:[#allocation12 + $0xa8] sm:$0xff] }
 0xefa   :  { %4452 = vpow2.f32 %v4057_v57  ;;  %v6644_v57 = vld [vmem:[#allocation12 + $0xc0] sm:$0xff] }
 0xefb   :  { %4454 = vpow2.f32 %v4058_v60  ;;  %v6653_v60 = vld [vmem:[#allocation12 + $0xb8] sm:$0xff] }
 0xf05   :  { %v4451_v61 = vpop.eup %4450 }
 0xf06   :  { %v3297_v63 = vadd.f32 1.0, %v4451_v61  ;;  %v6656_v61 = vld [vmem:[#allocation12 + $0xa0] sm:$0xff] }
 0xf07   :  { %v4453_v12 = vpop.eup %4452 }
 0xf08   :  { %4456 = vrcp.f32 %v3297_v63  ;;  %v3303_v29 = vadd.f32 1.0, %v4453_v12  ;;  %v4455_v9 = vpop.eup %4454  ;;  %v6662_v63 = vld [vmem:[#allocation12 + $0x88] sm:$0xff]  ;;  %v6665_v12 = vld [vmem:[#allocation12 + $0x98] sm:$0xff] }
 0xf09   :  { %4458 = vtanh.f32 %v3290_v62  ;;  %v3310_v38 = vadd.f32 1.0, %v4455_v9  ;;  %v6659_v62 = vld [vmem:[#allocation12 + $0xb0] sm:$0xff] }
 0xf0a   :  { %4460 = vrcp.f32 %v3303_v29  ;;  %v6668_v29 = vld [vmem:[#allocation12 + $0x80] sm:$0xff]  ;;  %v6671_v9 = vld [vmem:[#allocation12 + $0x90] sm:$0xff] }
 0xf0b   :  { %4462 = vrcp.f32 %v3310_v38  ;;  %7281 = vst [vmem:[#allocation35_spill] sm:$0xff] %v6671_v9  ;;  %v6683_v38 = vld [vmem:[#allocation12 + $0x70] sm:$0xff] }
 0xf0c   :  { %7285 = vst [vmem:[#allocation36_spill] sm:$0xff] %v6683_v38 }
 0xf15   :  { %v4457_v41 = vpop.eup %4456 }
 0xf16   :  { %v4459_v32 = vpop.eup %4458 }
 0xf17   :  { %v4461_v18 = vpop.eup %4460  ;;  %v3314_v39 = vmul.f32 %v4459_v32, %v4457_v41  ;;  %v6674_v41 = vld [vmem:[#allocation12 + $0x68] sm:$0xff]  ;;  %v6677_v32 = vld [vmem:[#allocation12 + $0x78] sm:$0xff] }
 0xf18   :  { %v3313_v31 = vmul.f32 %v4461_v18, %v6447_v21  ;;  %v4463_v20 = vpop.eup %4462  ;;  %v6566_v21 = vld [vmem:[#allocation12 + $0x188] sm:$0xff]  ;;  %7282 = vst [vmem:[#allocation37_spill] sm:$0xff] %v6674_v41  ;;  %7283 = vst [vmem:[#allocation26_spill] sm:$0xff] %v6677_v32  ;;  %v6680_v18 = vld [vmem:[#allocation12 + $0x60] sm:$0xff] }
 0xf19   :  { %7284 = vst [vmem:[#allocation28_spill] sm:$0xff] %v6680_v18 }
 0xf1a   :  { %v6529_v45 = vadd.f32 %v3314_v39, %v3313_v31  ;;  %v6686_v39 = vld [vmem:[#allocation12 + $0x48] sm:$0xff]  ;;  %v6689_v31 = vld [vmem:[#allocation12 + $0x58] sm:$0xff] }
 0xf1b   :  { %7286 = vst [vmem:[#allocation38_spill] sm:$0xff] %v6686_v39  ;;  %7287 = vst [vmem:[#allocation21_spill] sm:$0xff] %v6689_v31 }
 0xf1c   :  { %4464 = vtanh.f32 %v6529_v45 }
 0xf29   :  { %v4465_v15 = vpop.eup %4464 }
 0xf2a   :  { %v6532_v10 = vmul.f32 %v4465_v15, %v4463_v20  ;;  %v6692_v20 = vld [vmem:[#allocation12 + $0x40] sm:$0xff]  ;;  %v6695_v15 = vld [vmem:[#allocation12 + $0x50] sm:$0xff] }
 0xf2b   :  { %7288 = vst [vmem:[#allocation29_spill] sm:$0xff] %v6692_v20  ;;  %7289 = vst [vmem:[#allocation22_spill] sm:$0xff] %v6695_v15 }
 0xf2c   :  { %7280 = vst [vmem:[#allocation27_spill] sm:$0xff] %v6532_v10  ;;  %3385 = vmatmul.mubr.f32.vlgmr.msra.gmra.mxu0 %v6532_v10  ;;  %3456 = vmatmul.mubr.f32.vlgmr.msra.gmra.mxu1 %v6532_v10  ;;  %v6698_v10 = vld [vmem:[#allocation12 + $0x28] sm:$0xff] }
 0xf2d   :  { %3489 = vmatpush1.msra.mxu0 %v6536_v35  ;;  %3560 = vmatpush1.msra.mxu1 %v6539_v25  ;;  %7290 = vst [vmem:[#allocation39_spill] sm:$0xff] %v6698_v10 }
 0xf2e   :  { %3490 = vmatprep.subr.mxu0 %v6542_v24  ;;  %3561 = vmatprep.subr.mxu1 %v6545_v8 }
 0xf2f   :  { %3491 = vmatpush1.msra.mxu0 %v6548_v40  ;;  %3562 = vmatpush1.msra.mxu1 %v6551_v16 }
 0xf30   :  { %3492 = vmatprep.subr.mxu0 %v6554_v14  ;;  %3563 = vmatprep.subr.mxu1 %v6557_v17 }
 0xf31   :  { %3493 = vmatpush1.msra.mxu0 %v6560_v33  ;;  %3564 = vmatpush1.msra.mxu1 %v6563_v37 }
 0xf32   :  { %3494 = vmatprep.subr.mxu0 %v6566_v21  ;;  %3565 = vmatprep.subr.mxu1 %v6569_v11 }
 0xf33   :  { %3495 = vmatpush1.msra.mxu0 %v6572_v30  ;;  %3566 = vmatpush1.msra.mxu1 %v6575_v3 }
 0xf34   :  { %3496 = vmatprep.subr.mxu0 %v6578_v42  ;;  %3567 = vmatprep.subr.mxu1 %v6581_v2 }
 0xf35   :  { %3497 = vmatpush1.msra.mxu0 %v6584_v27  ;;  %3568 = vmatpush1.msra.mxu1 %v6587_v1 }
 0xf36   :  { %3498 = vmatprep.subr.mxu0 %v6590_v6  ;;  %3569 = vmatprep.subr.mxu1 %v6593_v23 }
 0xf37   :  { %3499 = vmatpush1.msra.mxu0 %v6596_v43  ;;  %3570 = vmatpush1.msra.mxu1 %v6599_v44 }
 0xf38   :  { %3500 = vmatprep.subr.mxu0 %v6602_v19  ;;  %3571 = vmatprep.subr.mxu1 %v6605_v22 }
 0xf39   :  { %3501 = vmatpush1.msra.mxu0 %v6608_v0  ;;  %3572 = vmatpush1.msra.mxu1 %v6611_v26 }
 0xf3a   :  { %3502 = vmatprep.subr.mxu0 %v6614_v46  ;;  %3573 = vmatprep.subr.mxu1 %v6617_v47 }
 0xf3b   :  { %3503 = vmatpush1.msra.mxu0 %v6620_v48  ;;  %3574 = vmatpush1.msra.mxu1 %v6623_v50 }
 0xf3c   :  { %3504 = vmatprep.subr.mxu0 %v6626_v4  ;;  %3575 = vmatprep.subr.mxu1 %v6629_v5 }
 0xf3d   :  { %3505 = vmatpush1.msra.mxu0 %v6632_v7  ;;  %3576 = vmatpush1.msra.mxu1 %v6635_v53 }
 0xf3e   :  { %3506 = vmatprep.subr.mxu0 %v6638_v55  ;;  %3577 = vmatprep.subr.mxu1 %v6641_v56 }
 0xf3f   :  { %3507 = vmatpush1.msra.mxu0 %v6644_v57  ;;  %3578 = vmatpush1.msra.mxu1 %v6647_v58 }
 0xf40   :  { %3508 = vmatprep.subr.mxu0 %v6650_v59  ;;  %3579 = vmatprep.subr.mxu1 %v6653_v60 }
 0xf41   :  { %3509 = vmatpush1.msra.mxu0 %v6656_v61  ;;  %3580 = vmatpush1.msra.mxu1 %v6659_v62 }
 0xf42   :  { %3510 = vmatprep.subr.mxu0 %v6662_v63  ;;  %3581 = vmatprep.subr.mxu1 %v6665_v12 }
 0xf43   :  { %3511 = vmatpush1.msra.mxu0 %v6668_v29  ;;  %3582 = vmatpush1.msra.mxu1 %v6671_v9 }
 0xf44   :  { %3512 = vmatprep.subr.mxu0 %v6674_v41  ;;  %3583 = vmatprep.subr.mxu1 %v6677_v32 }
 0xf45   :  { %3513 = vmatpush1.msra.mxu0 %v6680_v18  ;;  %3584 = vmatpush1.msra.mxu1 %v6683_v38 }
 0xf46   :  { %3514 = vmatprep.subr.mxu0 %v6686_v39  ;;  %3585 = vmatprep.subr.mxu1 %v6689_v31  ;;  %v6704_v39 = vld [vmem:[#allocation12 + $0x20] sm:$0xff]  ;;  %v6707_v31 = vld [vmem:[#allocation12 + $0x30] sm:$0xff] }
 0xf47   :  { %3515 = vmatpush1.msra.mxu0 %v6692_v20  ;;  %3586 = vmatpush1.msra.mxu1 %v6695_v15  ;;  %7292 = vst [vmem:[#allocation64_spill] sm:$0xff] %v6704_v39  ;;  %7293 = vst [vmem:[#allocation55_spill] sm:$0xff] %v6707_v31  ;;  %v6710_v20 = vld [vmem:[#allocation12 + $0x8] sm:$0xff]  ;;  %v6713_v15 = vld [vmem:[#allocation12 + $0x18] sm:$0xff] }
 0xf48   :  { %3516 = vmatprep.subr.mxu0 %v6698_v10  ;;  %3587 = vmatprep.subr.mxu1 %v6701_v34  ;;  %7294 = vst [vmem:[#allocation54_spill] sm:$0xff] %v6710_v20  ;;  %7295 = vst [vmem:[#allocation65_spill] sm:$0xff] %v6713_v15  ;;  %v6716_v10 = vld [vmem:[#allocation12] sm:$0xff]  ;;  %v6720_v34 = vld [vmem:[#allocation12 + $0x10] sm:$0xff] }
 0xf49   :  { %3517 = vmatpush1.msra.mxu0 %v6704_v39  ;;  %3588 = vmatpush1.msra.mxu1 %v6707_v31  ;;  %7296 = vst [vmem:[#allocation66_spill] sm:$0xff] %v6716_v10  ;;  %7297 = vst [vmem:[#allocation57_spill] sm:$0xff] %v6720_v34 }
 0xf4a   :  { %3518 = vmatprep.subr.mxu0 %v6710_v20  ;;  %3589 = vmatprep.subr.mxu1 %v6713_v15 }
 0xf4b   :  { %3519 = vmatpush1.msra.mxu0 %v6716_v10  ;;  %3552 = vmatprep.mubr.f32.mxu0 %v7276_v49 }
 0xf4c   :  { %3590 = vmatpush1.msra.mxu1 %v6720_v34  ;;  %3623 = vmatprep.mubr.f32.mxu1 %v7276_v49 }
 0xf4d   :  { %3656 = vmatprep.subr.mxu0 %v6518_v51  ;;  %3727 = vmatprep.subr.mxu1 %v6521_v52 }
 0xfec   :  { %v3386_v20 = vpop.f32.mrf.mxu0  ;;  %v3457_v10 = vpop.f32.mrf.mxu1 }
 0xfed   :  { %v3387_v31 = vadd.f32 %v3386_v20, %v7278_v28  ;;  %v3458_v51 = vadd.f32 %v3457_v10, %v6287_v13 }
 0xfee   :  { %v3388_v15 = vpop.f32.mrf.mxu0  ;;  %v3459_v32 = vpop.f32.mrf.mxu1 }
 0xfef   :  { %v4059_v39 = vmul.f32 -1.442695, %v3387_v31  ;;  %v3389_v38 = vadd.f32 %v3388_v15, %v7279_v54  ;;  %v3460_v34 = vadd.f32 %v3459_v32, %v6283_v36 }
 0xff1   :  { %4466 = vpow2.f32 %v4059_v39  ;;  %v4060_v18 = vmul.f32 -1.442695, %v3389_v38  ;;  %v4061_v41 = vmul.f32 -1.442695, %v3460_v34 }
 0xff3   :  { %4468 = vpow2.f32 %v4060_v18 }
 0xff4   :  { %4470 = vpow2.f32 %v4061_v41  ;;  %v3845_v41 = vld [vmem:[#allocation13 + $0x68] sm:$0xff] }
 0xffe   :  { %v4467_v49 = vpop.eup %4466 }
 0xfff   :  { %v3465_v9 = vadd.f32 1.0, %v4467_v49 }
0x1000   :  { %v4469_v52 = vpop.eup %4468 }
0x1001   :  { %4472 = vrcp.f32 %v3465_v9  ;;  %v3471_v20 = vadd.f32 1.0, %v4469_v52  ;;  %v4471_v31 = vpop.eup %4470  ;;  %v7318_v9 = vld [vmem:[#allocation23_spill] sm:$0xff]  ;;  %v3843_v52 = vld [vmem:[#allocation13 + $0x58] sm:$0xff] }
0x1002   :  { %4474 = vtanh.f32 %v3458_v51  ;;  %v3478_v38 = vadd.f32 1.0, %v4471_v31  ;;  %v3844_v51 = vld [vmem:[#allocation13 + $0x60] sm:$0xff]  ;;  %v3841_v31 = vld [vmem:[#allocation13 + $0x48] sm:$0xff] }
0x1003   :  { %4476 = vrcp.f32 %v3471_v20  ;;  %v3842_v20 = vld [vmem:[#allocation13 + $0x50] sm:$0xff] }
0x1004   :  { %4478 = vrcp.f32 %v3478_v38  ;;  %v3838_v38 = vld [vmem:[#allocation13 + $0x30] sm:$0xff] }
0x100e   :  { %v4473_v15 = vpop.eup %4472 }
0x100f   :  { %v4475_v39 = vpop.eup %4474 }
0x1010   :  { %v4477_v54 = vpop.eup %4476  ;;  %v3482_v18 = vmul.f32 %v4475_v39, %v4473_v15  ;;  %v3840_v15 = vld [vmem:[#allocation13 + $0x40] sm:$0xff]  ;;  %v3839_v39 = vld [vmem:[#allocation13 + $0x38] sm:$0xff] }
0x1011   :  { %v3481_v28 = vmul.f32 %v4477_v54, %v6529_v45  ;;  %v4479_v34 = vpop.eup %4478  ;;  %v7299_v54 = vld [vmem:[#allocation37_spill] sm:$0xff]  ;;  %v7300_v45 = vld [vmem:[#allocation26_spill] sm:$0xff] }
0x1013   :  { %v6731_v32 = vadd.f32 %v3482_v18, %v3481_v28  ;;  %v7298_v28 = vld [vmem:[#allocation35_spill] sm:$0xff]  ;;  %v3837_v18 = vld [vmem:[#allocation13 + $0x28] sm:$0xff] }
0x1015   :  { %4480 = vtanh.f32 %v6731_v32 }
0x1022   :  { %v4481_v49 = vpop.eup %4480 }
0x1023   :  { %v6734_v10 = vmul.f32 %v4481_v49, %v4479_v34  ;;  %v3835_v34 = vld [vmem:[#allocation13 + $0x18] sm:$0xff]  ;;  %v3834_v49 = vld [vmem:[#allocation13 + $0x10] sm:$0xff] }
0x1025   :  { %3553 = vmatmul.mubr.f32.vlgmr.msra.gmra.mxu0 %v6734_v10  ;;  %3624 = vmatmul.mubr.f32.vlgmr.msra.gmra.mxu1 %v6734_v10 }
0x1026   :  { %3657 = vmatpush1.msra.mxu0 %v6536_v35  ;;  %3728 = vmatpush1.msra.mxu1 %v6539_v25  ;;  %v7301_v35 = vld [vmem:[#allocation28_spill] sm:$0xff] }
0x1027   :  { %3658 = vmatprep.subr.mxu0 %v6542_v24  ;;  %3729 = vmatprep.subr.mxu1 %v6545_v8  ;;  %v7302_v25 = vld [vmem:[#allocation36_spill] sm:$0xff]  ;;  %v7303_v24 = vld [vmem:[#allocation38_spill] sm:$0xff]  ;;  %v7304_v8 = vld [vmem:[#allocation21_spill] sm:$0xff] }
0x1028   :  { %3659 = vmatpush1.msra.mxu0 %v6548_v40  ;;  %3730 = vmatpush1.msra.mxu1 %v6551_v16  ;;  %v7305_v40 = vld [vmem:[#allocation29_spill] sm:$0xff]  ;;  %v7306_v16 = vld [vmem:[#allocation22_spill] sm:$0xff] }
0x1029   :  { %3660 = vmatprep.subr.mxu0 %v6554_v14  ;;  %3731 = vmatprep.subr.mxu1 %v6557_v17  ;;  %v7307_v14 = vld [vmem:[#allocation39_spill] sm:$0xff] }
0x102a   :  { %3661 = vmatpush1.msra.mxu0 %v6560_v33  ;;  %3732 = vmatpush1.msra.mxu1 %v6563_v37  ;;  %v7308_v17 = vld [vmem:[#allocation63_spill] sm:$0xff]  ;;  %v7309_v33 = vld [vmem:[#allocation64_spill] sm:$0xff] }
0x102b   :  { %3662 = vmatprep.subr.mxu0 %v6566_v21  ;;  %3733 = vmatprep.subr.mxu1 %v6569_v11  ;;  %v7310_v37 = vld [vmem:[#allocation55_spill] sm:$0xff]  ;;  %v7311_v21 = vld [vmem:[#allocation54_spill] sm:$0xff]  ;;  %v7312_v11 = vld [vmem:[#allocation65_spill] sm:$0xff] }
0x102c   :  { %3663 = vmatpush1.msra.mxu0 %v6572_v30  ;;  %3734 = vmatpush1.msra.mxu1 %v6575_v3  ;;  %v7313_v30 = vld [vmem:[#allocation66_spill] sm:$0xff]  ;;  %v7314_v3 = vmov 0.0  }
0x102d   :  { %3664 = vmatprep.subr.mxu0 %v6578_v42  ;;  %3735 = vmatprep.subr.mxu1 %v6581_v2  ;;  %v7315_v42 = vld [vmem:[#allocation57_spill] sm:$0xff]  ;;  %v3847_v2 = vld [vmem:[#allocation13 + $0x78] sm:$0xff] }
0x102e   :  { %3665 = vmatpush1.msra.mxu0 %v6584_v27  ;;  %3736 = vmatpush1.msra.mxu1 %v6587_v1  ;;  %v7316_v1 = vld [vmem:[#allocation45_spill] sm:$0xff] }
0x102f   :  { %3666 = vmatprep.subr.mxu0 %v6590_v6  ;;  %3737 = vmatprep.subr.mxu1 %v6593_v23 }
0x1030   :  { %3667 = vmatpush1.msra.mxu0 %v6596_v43  ;;  %3738 = vmatpush1.msra.mxu1 %v6599_v44  ;;  %v7317_v44 = vld [vmem:[#allocation47_spill] sm:$0xff] }
0x1031   :  { %3668 = vmatprep.subr.mxu0 %v6602_v19  ;;  %3739 = vmatprep.subr.mxu1 %v6605_v22 }
0x1032   :  { %3669 = vmatpush1.msra.mxu0 %v6608_v0  ;;  %3740 = vmatpush1.msra.mxu1 %v6611_v26 }
0x1033   :  { %3670 = vmatprep.subr.mxu0 %v6614_v46  ;;  %3741 = vmatprep.subr.mxu1 %v6617_v47 }
0x1034   :  { %3671 = vmatpush1.msra.mxu0 %v6620_v48  ;;  %3742 = vmatpush1.msra.mxu1 %v6623_v50 }
0x1035   :  { %3672 = vmatprep.subr.mxu0 %v6626_v4  ;;  %3743 = vmatprep.subr.mxu1 %v6629_v5 }
0x1036   :  { %3673 = vmatpush1.msra.mxu0 %v6632_v7  ;;  %3744 = vmatpush1.msra.mxu1 %v6635_v53 }
0x1037   :  { %3674 = vmatprep.subr.mxu0 %v6638_v55  ;;  %3745 = vmatprep.subr.mxu1 %v6641_v56 }
0x1038   :  { %3675 = vmatpush1.msra.mxu0 %v6644_v57  ;;  %3746 = vmatpush1.msra.mxu1 %v6647_v58 }
0x1039   :  { %3676 = vmatprep.subr.mxu0 %v6650_v59  ;;  %3747 = vmatprep.subr.mxu1 %v6653_v60 }
0x103a   :  { %3677 = vmatpush1.msra.mxu0 %v6656_v61  ;;  %3748 = vmatpush1.msra.mxu1 %v6659_v62 }
0x103b   :  { %3678 = vmatprep.subr.mxu0 %v6662_v63  ;;  %3749 = vmatprep.subr.mxu1 %v6665_v12 }
0x103c   :  { %3679 = vmatpush1.msra.mxu0 %v6668_v29  ;;  %3750 = vmatpush1.msra.mxu1 %v7298_v28  ;;  %v3846_v29 = vld [vmem:[#allocation13 + $0x70] sm:$0xff]  ;;  %v3833_v28 = vld [vmem:[#allocation13 + $0x8] sm:$0xff] }
0x103d   :  { %3680 = vmatprep.subr.mxu0 %v7299_v54  ;;  %3751 = vmatprep.subr.mxu1 %v7300_v45  ;;  %v3832_v54 = vld [vmem:[#allocation13] sm:$0xff]  ;;  %v7319_v45 = vld [vmem:[#allocation44_spill] sm:$0xff] }
0x103e   :  { %3681 = vmatpush1.msra.mxu0 %v7301_v35  ;;  %3752 = vmatpush1.msra.mxu1 %v7302_v25  ;;  %v7320_v35 = vld [vmem:[#allocation46_spill] sm:$0xff]  ;;  %v7321_v25 = vld [vmem:[#allocation25_spill] sm:$0xff] }
0x103f   :  { %3682 = vmatprep.subr.mxu0 %v7303_v24  ;;  %3753 = vmatprep.subr.mxu1 %v7304_v8  ;;  %v7322_v24 = vld [vmem:[#allocation27_spill] sm:$0xff] }
0x1040   :  { %3683 = vmatpush1.msra.mxu0 %v7305_v40  ;;  %3754 = vmatpush1.msra.mxu1 %v7306_v16 }
0x1041   :  { %3684 = vmatprep.subr.mxu0 %v7307_v14  ;;  %3755 = vmatprep.subr.mxu1 %v7308_v17 }
0x1042   :  { %3685 = vmatpush1.msra.mxu0 %v7309_v33  ;;  %3756 = vmatpush1.msra.mxu1 %v7310_v37 }
0x1043   :  { %3686 = vmatprep.subr.mxu0 %v7311_v21  ;;  %3757 = vmatprep.subr.mxu1 %v7312_v11 }
0x1044   :  { %3687 = vmatpush1.msra.mxu0 %v7313_v30  ;;  %3720 = vmatprep.mubr.f32.mxu0 %v7314_v3 }
0x1045   :  { %3758 = vmatpush1.msra.mxu1 %v7315_v42  ;;  %3791 = vmatprep.mubr.f32.mxu1 %v7314_v3 }
0x1046   :  { %4197 = vmatprep.subr.mxu0 %v3847_v2 }
0x10e5   :  { %v3554_v27 = vpop.f32.mrf.mxu0  ;;  %v3625_v22 = vpop.f32.mrf.mxu1 }
0x10e6   :  { %v3555_v6 = vadd.f32 %v3554_v27, %v7316_v1  ;;  %v3626_v50 = vadd.f32 %v3625_v22, %v6287_v13 }
0x10e7   :  { %v3556_v23 = vpop.f32.mrf.mxu0  ;;  %v3627_v26 = vpop.f32.mrf.mxu1 }
0x10e8   :  { %v4062_v43 = vmul.f32 -1.442695, %v3555_v6  ;;  %v3557_v19 = vadd.f32 %v3556_v23, %v7317_v44  ;;  %v3628_v46 = vadd.f32 %v3627_v26, %v6283_v36 }
0x10ea   :  { %4482 = vpow2.f32 %v4062_v43  ;;  %v4063_v0 = vmul.f32 -1.442695, %v3557_v19  ;;  %v4064_v47 = vmul.f32 -1.442695, %v3628_v46 }
0x10ec   :  { %4484 = vpow2.f32 %v4063_v0 }
0x10ed   :  { %4486 = vpow2.f32 %v4064_v47 }
0x10f7   :  { %v4483_v48 = vpop.eup %4482 }
0x10f8   :  { %v3633_v4 = vadd.f32 1.0, %v4483_v48 }
0x10f9   :  { %v4485_v5 = vpop.eup %4484 }
0x10fa   :  { %4488 = vrcp.f32 %v3633_v4  ;;  %v3639_v7 = vadd.f32 1.0, %v4485_v5  ;;  %v4487_v53 = vpop.eup %4486 }
0x10fb   :  { %4490 = vtanh.f32 %v3626_v50  ;;  %v3646_v58 = vadd.f32 1.0, %v4487_v53 }
0x10fc   :  { %4492 = vrcp.f32 %v3639_v7 }
0x10fd   :  { %4494 = vrcp.f32 %v3646_v58 }
0x1107   :  { %v4489_v55 = vpop.eup %4488 }
0x1108   :  { %v4491_v56 = vpop.eup %4490 }
0x1109   :  { %v4493_v57 = vpop.eup %4492  ;;  %v3650_v59 = vmul.f32 %v4491_v56, %v4489_v55 }
0x110a   :  { %v3649_v60 = vmul.f32 %v4493_v57, %v6731_v32  ;;  %v4495_v62 = vpop.eup %4494  ;;  %v3836_v32 = vld [vmem:[#allocation13 + $0x20] sm:$0xff] }
0x110c   :  { %v6807_v61 = vadd.f32 %v3650_v59, %v3649_v60 }
0x110e   :  { %4496 = vtanh.f32 %v6807_v61 }
0x111b   :  { %v4497_v63 = vpop.eup %4496 }
0x111c   :  { %v3653_v12 = vmul.f32 %v4497_v63, %v4495_v62 }
0x111e   :  { %3721 = vmatmul.mubr.f32.vlgmr.msra.gmra.mxu0 %v3653_v12  ;;  %3792 = vmatmul.mubr.f32.vlgmr.msra.gmra.mxu1 %v3653_v12 }
0x111f   :  { %4198 = vmatpush3.msra.mxu0 %v3847_v2  ;;  %4229 = vmatprep.mubr.f32.mxu0 %v7318_v9 }
0x1120   :  { %4199 = vmatprep.subr.mxu0 %v3846_v29 }
0x1121   :  { %4200 = vmatpush3.msra.mxu0 %v3846_v29 }
0x1122   :  { %4201 = vmatprep.subr.mxu0 %v3845_v41 }
0x1123   :  { %4202 = vmatpush3.msra.mxu0 %v3845_v41 }
0x1124   :  { %4203 = vmatprep.subr.mxu0 %v3844_v51 }
0x1125   :  { %4204 = vmatpush3.msra.mxu0 %v3844_v51 }
0x1126   :  { %4205 = vmatprep.subr.mxu0 %v3843_v52 }
0x1127   :  { %4206 = vmatpush3.msra.mxu0 %v3843_v52 }
0x1128   :  { %4207 = vmatprep.subr.mxu0 %v3842_v20 }
0x1129   :  { %4208 = vmatpush3.msra.mxu0 %v3842_v20 }
0x112a   :  { %4209 = vmatprep.subr.mxu0 %v3841_v31 }
0x112b   :  { %4210 = vmatpush3.msra.mxu0 %v3841_v31 }
0x112c   :  { %4211 = vmatprep.subr.mxu0 %v3840_v15 }
0x112d   :  { %4212 = vmatpush3.msra.mxu0 %v3840_v15 }
0x112e   :  { %4213 = vmatprep.subr.mxu0 %v3839_v39 }
0x112f   :  { %4214 = vmatpush3.msra.mxu0 %v3839_v39 }
0x1130   :  { %4215 = vmatprep.subr.mxu0 %v3838_v38 }
0x1131   :  { %4216 = vmatpush3.msra.mxu0 %v3838_v38 }
0x1132   :  { %4217 = vmatprep.subr.mxu0 %v3837_v18 }
0x1133   :  { %4218 = vmatpush3.msra.mxu0 %v3837_v18 }
0x1134   :  { %4219 = vmatprep.subr.mxu0 %v3836_v32 }
0x1135   :  { %4220 = vmatpush3.msra.mxu0 %v3836_v32 }
0x1136   :  { %4221 = vmatprep.subr.mxu0 %v3835_v34 }
0x1137   :  { %4222 = vmatpush3.msra.mxu0 %v3835_v34 }
0x1138   :  { %4223 = vmatprep.subr.mxu0 %v3834_v49 }
0x1139   :  { %4224 = vmatpush3.msra.mxu0 %v3834_v49 }
0x113a   :  { %4225 = vmatprep.subr.mxu0 %v3833_v28 }
0x113b   :  { %4226 = vmatpush3.msra.mxu0 %v3833_v28 }
0x113c   :  { %4227 = vmatprep.subr.mxu0 %v3832_v54 }
0x113d   :  { %4228 = vmatpush3.msra.mxu0 %v3832_v54 }
0x113e   :  { %4230 = vmatmul.mubr.f32.vlgmr.msra.gmra.mxu0 %v7319_v45 }
0x113f   :  { %4232 = vmatprep.mubr.f32.mxu0 %v7320_v35 }
0x1142   :  { %4233 = vmatmul.mubr.f32.gmra.mxu0 %v7321_v25 }
0x1143   :  { %4235 = vmatprep.mubr.f32.mxu0 %v7322_v24 }
0x1146   :  { %4236 = vmatmul.mubr.f32.gmra.mxu0 %v6734_v10 }
0x1147   :  { %4238 = vmatprep.mubr.f32.mxu0 %v3653_v12 }
0x11de   :  { %v3722_v8 = vpop.f32.mrf.mxu0  ;;  %v3793_v33 = vpop.f32.mrf.mxu1 }
0x11df   :  { %v3723_v40 = vadd.f32 %v3722_v8, %v7316_v1  ;;  %v3794_v42 = vadd.f32 %v3793_v33, %v6287_v13  ;;  %v4068_v1 = vld [vmem:[%s6846_s16] ss:$0 sm:$0xff]  ;;  %s4804_s16 = smov [#allocation15]  }
0x11e0   :  { %v3724_v16 = vpop.f32.mrf.mxu0  ;;  %v3795_v21 = vpop.f32.mrf.mxu1  ;;  %s3973_s30 = sshll.u32 %s4804_s16, 4  ;;  %s3974_s30 = int_to_ptr.vmem [resolvable:$true] %s3973_s30 }
0x11e1   :  { %v4065_v14 = vmul.f32 -1.442695, %v3723_v40  ;;  %v3725_v17 = vadd.f32 %v3724_v16, %v7317_v44  ;;  %v3796_v11 = vadd.f32 %v3795_v21, %v6283_v36  ;;  %s4762_s18 = scalar_lea.vmem %s3974_s30, 1024  ;;  %p4767_p3 = scmp.lt.s32.totalorder %s3974_s30, %s3974_s30 }
0x11e2   :  { %p4763_p2 = scmp.ne.s32.totalorder %s3974_s30, %s4762_s18  ;;  %p4768_p4 = scmp.lt.s32.totalorder %s4762_s18, %s4762_s18 }
0x11e3   :  { %4498 = vpow2.f32 %v4065_v14  ;;  %v4066_v37 = vmul.f32 -1.442695, %v3725_v17  ;;  %v4067_v30 = vmul.f32 -1.442695, %v3796_v11 }
0x11e4   :  { %p4769_p5 = por %p4768_p4, %p4767_p3 }
0x11e5   :  { %4500 = vpow2.f32 %v4066_v37 }
0x11e6   :  { %4502 = vpow2.f32 %v4067_v30  ;;  %p4770_p6 = pnand %p4769_p5, %p4763_p2 }
0x11f0   :  { %v4499_v3 = vpop.eup %4498 }
0x11f1   :  { %v3801_v10 = vadd.f32 1.0, %v4499_v3 }
0x11f2   :  { %v4501_v2 = vpop.eup %4500 }
0x11f3   :  { %4504 = vrcp.f32 %v3801_v10  ;;  %v3807_v27 = vadd.f32 1.0, %v4501_v2  ;;  %v4503_v23 = vpop.eup %4502 }
0x11f4   :  { %4506 = vtanh.f32 %v3794_v42  ;;  %v3814_v0 = vadd.f32 1.0, %v4503_v23 }
0x11f5   :  { %4508 = vrcp.f32 %v3807_v27 }
0x11f6   :  { %4510 = vrcp.f32 %v3814_v0 }
0x11fe   :  { %v4231_v6 = vpop.f32.mrf.mxu0 }
0x11ff   :  { %v3927_v43 = vadd.f32 %v4231_v6, %v4068_v1 }
0x1200   :  { %v4505_v44 = vpop.eup %4504  ;;  %v3921_v36 = vpop.f32.mrf.mxu0 }
0x1201   :  { %v4507_v19 = vpop.eup %4506  ;;  %3961 = vst [vmem:[#allocation15 + $0x8] sm:$0xff] %v3927_v43  ;;  %v3922_v22 = vadd.f32 %v4068_v1, %v3921_v36 }
0x1202   :  { %v4509_v13 = vpop.eup %4508  ;;  %v4234_v26 = vpop.f32.mrf.mxu0  ;;  %v3818_v46 = vmul.f32 %v4507_v19, %v4505_v44 }
0x1203   :  { %v3817_v47 = vmul.f32 %v4509_v13, %v6807_v61  ;;  %3960 = vst [vmem:[#allocation15] sm:$0xff] %v3922_v22  ;;  %v3937_v48 = vadd.f32 %v4234_v26, %v4068_v1  ;;  %v4511_v57 = vpop.eup %4510 }
0x1204   :  { %v3931_v50 = vpop.f32.mrf.mxu0 }
0x1205   :  { %3963 = vst [vmem:[#allocation15 + $0x18] sm:$0xff] %v3937_v48  ;;  %v3932_v4 = vadd.f32 %v4068_v1, %v3931_v50  ;;  %v3819_v5 = vadd.f32 %v3818_v46, %v3817_v47 }
0x1206   :  { %v4237_v7 = vpop.f32.mrf.mxu0 }
0x1207   :  { %3962 = vst [vmem:[#allocation15 + $0x10] sm:$0xff] %v3932_v4  ;;  %v3947_v53 = vadd.f32 %v4237_v7, %v4068_v1  ;;  %4512 = vtanh.f32 %v3819_v5 }
0x1208   :  { %v3941_v55 = vpop.f32.mrf.mxu0 }
0x1209   :  { %3965 = vst [vmem:[#allocation15 + $0x28] sm:$0xff] %v3947_v53  ;;  %v3942_v56 = vadd.f32 %v4068_v1, %v3941_v55 }
0x120b   :  { %3964 = vst [vmem:[#allocation15 + $0x20] sm:$0xff] %v3942_v56 }
0x1214   :  { %v4513_v58 = vpop.eup %4512 }
0x1215   :  { %v3821_v59 = vmul.f32 %v4513_v58, %v4511_v57 }
0x1217   :  { %4239 = vmatmul.mubr.f32.gmra.mxu0 %v3821_v59 }
0x12d7   :  { %v4240_v60 = vpop.f32.mrf.mxu0 }
0x12d8   :  { %v3957_v61 = vadd.f32 %v4240_v60, %v4068_v1 }
0x12d9   :  { %v3951_v62 = vpop.f32.mrf.mxu0 }
0x12da   :  { %3967 = vst [vmem:[#allocation15 + $0x38] sm:$0xff] %v3957_v61  ;;  %v3952_v63 = vadd.f32 %v4068_v1, %v3951_v62 }
0x12dc   :  { %3966 = vst [vmem:[#allocation15 + $0x30] sm:$0xff] %v3952_v63 }
0x12dd   :  { %4773 = shalt.err (!%p4770_p6)
}
0x12de   :  { %3979 = dma.vmem_to_hbm [thread:$0]  %s3974_s30, 1024, %s6847_s17, [#allocation6], %s4793_s27, %s4793_s27, %s4794_s28  }
0x12df   :  { %4790 = dma.done.wait [#allocation6], 1024  }
0x12e0   :  { %4791 = vsyncadd [#allocation6], 4294966272 }
0x12e1   :  { %3983 = vsyncpa [#allocation5], 1 }
0x12e2   :  { %3984 = vsyncpa [#allocation8], 1 }
0x12e3   :  { %3985 = vsyncpa [#allocation11], 1 }
0x12e4   :  { %3986 = vsyncpa [#allocation14], 1 }
0x12e5   :  { %3987 = vsyncpa [#allocation6], 1 }

</bundles_post_ra>
